<compile_context>
chip_gen: v7x
topology: tpu7x:2x2x1
jax: 0.10.0
libtpu: 0.0.40
codegen_flags: <defaults>
</compile_context>

<pallas_src>
import functools

import numpy as np
import jax
import jax.numpy as jnp
from jax.experimental import pallas as pl
from jax.experimental.pallas import tpu as pltpu

F32 = jnp.float32
BF16 = jnp.bfloat16
LN_EPS = 1e-5
BN_EPS = 1e-5

VMEM_SPEC = pl.BlockSpec(memory_space=pltpu.MemorySpace.VMEM)


# --------------------------------------------------------------------------
# In-kernel helpers (traced inside the Pallas kernel)
# --------------------------------------------------------------------------
def _mm(a, b):
    """a @ b on the MXU in bf16 with f32 accumulation."""
    return jnp.dot(a.astype(BF16), b.astype(BF16), preferred_element_type=F32)


def _mm_nt(a, b):
    """a @ b.T  (contract last dims of both operands)."""
    return jax.lax.dot_general(a.astype(BF16), b.astype(BF16),
                               (((1,), (1,)), ((), ())),
                               preferred_element_type=F32)


def _mm_tn(a, b):
    """a.T @ b  (contract leading dims of both operands)."""
    return jax.lax.dot_general(a.astype(BF16), b.astype(BF16),
                               (((0,), (0,)), ((), ())),
                               preferred_element_type=F32)


def _softmax_last(x):
    x = x - jnp.max(x, axis=-1, keepdims=True)
    e = jnp.exp(x)
    return e / jnp.sum(e, axis=-1, keepdims=True)


def _softmax_axis0(x):
    x = x - jnp.max(x, axis=0, keepdims=True)
    e = jnp.exp(x)
    return e / jnp.sum(e, axis=0, keepdims=True)


def _layer_norm(x, g, b):
    mean = jnp.mean(x, axis=-1, keepdims=True)
    var = jnp.mean(jnp.square(x - mean), axis=-1, keepdims=True)
    return (x - mean) * jax.lax.rsqrt(var + LN_EPS) * g + b


def _mha_2d(x, wqkv, bqkv, wo, bo, batch, seq, num_heads):
    """torch nn.MultiheadAttention (self-attn, eval) on a [B*S, E] slab."""
    E = wo.shape[-1]
    hd = E // num_heads
    scale = 1.0 / float(np.sqrt(hd))
    qkv = _mm(x, wqkv) + bqkv                          # fused QKV: one K=E matmul
    ctx_rows = []
    for b in range(batch):                             # static unroll (B is tiny)
        rs = slice(b * seq, (b + 1) * seq)
        q = qkv[rs, 0:E] * scale
        k = qkv[rs, E:2 * E]
        v = qkv[rs, 2 * E:3 * E]
        heads = []
        for h in range(num_heads):
            cs = slice(h * hd, (h + 1) * hd)
            p = _softmax_last(_mm_nt(q[:, cs], k[:, cs]))   # [S, S]
            heads.append(_mm(p, v[:, cs]))                  # [S, hd]
        ctx_rows.append(jnp.concatenate(heads, axis=-1))    # [S, E]
    ctx = jnp.concatenate(ctx_rows, axis=0)                 # [B*S, E]
    return _mm(ctx, wo) + bo                           # single output projection


# --------------------------------------------------------------------------
# Single fused Pallas kernel: whole forward pass
# --------------------------------------------------------------------------
def _model_kernel(
        # speech branch
        sp_x_ref, sp_w_ref, sp_b_ref, sp_bn_sc_ref, sp_bn_sh_ref,
        sp_wqkv_ref, sp_bqkv_ref, sp_wo_ref, sp_bo_ref, ln_g_ref, ln_b_ref,
        # text branch (synthetic 1-layer encoder)
        ids_ref, tok_emb_ref, pos_emb_ref,
        t_ln0g_ref, t_ln0b_ref, t_wqkv_ref, t_bqkv_ref, t_wo_ref, t_bo_ref,
        t_ln1g_ref, t_ln1b_ref, t_ff1w_ref, t_ff1b_ref, t_ff2w_ref, t_ff2b_ref,
        t_ln2g_ref, t_ln2b_ref, tx_bn_sc_ref, tx_bn_sh_ref,
        # fusion head
        c_w1_ref, c_b1_ref, c_w2_ref, c_b2_ref,
        h_w_ref, h_b_ref, h_v_ref,
        fc1_w_ref, fc1_b_ref, fc2_w_ref, fc2_b_ref,
        # output
        o_ref,
        *, batch, s_sp, s_tx, num_heads, vocab):

    # ---------------- speech branch -------------------------------------
    # Linear + ReLU
    emb = jnp.maximum(_mm(sp_x_ref[...], sp_w_ref[...]) + sp_b_ref[...], 0.0)
    # eval BatchNorm1d over the sequence-position channel (scale/shift folded
    # at prep time, tiled to [B*S, 1] in-kernel); dropout = identity
    sp_sc = jnp.concatenate([sp_bn_sc_ref[...]] * batch, axis=0)
    sp_sh = jnp.concatenate([sp_bn_sh_ref[...]] * batch, axis=0)
    emb = emb * sp_sc + sp_sh
    # Multi-head self-attention + residual LayerNorm
    attn = _mha_2d(emb, sp_wqkv_ref[...], sp_bqkv_ref[...],
                   sp_wo_ref[...], sp_bo_ref[...], batch, s_sp, num_heads)
    speech_enc = _layer_norm(emb + attn, ln_g_ref[...], ln_b_ref[...])

    # ---------------- text branch ----------------------------------------
    # TODO(synk): pretrained BertModel/RobertaModel replaced by this synthetic
    # deterministic single-layer transformer encoder (attention_mask ignored).
    rows = batch * s_tx
    ids = jnp.broadcast_to(ids_ref[...], (rows, vocab))            # [B*S, V]
    viota = jax.lax.broadcasted_iota(jnp.int32, (rows, vocab), 1)
    onehot = jnp.where(ids == viota, 1.0, 0.0).astype(F32)
    tok = jnp.dot(onehot, tok_emb_ref[...], preferred_element_type=F32)
    pos = jnp.concatenate([pos_emb_ref[...]] * batch, axis=0)      # [B*S, H]
    x = _layer_norm(tok + pos, t_ln0g_ref[...], t_ln0b_ref[...])   # embedding LN
    a = _mha_2d(x, t_wqkv_ref[...], t_bqkv_ref[...], t_wo_ref[...], t_bo_ref[...],
                batch, s_tx, num_heads)
    x = _layer_norm(x + a, t_ln1g_ref[...], t_ln1b_ref[...])
    f = jnp.maximum(_mm(x, t_ff1w_ref[...]) + t_ff1b_ref[...], 0.0)
    f = _mm(f, t_ff2w_ref[...]) + t_ff2b_ref[...]
    text_embedding = _layer_norm(x + f, t_ln2g_ref[...], t_ln2b_ref[...])
    # text_enc = text_embedding + BN(text_embedding)   (dropout = identity)
    tx_sc = jnp.concatenate([tx_bn_sc_ref[...]] * batch, axis=0)
    tx_sh = jnp.concatenate([tx_bn_sh_ref[...]] * batch, axis=0)
    text_enc = text_embedding + (text_embedding * tx_sc + tx_sh)

    # ---------------- fusion head -----------------------------------------
    w1 = c_w1_ref[...]; b1 = c_b1_ref[...]
    w2 = c_w2_ref[...]; b2 = c_b2_ref[...]
    hw = h_w_ref[...]; hb = h_b_ref[...]; hv = h_v_ref[...]

    def combined(x, xa):
        # cat([x, xa, x-xa, x*xa]) is [S, 4H] -> single K=4H (=128-lane) matmul
        cat = jnp.concatenate([x, xa, x - xa, x * xa], axis=-1)
        h = jnp.maximum(_mm(cat, w1) + b1, 0.0)
        return jnp.maximum(_mm(h, w2) + b2, 0.0)

    def han(x):
        u = jnp.tanh(_mm(x, hw) + hb)                  # [S, H]
        s = jnp.sum(u * hv, axis=-1, keepdims=True)    # [S, 1]
        a = _softmax_axis0(s)                          # softmax over seq
        return jnp.sum(x * a, axis=0, keepdims=True)   # [1, H]

    pooled = []
    for b in range(batch):                             # static unroll (B is tiny)
        a1 = speech_enc[b * s_sp:(b + 1) * s_sp, :]    # [S1, H]
        a2 = text_enc[b * s_tx:(b + 1) * s_tx, :]      # [S2, H]
        att = _mm_nt(a1, a2)                           # [S1, S2]
        w12 = _softmax_last(att)                       # softmax over S2
        w21 = _softmax_axis0(att)                      # = softmax(att.T, -1), untransposed
        a1_align = _mm(w12, a2)                        # [S1, H]
        a2_align = _mm_tn(w21, a1)                     # [S2, H]
        c1 = combined(a1, a1_align)
        c2 = combined(a2, a2_align)
        pooled.append(jnp.concatenate([han(c1), han(c2)], axis=-1))   # [1, 2H]
    cat = jnp.concatenate(pooled, axis=0)              # [B, 2H]
    h = jnp.maximum(_mm(cat, fc1_w_ref[...]) + fc1_b_ref[...], 0.0)
    o_ref[...] = (_mm(h, fc2_w_ref[...]) + fc2_b_ref[...]).astype(o_ref.dtype)


# --------------------------------------------------------------------------
# Model glue: one pallas_call, everything in VMEM (all operands are tiny)
# --------------------------------------------------------------------------
def bert_multi_forward(params, speechs, input_ids, attention_mask, *, num_heads):
    del attention_mask            # synthetic encoder ignores the padding mask
    P = params
    B, Sh, Ws = speechs.shape
    St = input_ids.shape[1]
    H = P["ln_g"].shape[-1]
    C = P["fc2_b"].shape[-1]
    vocab = P["bert"]["tok_emb"].shape[0]
    bp = P["bert"]

    args = (
        # speech branch
        speechs.reshape(B * Sh, Ws),
        P["speech_emb_w"], P["speech_emb_b"],
        P["bn_speech_scale"], P["bn_speech_shift"],
        P["mha_speech"]["wqkv"], P["mha_speech"]["bqkv"],
        P["mha_speech"]["wo"], P["mha_speech"]["bo"],
        P["ln_g"], P["ln_b"],
        # text branch
        input_ids.reshape(B * St, 1).astype(jnp.int32),
        bp["tok_emb"], bp["pos_emb"],
        bp["ln0_g"], bp["ln0_b"],
        bp["mha"]["wqkv"], bp["mha"]["bqkv"], bp["mha"]["wo"], bp["mha"]["bo"],
        bp["ln1_g"], bp["ln1_b"],
        bp["ff1_w"], bp["ff1_b"], bp["ff2_w"], bp["ff2_b"],
        bp["ln2_g"], bp["ln2_b"],
        P["bn_text_scale"], P["bn_text_shift"],
        # fusion head
        P["combined"]["w1"], P["combined"]["b1"],
        P["combined"]["w2"], P["combined"]["b2"],
        P["han"]["w"], P["han"]["b"], P["han"]["v"],
        P["fc1_w"], P["fc1_b"], P["fc2_w"], P["fc2_b"],
    )

    kernel = functools.partial(_model_kernel, batch=B, s_sp=Sh, s_tx=St,
                               num_heads=num_heads, vocab=vocab)
    return pl.pallas_call(
        kernel,
        out_shape=jax.ShapeDtypeStruct((B, C), F32),
        in_specs=[VMEM_SPEC] * len(args),
        out_specs=VMEM_SPEC,
    )(*args)


# --------------------------------------------------------------------------
# Deterministic parameter init (already in "prepared" form: fused QKV weights
# in bf16, folded BatchNorm scale/shift, biases stored as [1, N] in f32)
# --------------------------------------------------------------------------
class KeyGen:
    def __init__(self, key):
        self.key = key

    def __call__(self):
        self.key, sub = jax.random.split(self.key)
        return sub


def init_params(kg, *, speech_w, speech_h, max_seq, hidden, n_classes, vocab):
    H = hidden

    def nrm(shape, scale=0.05):
        return (scale * jax.random.normal(kg(), shape)).astype(F32)

    def nrm_w(shape, scale=0.05):
        # matmul weights: bf16 (halves weight DMA, removes in-kernel casts)
        return nrm(shape, scale).astype(BF16)

    def mha_params(E):
        # wq|wk|wv concatenated at param-prep time -> one [E, 3E] matmul in-kernel.
        return {"wqkv": nrm_w((E, 3 * E)), "bqkv": nrm((1, 3 * E)),
                "wo": nrm_w((E, E)), "bo": nrm((1, E))}

    def bn_scale_shift(Cn):
        gamma = 1.0 + nrm((Cn,), 0.1)
        beta = nrm((Cn,), 0.1)
        mean = nrm((Cn,), 0.1)
        var = 1.0 + 0.1 * jax.random.uniform(kg(), (Cn,))
        scale = gamma / jnp.sqrt(var + BN_EPS)        # folded once, not per forward
        shift = beta - mean * scale
        return scale.reshape(Cn, 1).astype(F32), shift.reshape(Cn, 1).astype(F32)

    sp_scale, sp_shift = bn_scale_shift(speech_h)
    tx_scale, tx_shift = bn_scale_shift(max_seq)

    def ln(scale=0.1):
        return (1.0 + nrm((1, H), scale)).astype(F32), nrm((1, H), scale)

    ln_g, ln_b = ln()
    ln0_g, ln0_b = ln()
    ln1_g, ln1_b = ln()
    ln2_g, ln2_b = ln()

    return {
        "speech_emb_w": nrm_w((speech_w, H)), "speech_emb_b": nrm((1, H)),
        "bn_speech_scale": sp_scale, "bn_speech_shift": sp_shift,
        "bn_text_scale": tx_scale, "bn_text_shift": tx_shift,
        "mha_speech": mha_params(H),
        "ln_g": ln_g, "ln_b": ln_b,
        "combined": {"w1": nrm_w((4 * H, 2 * H)), "b1": nrm((1, 2 * H)),
                     "w2": nrm_w((2 * H, H)), "b2": nrm((1, H))},
        "han": {"w": nrm_w((H, H)), "b": nrm((1, H)), "v": nrm((1, H))},
        "fc1_w": nrm_w((2 * H, H)), "fc1_b": nrm((1, H)),
        "fc2_w": nrm_w((H, n_classes)), "fc2_b": nrm((1, n_classes)),
        "bert": {
            "tok_emb": nrm((vocab, H), 0.1),
            "pos_emb": nrm((max_seq, H), 0.1),
            "ln0_g": ln0_g, "ln0_b": ln0_b,
            "mha": mha_params(H),
            "ln1_g": ln1_g, "ln1_b": ln1_b,
            "ff1_w": nrm_w((H, 2 * H)), "ff1_b": nrm((1, 2 * H)),
            "ff2_w": nrm_w((2 * H, H)), "ff2_b": nrm((1, H)),
            "ln2_g": ln2_g, "ln2_b": ln2_b,
        },
    }


# --------------------------------------------------------------------------
if __name__ == "__main__":
    B = 2
    SPEECH_H = 8       # params.speech_h   (speech sequence length)
    SPEECH_W = 24      # params.speech_w   (raw speech feature width)
    HIDDEN = 32        # params.embed_dim == params.hidden_size
    HEADS = 4          # params.num_heads
    MAX_SEQ = 16       # params.max_sequence_length
    N_CLASSES = 3      # params.n_classes
    VOCAB = 50

    kg = KeyGen(jax.random.PRNGKey(0))
    params = init_params(kg, speech_w=SPEECH_W, speech_h=SPEECH_H,
                         max_seq=MAX_SEQ, hidden=HIDDEN,
                         n_classes=N_CLASSES, vocab=VOCAB)

    speechs = jax.random.normal(kg(), (B, SPEECH_H, SPEECH_W), dtype=F32)
    input_ids = jax.random.randint(kg(), (B, MAX_SEQ), 0, VOCAB, dtype=jnp.int32)
    attention_mask = jnp.ones((B, MAX_SEQ), dtype=jnp.int32)

    forward = jax.jit(functools.partial(bert_multi_forward, num_heads=HEADS))
    prob = forward(params, speechs, input_ids, attention_mask)
    prob = jax.block_until_ready(prob)

    assert prob.shape == (B, N_CLASSES), prob.shape
    assert bool(jnp.all(jnp.isfinite(prob)))
    print("KERNEL_OK")
</pallas_src>

<mosaic_0001>
module attributes {stable_mosaic.version = 11 : i64} {
  func.func @_model_kernel(%arg0: memref<16x24xf32, #tpu.memory_space<vmem>>, %arg1: memref<24x32xbf16, #tpu.memory_space<vmem>>, %arg2: memref<1x32xf32, #tpu.memory_space<vmem>>, %arg3: memref<8x1xf32, #tpu.memory_space<vmem>>, %arg4: memref<8x1xf32, #tpu.memory_space<vmem>>, %arg5: memref<32x96xbf16, #tpu.memory_space<vmem>>, %arg6: memref<1x96xf32, #tpu.memory_space<vmem>>, %arg7: memref<32x32xbf16, #tpu.memory_space<vmem>>, %arg8: memref<1x32xf32, #tpu.memory_space<vmem>>, %arg9: memref<1x32xf32, #tpu.memory_space<vmem>>, %arg10: memref<1x32xf32, #tpu.memory_space<vmem>>, %arg11: memref<32x1xi32, #tpu.memory_space<vmem>>, %arg12: memref<50x32xf32, #tpu.memory_space<vmem>>, %arg13: memref<16x32xf32, #tpu.memory_space<vmem>>, %arg14: memref<1x32xf32, #tpu.memory_space<vmem>>, %arg15: memref<1x32xf32, #tpu.memory_space<vmem>>, %arg16: memref<32x96xbf16, #tpu.memory_space<vmem>>, %arg17: memref<1x96xf32, #tpu.memory_space<vmem>>, %arg18: memref<32x32xbf16, #tpu.memory_space<vmem>>, %arg19: memref<1x32xf32, #tpu.memory_space<vmem>>, %arg20: memref<1x32xf32, #tpu.memory_space<vmem>>, %arg21: memref<1x32xf32, #tpu.memory_space<vmem>>, %arg22: memref<32x64xbf16, #tpu.memory_space<vmem>>, %arg23: memref<1x64xf32, #tpu.memory_space<vmem>>, %arg24: memref<64x32xbf16, #tpu.memory_space<vmem>>, %arg25: memref<1x32xf32, #tpu.memory_space<vmem>>, %arg26: memref<1x32xf32, #tpu.memory_space<vmem>>, %arg27: memref<1x32xf32, #tpu.memory_space<vmem>>, %arg28: memref<16x1xf32, #tpu.memory_space<vmem>>, %arg29: memref<16x1xf32, #tpu.memory_space<vmem>>, %arg30: memref<128x64xbf16, #tpu.memory_space<vmem>>, %arg31: memref<1x64xf32, #tpu.memory_space<vmem>>, %arg32: memref<64x32xbf16, #tpu.memory_space<vmem>>, %arg33: memref<1x32xf32, #tpu.memory_space<vmem>>, %arg34: memref<32x32xbf16, #tpu.memory_space<vmem>>, %arg35: memref<1x32xf32, #tpu.memory_space<vmem>>, %arg36: memref<1x32xf32, #tpu.memory_space<vmem>>, %arg37: memref<64x32xbf16, #tpu.memory_space<vmem>>, %arg38: memref<1x32xf32, #tpu.memory_space<vmem>>, %arg39: memref<32x3xbf16, #tpu.memory_space<vmem>>, %arg40: memref<1x3xf32, #tpu.memory_space<vmem>>, %arg41: memref<2x3xf32, #tpu.memory_space<vmem>>) attributes {dimension_semantics = [], scalar_prefetch = 0 : i64, scratch_operands = 0 : i64, tpu.core_type = #tpu.core_type<tc>} {
    %c0 = arith.constant 0 : index
    %c0_0 = arith.constant 0 : index
    %0 = vector.load %arg0[%c0, %c0_0] : memref<16x24xf32, #tpu.memory_space<vmem>>, vector<16x24xf32>
    %c0_1 = arith.constant 0 : index
    %c0_2 = arith.constant 0 : index
    %1 = vector.load %arg1[%c0_1, %c0_2] : memref<24x32xbf16, #tpu.memory_space<vmem>>, vector<24x32xbf16>
    %2 = arith.truncf %0 : vector<16x24xf32> to vector<16x24xbf16>
    %cst = arith.constant dense<0.000000e+00> : vector<16x32xf32>
    %3 = tpu.matmul %2, %1, %cst {dimension_numbers = #tpu.dot_dimension_numbers<[1], [0], [0], [1], [0, 0, 1, 1], [], []>} : vector<16x24xbf16>, vector<24x32xbf16>, vector<16x32xf32> -> vector<16x32xf32>
    %c0_3 = arith.constant 0 : index
    %c0_4 = arith.constant 0 : index
    %4 = vector.load %arg2[%c0_3, %c0_4] : memref<1x32xf32, #tpu.memory_space<vmem>>, vector<1x32xf32>
    %5 = vector.broadcast %4 : vector<1x32xf32> to vector<16x32xf32>
    %6 = arith.addf %3, %5 : vector<16x32xf32>
    %cst_5 = arith.constant 0.000000e+00 : f32
    %7 = vector.broadcast %cst_5 : f32 to vector<16x32xf32>
    %8 = arith.maximumf %6, %7 : vector<16x32xf32>
    %c0_6 = arith.constant 0 : index
    %c0_7 = arith.constant 0 : index
    %9 = vector.load %arg3[%c0_6, %c0_7] : memref<8x1xf32, #tpu.memory_space<vmem>>, vector<8x1xf32>
    %10 = tpu.concatenate %9, %9 in 0 : vector<8x1xf32>, vector<8x1xf32> -> vector<16x1xf32>
    %c0_8 = arith.constant 0 : index
    %c0_9 = arith.constant 0 : index
    %11 = vector.load %arg4[%c0_8, %c0_9] : memref<8x1xf32, #tpu.memory_space<vmem>>, vector<8x1xf32>
    %12 = tpu.concatenate %11, %11 in 0 : vector<8x1xf32>, vector<8x1xf32> -> vector<16x1xf32>
    %13 = vector.broadcast %10 : vector<16x1xf32> to vector<16x32xf32>
    %14 = arith.mulf %8, %13 : vector<16x32xf32>
    %15 = vector.broadcast %12 : vector<16x1xf32> to vector<16x32xf32>
    %16 = arith.addf %14, %15 : vector<16x32xf32>
    %c0_10 = arith.constant 0 : index
    %c0_11 = arith.constant 0 : index
    %17 = vector.load %arg5[%c0_10, %c0_11] : memref<32x96xbf16, #tpu.memory_space<vmem>>, vector<32x96xbf16>
    %c0_12 = arith.constant 0 : index
    %c0_13 = arith.constant 0 : index
    %18 = vector.load %arg6[%c0_12, %c0_13] : memref<1x96xf32, #tpu.memory_space<vmem>>, vector<1x96xf32>
    %c0_14 = arith.constant 0 : index
    %c0_15 = arith.constant 0 : index
    %19 = vector.load %arg7[%c0_14, %c0_15] : memref<32x32xbf16, #tpu.memory_space<vmem>>, vector<32x32xbf16>
    %c0_16 = arith.constant 0 : index
    %c0_17 = arith.constant 0 : index
    %20 = vector.load %arg8[%c0_16, %c0_17] : memref<1x32xf32, #tpu.memory_space<vmem>>, vector<1x32xf32>
    %21 = arith.truncf %16 : vector<16x32xf32> to vector<16x32xbf16>
    %cst_18 = arith.constant dense<0.000000e+00> : vector<16x96xf32>
    %22 = tpu.matmul %21, %17, %cst_18 {dimension_numbers = #tpu.dot_dimension_numbers<[1], [0], [0], [1], [0, 0, 1, 1], [], []>} : vector<16x32xbf16>, vector<32x96xbf16>, vector<16x96xf32> -> vector<16x96xf32>
    %23 = vector.broadcast %18 : vector<1x96xf32> to vector<16x96xf32>
    %24 = arith.addf %22, %23 : vector<16x96xf32>
    %25 = vector.extract_strided_slice %24 {offsets = [0, 0], sizes = [8, 32], strides = [1, 1]} : vector<16x96xf32> to vector<8x32xf32>
    %cst_19 = arith.constant 0.353553385 : f32
    %26 = vector.broadcast %cst_19 : f32 to vector<8x32xf32>
    %27 = arith.mulf %25, %26 : vector<8x32xf32>
    %28 = vector.extract_strided_slice %24 {offsets = [0, 32], sizes = [8, 32], strides = [1, 1]} : vector<16x96xf32> to vector<8x32xf32>
    %29 = vector.extract_strided_slice %24 {offsets = [0, 64], sizes = [8, 32], strides = [1, 1]} : vector<16x96xf32> to vector<8x32xf32>
    %30 = vector.extract_strided_slice %27 {offsets = [0, 0], sizes = [8, 8], strides = [1, 1]} : vector<8x32xf32> to vector<8x8xf32>
    %31 = vector.extract_strided_slice %28 {offsets = [0, 0], sizes = [8, 8], strides = [1, 1]} : vector<8x32xf32> to vector<8x8xf32>
    %32 = arith.truncf %30 : vector<8x8xf32> to vector<8x8xbf16>
    %33 = arith.truncf %31 : vector<8x8xf32> to vector<8x8xbf16>
    %cst_20 = arith.constant dense<0.000000e+00> : vector<8x8xf32>
    %34 = tpu.matmul %32, %33, %cst_20 {dimension_numbers = #tpu.dot_dimension_numbers<[1], [1], [0], [0], [0, 0, 1, 0], [], []>} : vector<8x8xbf16>, vector<8x8xbf16>, vector<8x8xf32> -> vector<8x8xf32>
    %cst_21 = arith.constant dense<0xFF800000> : vector<8xf32>
    %35 = vector.multi_reduction <maximumf>, %34, %cst_21 [1] : vector<8x8xf32> to vector<8xf32>
    %36 = vector.shape_cast %35 : vector<8xf32> to vector<8x1xf32>
    %37 = vector.broadcast %36 : vector<8x1xf32> to vector<8x8xf32>
    %38 = arith.subf %34, %37 : vector<8x8xf32>
    %39 = math.exp %38 : vector<8x8xf32>
    %cst_22 = arith.constant dense<0.000000e+00> : vector<8xf32>
    %40 = vector.multi_reduction <add>, %39, %cst_22 [1] : vector<8x8xf32> to vector<8xf32>
    %41 = vector.shape_cast %40 : vector<8xf32> to vector<8x1xf32>
    %42 = vector.broadcast %41 : vector<8x1xf32> to vector<8x8xf32>
    %43 = arith.divf %39, %42 : vector<8x8xf32>
    %44 = vector.extract_strided_slice %29 {offsets = [0, 0], sizes = [8, 8], strides = [1, 1]} : vector<8x32xf32> to vector<8x8xf32>
    %45 = arith.truncf %43 : vector<8x8xf32> to vector<8x8xbf16>
    %46 = arith.truncf %44 : vector<8x8xf32> to vector<8x8xbf16>
    %cst_23 = arith.constant dense<0.000000e+00> : vector<8x8xf32>
    %47 = tpu.matmul %45, %46, %cst_23 {dimension_numbers = #tpu.dot_dimension_numbers<[1], [0], [0], [1], [0, 0, 1, 1], [], []>} : vector<8x8xbf16>, vector<8x8xbf16>, vector<8x8xf32> -> vector<8x8xf32>
    %48 = vector.extract_strided_slice %27 {offsets = [0, 8], sizes = [8, 8], strides = [1, 1]} : vector<8x32xf32> to vector<8x8xf32>
    %49 = vector.extract_strided_slice %28 {offsets = [0, 8], sizes = [8, 8], strides = [1, 1]} : vector<8x32xf32> to vector<8x8xf32>
    %50 = arith.truncf %48 : vector<8x8xf32> to vector<8x8xbf16>
    %51 = arith.truncf %49 : vector<8x8xf32> to vector<8x8xbf16>
    %cst_24 = arith.constant dense<0.000000e+00> : vector<8x8xf32>
    %52 = tpu.matmul %50, %51, %cst_24 {dimension_numbers = #tpu.dot_dimension_numbers<[1], [1], [0], [0], [0, 0, 1, 0], [], []>} : vector<8x8xbf16>, vector<8x8xbf16>, vector<8x8xf32> -> vector<8x8xf32>
    %cst_25 = arith.constant dense<0xFF800000> : vector<8xf32>
    %53 = vector.multi_reduction <maximumf>, %52, %cst_25 [1] : vector<8x8xf32> to vector<8xf32>
    %54 = vector.shape_cast %53 : vector<8xf32> to vector<8x1xf32>
    %55 = vector.broadcast %54 : vector<8x1xf32> to vector<8x8xf32>
    %56 = arith.subf %52, %55 : vector<8x8xf32>
    %57 = math.exp %56 : vector<8x8xf32>
    %cst_26 = arith.constant dense<0.000000e+00> : vector<8xf32>
    %58 = vector.multi_reduction <add>, %57, %cst_26 [1] : vector<8x8xf32> to vector<8xf32>
    %59 = vector.shape_cast %58 : vector<8xf32> to vector<8x1xf32>
    %60 = vector.broadcast %59 : vector<8x1xf32> to vector<8x8xf32>
    %61 = arith.divf %57, %60 : vector<8x8xf32>
    %62 = vector.extract_strided_slice %29 {offsets = [0, 8], sizes = [8, 8], strides = [1, 1]} : vector<8x32xf32> to vector<8x8xf32>
    %63 = arith.truncf %61 : vector<8x8xf32> to vector<8x8xbf16>
    %64 = arith.truncf %62 : vector<8x8xf32> to vector<8x8xbf16>
    %cst_27 = arith.constant dense<0.000000e+00> : vector<8x8xf32>
    %65 = tpu.matmul %63, %64, %cst_27 {dimension_numbers = #tpu.dot_dimension_numbers<[1], [0], [0], [1], [0, 0, 1, 1], [], []>} : vector<8x8xbf16>, vector<8x8xbf16>, vector<8x8xf32> -> vector<8x8xf32>
    %66 = vector.extract_strided_slice %27 {offsets = [0, 16], sizes = [8, 8], strides = [1, 1]} : vector<8x32xf32> to vector<8x8xf32>
    %67 = vector.extract_strided_slice %28 {offsets = [0, 16], sizes = [8, 8], strides = [1, 1]} : vector<8x32xf32> to vector<8x8xf32>
    %68 = arith.truncf %66 : vector<8x8xf32> to vector<8x8xbf16>
    %69 = arith.truncf %67 : vector<8x8xf32> to vector<8x8xbf16>
    %cst_28 = arith.constant dense<0.000000e+00> : vector<8x8xf32>
    %70 = tpu.matmul %68, %69, %cst_28 {dimension_numbers = #tpu.dot_dimension_numbers<[1], [1], [0], [0], [0, 0, 1, 0], [], []>} : vector<8x8xbf16>, vector<8x8xbf16>, vector<8x8xf32> -> vector<8x8xf32>
    %cst_29 = arith.constant dense<0xFF800000> : vector<8xf32>
    %71 = vector.multi_reduction <maximumf>, %70, %cst_29 [1] : vector<8x8xf32> to vector<8xf32>
    %72 = vector.shape_cast %71 : vector<8xf32> to vector<8x1xf32>
    %73 = vector.broadcast %72 : vector<8x1xf32> to vector<8x8xf32>
    %74 = arith.subf %70, %73 : vector<8x8xf32>
    %75 = math.exp %74 : vector<8x8xf32>
    %cst_30 = arith.constant dense<0.000000e+00> : vector<8xf32>
    %76 = vector.multi_reduction <add>, %75, %cst_30 [1] : vector<8x8xf32> to vector<8xf32>
    %77 = vector.shape_cast %76 : vector<8xf32> to vector<8x1xf32>
    %78 = vector.broadcast %77 : vector<8x1xf32> to vector<8x8xf32>
    %79 = arith.divf %75, %78 : vector<8x8xf32>
    %80 = vector.extract_strided_slice %29 {offsets = [0, 16], sizes = [8, 8], strides = [1, 1]} : vector<8x32xf32> to vector<8x8xf32>
    %81 = arith.truncf %79 : vector<8x8xf32> to vector<8x8xbf16>
    %82 = arith.truncf %80 : vector<8x8xf32> to vector<8x8xbf16>
    %cst_31 = arith.constant dense<0.000000e+00> : vector<8x8xf32>
    %83 = tpu.matmul %81, %82, %cst_31 {dimension_numbers = #tpu.dot_dimension_numbers<[1], [0], [0], [1], [0, 0, 1, 1], [], []>} : vector<8x8xbf16>, vector<8x8xbf16>, vector<8x8xf32> -> vector<8x8xf32>
    %84 = vector.extract_strided_slice %27 {offsets = [0, 24], sizes = [8, 8], strides = [1, 1]} : vector<8x32xf32> to vector<8x8xf32>
    %85 = vector.extract_strided_slice %28 {offsets = [0, 24], sizes = [8, 8], strides = [1, 1]} : vector<8x32xf32> to vector<8x8xf32>
    %86 = arith.truncf %84 : vector<8x8xf32> to vector<8x8xbf16>
    %87 = arith.truncf %85 : vector<8x8xf32> to vector<8x8xbf16>
    %cst_32 = arith.constant dense<0.000000e+00> : vector<8x8xf32>
    %88 = tpu.matmul %86, %87, %cst_32 {dimension_numbers = #tpu.dot_dimension_numbers<[1], [1], [0], [0], [0, 0, 1, 0], [], []>} : vector<8x8xbf16>, vector<8x8xbf16>, vector<8x8xf32> -> vector<8x8xf32>
    %cst_33 = arith.constant dense<0xFF800000> : vector<8xf32>
    %89 = vector.multi_reduction <maximumf>, %88, %cst_33 [1] : vector<8x8xf32> to vector<8xf32>
    %90 = vector.shape_cast %89 : vector<8xf32> to vector<8x1xf32>
    %91 = vector.broadcast %90 : vector<8x1xf32> to vector<8x8xf32>
    %92 = arith.subf %88, %91 : vector<8x8xf32>
    %93 = math.exp %92 : vector<8x8xf32>
    %cst_34 = arith.constant dense<0.000000e+00> : vector<8xf32>
    %94 = vector.multi_reduction <add>, %93, %cst_34 [1] : vector<8x8xf32> to vector<8xf32>
    %95 = vector.shape_cast %94 : vector<8xf32> to vector<8x1xf32>
    %96 = vector.broadcast %95 : vector<8x1xf32> to vector<8x8xf32>
    %97 = arith.divf %93, %96 : vector<8x8xf32>
    %98 = vector.extract_strided_slice %29 {offsets = [0, 24], sizes = [8, 8], strides = [1, 1]} : vector<8x32xf32> to vector<8x8xf32>
    %99 = arith.truncf %97 : vector<8x8xf32> to vector<8x8xbf16>
    %100 = arith.truncf %98 : vector<8x8xf32> to vector<8x8xbf16>
    %cst_35 = arith.constant dense<0.000000e+00> : vector<8x8xf32>
    %101 = tpu.matmul %99, %100, %cst_35 {dimension_numbers = #tpu.dot_dimension_numbers<[1], [0], [0], [1], [0, 0, 1, 1], [], []>} : vector<8x8xbf16>, vector<8x8xbf16>, vector<8x8xf32> -> vector<8x8xf32>
    %102 = tpu.concatenate %47, %65, %83, %101 in 1 : vector<8x8xf32>, vector<8x8xf32>, vector<8x8xf32>, vector<8x8xf32> -> vector<8x32xf32>
    %103 = vector.extract_strided_slice %24 {offsets = [8, 0], sizes = [8, 32], strides = [1, 1]} : vector<16x96xf32> to vector<8x32xf32>
    %cst_36 = arith.constant 0.353553385 : f32
    %104 = vector.broadcast %cst_36 : f32 to vector<8x32xf32>
    %105 = arith.mulf %103, %104 : vector<8x32xf32>
    %106 = vector.extract_strided_slice %24 {offsets = [8, 32], sizes = [8, 32], strides = [1, 1]} : vector<16x96xf32> to vector<8x32xf32>
    %107 = vector.extract_strided_slice %24 {offsets = [8, 64], sizes = [8, 32], strides = [1, 1]} : vector<16x96xf32> to vector<8x32xf32>
    %108 = vector.extract_strided_slice %105 {offsets = [0, 0], sizes = [8, 8], strides = [1, 1]} : vector<8x32xf32> to vector<8x8xf32>
    %109 = vector.extract_strided_slice %106 {offsets = [0, 0], sizes = [8, 8], strides = [1, 1]} : vector<8x32xf32> to vector<8x8xf32>
    %110 = arith.truncf %108 : vector<8x8xf32> to vector<8x8xbf16>
    %111 = arith.truncf %109 : vector<8x8xf32> to vector<8x8xbf16>
    %cst_37 = arith.constant dense<0.000000e+00> : vector<8x8xf32>
    %112 = tpu.matmul %110, %111, %cst_37 {dimension_numbers = #tpu.dot_dimension_numbers<[1], [1], [0], [0], [0, 0, 1, 0], [], []>} : vector<8x8xbf16>, vector<8x8xbf16>, vector<8x8xf32> -> vector<8x8xf32>
    %cst_38 = arith.constant dense<0xFF800000> : vector<8xf32>
    %113 = vector.multi_reduction <maximumf>, %112, %cst_38 [1] : vector<8x8xf32> to vector<8xf32>
    %114 = vector.shape_cast %113 : vector<8xf32> to vector<8x1xf32>
    %115 = vector.broadcast %114 : vector<8x1xf32> to vector<8x8xf32>
    %116 = arith.subf %112, %115 : vector<8x8xf32>
    %117 = math.exp %116 : vector<8x8xf32>
    %cst_39 = arith.constant dense<0.000000e+00> : vector<8xf32>
    %118 = vector.multi_reduction <add>, %117, %cst_39 [1] : vector<8x8xf32> to vector<8xf32>
    %119 = vector.shape_cast %118 : vector<8xf32> to vector<8x1xf32>
    %120 = vector.broadcast %119 : vector<8x1xf32> to vector<8x8xf32>
    %121 = arith.divf %117, %120 : vector<8x8xf32>
    %122 = vector.extract_strided_slice %107 {offsets = [0, 0], sizes = [8, 8], strides = [1, 1]} : vector<8x32xf32> to vector<8x8xf32>
    %123 = arith.truncf %121 : vector<8x8xf32> to vector<8x8xbf16>
    %124 = arith.truncf %122 : vector<8x8xf32> to vector<8x8xbf16>
    %cst_40 = arith.constant dense<0.000000e+00> : vector<8x8xf32>
    %125 = tpu.matmul %123, %124, %cst_40 {dimension_numbers = #tpu.dot_dimension_numbers<[1], [0], [0], [1], [0, 0, 1, 1], [], []>} : vector<8x8xbf16>, vector<8x8xbf16>, vector<8x8xf32> -> vector<8x8xf32>
    %126 = vector.extract_strided_slice %105 {offsets = [0, 8], sizes = [8, 8], strides = [1, 1]} : vector<8x32xf32> to vector<8x8xf32>
    %127 = vector.extract_strided_slice %106 {offsets = [0, 8], sizes = [8, 8], strides = [1, 1]} : vector<8x32xf32> to vector<8x8xf32>
    %128 = arith.truncf %126 : vector<8x8xf32> to vector<8x8xbf16>
    %129 = arith.truncf %127 : vector<8x8xf32> to vector<8x8xbf16>
    %cst_41 = arith.constant dense<0.000000e+00> : vector<8x8xf32>
    %130 = tpu.matmul %128, %129, %cst_41 {dimension_numbers = #tpu.dot_dimension_numbers<[1], [1], [0], [0], [0, 0, 1, 0], [], []>} : vector<8x8xbf16>, vector<8x8xbf16>, vector<8x8xf32> -> vector<8x8xf32>
    %cst_42 = arith.constant dense<0xFF800000> : vector<8xf32>
    %131 = vector.multi_reduction <maximumf>, %130, %cst_42 [1] : vector<8x8xf32> to vector<8xf32>
    %132 = vector.shape_cast %131 : vector<8xf32> to vector<8x1xf32>
    %133 = vector.broadcast %132 : vector<8x1xf32> to vector<8x8xf32>
    %134 = arith.subf %130, %133 : vector<8x8xf32>
    %135 = math.exp %134 : vector<8x8xf32>
    %cst_43 = arith.constant dense<0.000000e+00> : vector<8xf32>
    %136 = vector.multi_reduction <add>, %135, %cst_43 [1] : vector<8x8xf32> to vector<8xf32>
    %137 = vector.shape_cast %136 : vector<8xf32> to vector<8x1xf32>
    %138 = vector.broadcast %137 : vector<8x1xf32> to vector<8x8xf32>
    %139 = arith.divf %135, %138 : vector<8x8xf32>
    %140 = vector.extract_strided_slice %107 {offsets = [0, 8], sizes = [8, 8], strides = [1, 1]} : vector<8x32xf32> to vector<8x8xf32>
    %141 = arith.truncf %139 : vector<8x8xf32> to vector<8x8xbf16>
    %142 = arith.truncf %140 : vector<8x8xf32> to vector<8x8xbf16>
    %cst_44 = arith.constant dense<0.000000e+00> : vector<8x8xf32>
    %143 = tpu.matmul %141, %142, %cst_44 {dimension_numbers = #tpu.dot_dimension_numbers<[1], [0], [0], [1], [0, 0, 1, 1], [], []>} : vector<8x8xbf16>, vector<8x8xbf16>, vector<8x8xf32> -> vector<8x8xf32>
    %144 = vector.extract_strided_slice %105 {offsets = [0, 16], sizes = [8, 8], strides = [1, 1]} : vector<8x32xf32> to vector<8x8xf32>
    %145 = vector.extract_strided_slice %106 {offsets = [0, 16], sizes = [8, 8], strides = [1, 1]} : vector<8x32xf32> to vector<8x8xf32>
    %146 = arith.truncf %144 : vector<8x8xf32> to vector<8x8xbf16>
    %147 = arith.truncf %145 : vector<8x8xf32> to vector<8x8xbf16>
    %cst_45 = arith.constant dense<0.000000e+00> : vector<8x8xf32>
    %148 = tpu.matmul %146, %147, %cst_45 {dimension_numbers = #tpu.dot_dimension_numbers<[1], [1], [0], [0], [0, 0, 1, 0], [], []>} : vector<8x8xbf16>, vector<8x8xbf16>, vector<8x8xf32> -> vector<8x8xf32>
    %cst_46 = arith.constant dense<0xFF800000> : vector<8xf32>
    %149 = vector.multi_reduction <maximumf>, %148, %cst_46 [1] : vector<8x8xf32> to vector<8xf32>
    %150 = vector.shape_cast %149 : vector<8xf32> to vector<8x1xf32>
    %151 = vector.broadcast %150 : vector<8x1xf32> to vector<8x8xf32>
    %152 = arith.subf %148, %151 : vector<8x8xf32>
    %153 = math.exp %152 : vector<8x8xf32>
    %cst_47 = arith.constant dense<0.000000e+00> : vector<8xf32>
    %154 = vector.multi_reduction <add>, %153, %cst_47 [1] : vector<8x8xf32> to vector<8xf32>
    %155 = vector.shape_cast %154 : vector<8xf32> to vector<8x1xf32>
    %156 = vector.broadcast %155 : vector<8x1xf32> to vector<8x8xf32>
    %157 = arith.divf %153, %156 : vector<8x8xf32>
    %158 = vector.extract_strided_slice %107 {offsets = [0, 16], sizes = [8, 8], strides = [1, 1]} : vector<8x32xf32> to vector<8x8xf32>
    %159 = arith.truncf %157 : vector<8x8xf32> to vector<8x8xbf16>
    %160 = arith.truncf %158 : vector<8x8xf32> to vector<8x8xbf16>
    %cst_48 = arith.constant dense<0.000000e+00> : vector<8x8xf32>
    %161 = tpu.matmul %159, %160, %cst_48 {dimension_numbers = #tpu.dot_dimension_numbers<[1], [0], [0], [1], [0, 0, 1, 1], [], []>} : vector<8x8xbf16>, vector<8x8xbf16>, vector<8x8xf32> -> vector<8x8xf32>
    %162 = vector.extract_strided_slice %105 {offsets = [0, 24], sizes = [8, 8], strides = [1, 1]} : vector<8x32xf32> to vector<8x8xf32>
    %163 = vector.extract_strided_slice %106 {offsets = [0, 24], sizes = [8, 8], strides = [1, 1]} : vector<8x32xf32> to vector<8x8xf32>
    %164 = arith.truncf %162 : vector<8x8xf32> to vector<8x8xbf16>
    %165 = arith.truncf %163 : vector<8x8xf32> to vector<8x8xbf16>
    %cst_49 = arith.constant dense<0.000000e+00> : vector<8x8xf32>
    %166 = tpu.matmul %164, %165, %cst_49 {dimension_numbers = #tpu.dot_dimension_numbers<[1], [1], [0], [0], [0, 0, 1, 0], [], []>} : vector<8x8xbf16>, vector<8x8xbf16>, vector<8x8xf32> -> vector<8x8xf32>
    %cst_50 = arith.constant dense<0xFF800000> : vector<8xf32>
    %167 = vector.multi_reduction <maximumf>, %166, %cst_50 [1] : vector<8x8xf32> to vector<8xf32>
    %168 = vector.shape_cast %167 : vector<8xf32> to vector<8x1xf32>
    %169 = vector.broadcast %168 : vector<8x1xf32> to vector<8x8xf32>
    %170 = arith.subf %166, %169 : vector<8x8xf32>
    %171 = math.exp %170 : vector<8x8xf32>
    %cst_51 = arith.constant dense<0.000000e+00> : vector<8xf32>
    %172 = vector.multi_reduction <add>, %171, %cst_51 [1] : vector<8x8xf32> to vector<8xf32>
    %173 = vector.shape_cast %172 : vector<8xf32> to vector<8x1xf32>
    %174 = vector.broadcast %173 : vector<8x1xf32> to vector<8x8xf32>
    %175 = arith.divf %171, %174 : vector<8x8xf32>
    %176 = vector.extract_strided_slice %107 {offsets = [0, 24], sizes = [8, 8], strides = [1, 1]} : vector<8x32xf32> to vector<8x8xf32>
    %177 = arith.truncf %175 : vector<8x8xf32> to vector<8x8xbf16>
    %178 = arith.truncf %176 : vector<8x8xf32> to vector<8x8xbf16>
    %cst_52 = arith.constant dense<0.000000e+00> : vector<8x8xf32>
    %179 = tpu.matmul %177, %178, %cst_52 {dimension_numbers = #tpu.dot_dimension_numbers<[1], [0], [0], [1], [0, 0, 1, 1], [], []>} : vector<8x8xbf16>, vector<8x8xbf16>, vector<8x8xf32> -> vector<8x8xf32>
    %180 = tpu.concatenate %125, %143, %161, %179 in 1 : vector<8x8xf32>, vector<8x8xf32>, vector<8x8xf32>, vector<8x8xf32> -> vector<8x32xf32>
    %181 = tpu.concatenate %102, %180 in 0 : vector<8x32xf32>, vector<8x32xf32> -> vector<16x32xf32>
    %182 = arith.truncf %181 : vector<16x32xf32> to vector<16x32xbf16>
    %cst_53 = arith.constant dense<0.000000e+00> : vector<16x32xf32>
    %183 = tpu.matmul %182, %19, %cst_53 {dimension_numbers = #tpu.dot_dimension_numbers<[1], [0], [0], [1], [0, 0, 1, 1], [], []>} : vector<16x32xbf16>, vector<32x32xbf16>, vector<16x32xf32> -> vector<16x32xf32>
    %184 = vector.broadcast %20 : vector<1x32xf32> to vector<16x32xf32>
    %185 = arith.addf %183, %184 : vector<16x32xf32>
    %186 = arith.addf %16, %185 : vector<16x32xf32>
    %c0_54 = arith.constant 0 : index
    %c0_55 = arith.constant 0 : index
    %187 = vector.load %arg9[%c0_54, %c0_55] : memref<1x32xf32, #tpu.memory_space<vmem>>, vector<1x32xf32>
    %c0_56 = arith.constant 0 : index
    %c0_57 = arith.constant 0 : index
    %188 = vector.load %arg10[%c0_56, %c0_57] : memref<1x32xf32, #tpu.memory_space<vmem>>, vector<1x32xf32>
    %cst_58 = arith.constant dense<0.000000e+00> : vector<16xf32>
    %189 = vector.multi_reduction <add>, %186, %cst_58 [1] : vector<16x32xf32> to vector<16xf32>
    %190 = vector.shape_cast %189 : vector<16xf32> to vector<16x1xf32>
    %cst_59 = arith.constant 3.200000e+01 : f32
    %191 = vector.broadcast %cst_59 : f32 to vector<16x1xf32>
    %192 = arith.divf %190, %191 : vector<16x1xf32>
    %193 = vector.broadcast %192 : vector<16x1xf32> to vector<16x32xf32>
    %194 = arith.subf %186, %193 : vector<16x32xf32>
    %195 = arith.mulf %194, %194 : vector<16x32xf32>
    %cst_60 = arith.constant dense<0.000000e+00> : vector<16xf32>
    %196 = vector.multi_reduction <add>, %195, %cst_60 [1] : vector<16x32xf32> to vector<16xf32>
    %197 = vector.shape_cast %196 : vector<16xf32> to vector<16x1xf32>
    %cst_61 = arith.constant 3.200000e+01 : f32
    %198 = vector.broadcast %cst_61 : f32 to vector<16x1xf32>
    %199 = arith.divf %197, %198 : vector<16x1xf32>
    %200 = vector.broadcast %192 : vector<16x1xf32> to vector<16x32xf32>
    %201 = arith.subf %186, %200 : vector<16x32xf32>
    %cst_62 = arith.constant 9.99999974E-6 : f32
    %202 = vector.broadcast %cst_62 : f32 to vector<16x1xf32>
    %203 = arith.addf %199, %202 : vector<16x1xf32>
    %204 = math.rsqrt %203 : vector<16x1xf32>
    %205 = vector.broadcast %204 : vector<16x1xf32> to vector<16x32xf32>
    %206 = arith.mulf %201, %205 : vector<16x32xf32>
    %207 = vector.broadcast %187 : vector<1x32xf32> to vector<16x32xf32>
    %208 = arith.mulf %206, %207 : vector<16x32xf32>
    %209 = vector.broadcast %188 : vector<1x32xf32> to vector<16x32xf32>
    %210 = arith.addf %208, %209 : vector<16x32xf32>
    %c0_63 = arith.constant 0 : index
    %c0_64 = arith.constant 0 : index
    %211 = vector.load %arg11[%c0_63, %c0_64] : memref<32x1xi32, #tpu.memory_space<vmem>>, vector<32x1xi32>
    %212 = vector.shape_cast %211 : vector<32x1xi32> to vector<32x1xi32>
    %213 = vector.broadcast %212 : vector<32x1xi32> to vector<32x50xi32>
    %214 = tpu.iota {dimensions = array<i32: 1>} : vector<32x50xi32>
    %215 = arith.cmpi eq, %213, %214 : vector<32x50xi32>
    %cst_65 = arith.constant 1.000000e+00 : f32
    %cst_66 = arith.constant 0.000000e+00 : f32
    %216 = vector.broadcast %cst_65 : f32 to vector<32x50xf32>
    %217 = vector.broadcast %cst_66 : f32 to vector<32x50xf32>
    %218 = arith.select %215, %216, %217 : vector<32x50xi1>, vector<32x50xf32>
    %c0_67 = arith.constant 0 : index
    %c0_68 = arith.constant 0 : index
    %219 = vector.load %arg12[%c0_67, %c0_68] : memref<50x32xf32, #tpu.memory_space<vmem>>, vector<50x32xf32>
    %cst_69 = arith.constant dense<0.000000e+00> : vector<32x32xf32>
    %220 = tpu.matmul %218, %219, %cst_69 {dimension_numbers = #tpu.dot_dimension_numbers<[1], [0], [0], [1], [0, 0, 1, 1], [], []>} : vector<32x50xf32>, vector<50x32xf32>, vector<32x32xf32> -> vector<32x32xf32>
    %c0_70 = arith.constant 0 : index
    %c0_71 = arith.constant 0 : index
    %221 = vector.load %arg13[%c0_70, %c0_71] : memref<16x32xf32, #tpu.memory_space<vmem>>, vector<16x32xf32>
    %222 = tpu.concatenate %221, %221 in 0 : vector<16x32xf32>, vector<16x32xf32> -> vector<32x32xf32>
    %223 = arith.addf %220, %222 : vector<32x32xf32>
    %c0_72 = arith.constant 0 : index
    %c0_73 = arith.constant 0 : index
    %224 = vector.load %arg14[%c0_72, %c0_73] : memref<1x32xf32, #tpu.memory_space<vmem>>, vector<1x32xf32>
    %c0_74 = arith.constant 0 : index
    %c0_75 = arith.constant 0 : index
    %225 = vector.load %arg15[%c0_74, %c0_75] : memref<1x32xf32, #tpu.memory_space<vmem>>, vector<1x32xf32>
    %cst_76 = arith.constant dense<0.000000e+00> : vector<32xf32>
    %226 = vector.multi_reduction <add>, %223, %cst_76 [1] : vector<32x32xf32> to vector<32xf32>
    %227 = vector.shape_cast %226 : vector<32xf32> to vector<32x1xf32>
    %cst_77 = arith.constant 3.200000e+01 : f32
    %228 = vector.broadcast %cst_77 : f32 to vector<32x1xf32>
    %229 = arith.divf %227, %228 : vector<32x1xf32>
    %230 = vector.broadcast %229 : vector<32x1xf32> to vector<32x32xf32>
    %231 = arith.subf %223, %230 : vector<32x32xf32>
    %232 = arith.mulf %231, %231 : vector<32x32xf32>
    %cst_78 = arith.constant dense<0.000000e+00> : vector<32xf32>
    %233 = vector.multi_reduction <add>, %232, %cst_78 [1] : vector<32x32xf32> to vector<32xf32>
    %234 = vector.shape_cast %233 : vector<32xf32> to vector<32x1xf32>
    %cst_79 = arith.constant 3.200000e+01 : f32
    %235 = vector.broadcast %cst_79 : f32 to vector<32x1xf32>
    %236 = arith.divf %234, %235 : vector<32x1xf32>
    %237 = vector.broadcast %229 : vector<32x1xf32> to vector<32x32xf32>
    %238 = arith.subf %223, %237 : vector<32x32xf32>
    %cst_80 = arith.constant 9.99999974E-6 : f32
    %239 = vector.broadcast %cst_80 : f32 to vector<32x1xf32>
    %240 = arith.addf %236, %239 : vector<32x1xf32>
    %241 = math.rsqrt %240 : vector<32x1xf32>
    %242 = vector.broadcast %241 : vector<32x1xf32> to vector<32x32xf32>
    %243 = arith.mulf %238, %242 : vector<32x32xf32>
    %244 = vector.broadcast %224 : vector<1x32xf32> to vector<32x32xf32>
    %245 = arith.mulf %243, %244 : vector<32x32xf32>
    %246 = vector.broadcast %225 : vector<1x32xf32> to vector<32x32xf32>
    %247 = arith.addf %245, %246 : vector<32x32xf32>
    %c0_81 = arith.constant 0 : index
    %c0_82 = arith.constant 0 : index
    %248 = vector.load %arg16[%c0_81, %c0_82] : memref<32x96xbf16, #tpu.memory_space<vmem>>, vector<32x96xbf16>
    %c0_83 = arith.constant 0 : index
    %c0_84 = arith.constant 0 : index
    %249 = vector.load %arg17[%c0_83, %c0_84] : memref<1x96xf32, #tpu.memory_space<vmem>>, vector<1x96xf32>
    %c0_85 = arith.constant 0 : index
    %c0_86 = arith.constant 0 : index
    %250 = vector.load %arg18[%c0_85, %c0_86] : memref<32x32xbf16, #tpu.memory_space<vmem>>, vector<32x32xbf16>
    %c0_87 = arith.constant 0 : index
    %c0_88 = arith.constant 0 : index
    %251 = vector.load %arg19[%c0_87, %c0_88] : memref<1x32xf32, #tpu.memory_space<vmem>>, vector<1x32xf32>
    %252 = arith.truncf %247 : vector<32x32xf32> to vector<32x32xbf16>
    %cst_89 = arith.constant dense<0.000000e+00> : vector<32x96xf32>
    %253 = tpu.matmul %252, %248, %cst_89 {dimension_numbers = #tpu.dot_dimension_numbers<[1], [0], [0], [1], [0, 0, 1, 1], [], []>} : vector<32x32xbf16>, vector<32x96xbf16>, vector<32x96xf32> -> vector<32x96xf32>
    %254 = vector.broadcast %249 : vector<1x96xf32> to vector<32x96xf32>
    %255 = arith.addf %253, %254 : vector<32x96xf32>
    %256 = vector.extract_strided_slice %255 {offsets = [0, 0], sizes = [16, 32], strides = [1, 1]} : vector<32x96xf32> to vector<16x32xf32>
    %cst_90 = arith.constant 0.353553385 : f32
    %257 = vector.broadcast %cst_90 : f32 to vector<16x32xf32>
    %258 = arith.mulf %256, %257 : vector<16x32xf32>
    %259 = vector.extract_strided_slice %255 {offsets = [0, 32], sizes = [16, 32], strides = [1, 1]} : vector<32x96xf32> to vector<16x32xf32>
    %260 = vector.extract_strided_slice %255 {offsets = [0, 64], sizes = [16, 32], strides = [1, 1]} : vector<32x96xf32> to vector<16x32xf32>
    %261 = vector.extract_strided_slice %258 {offsets = [0, 0], sizes = [16, 8], strides = [1, 1]} : vector<16x32xf32> to vector<16x8xf32>
    %262 = vector.extract_strided_slice %259 {offsets = [0, 0], sizes = [16, 8], strides = [1, 1]} : vector<16x32xf32> to vector<16x8xf32>
    %263 = arith.truncf %261 : vector<16x8xf32> to vector<16x8xbf16>
    %264 = arith.truncf %262 : vector<16x8xf32> to vector<16x8xbf16>
    %cst_91 = arith.constant dense<0.000000e+00> : vector<16x16xf32>
    %265 = tpu.matmul %263, %264, %cst_91 {dimension_numbers = #tpu.dot_dimension_numbers<[1], [1], [0], [0], [0, 0, 1, 0], [], []>} : vector<16x8xbf16>, vector<16x8xbf16>, vector<16x16xf32> -> vector<16x16xf32>
    %cst_92 = arith.constant dense<0xFF800000> : vector<16xf32>
    %266 = vector.multi_reduction <maximumf>, %265, %cst_92 [1] : vector<16x16xf32> to vector<16xf32>
    %267 = vector.shape_cast %266 : vector<16xf32> to vector<16x1xf32>
    %268 = vector.broadcast %267 : vector<16x1xf32> to vector<16x16xf32>
    %269 = arith.subf %265, %268 : vector<16x16xf32>
    %270 = math.exp %269 : vector<16x16xf32>
    %cst_93 = arith.constant dense<0.000000e+00> : vector<16xf32>
    %271 = vector.multi_reduction <add>, %270, %cst_93 [1] : vector<16x16xf32> to vector<16xf32>
    %272 = vector.shape_cast %271 : vector<16xf32> to vector<16x1xf32>
    %273 = vector.broadcast %272 : vector<16x1xf32> to vector<16x16xf32>
    %274 = arith.divf %270, %273 : vector<16x16xf32>
    %275 = vector.extract_strided_slice %260 {offsets = [0, 0], sizes = [16, 8], strides = [1, 1]} : vector<16x32xf32> to vector<16x8xf32>
    %276 = arith.truncf %274 : vector<16x16xf32> to vector<16x16xbf16>
    %277 = arith.truncf %275 : vector<16x8xf32> to vector<16x8xbf16>
    %cst_94 = arith.constant dense<0.000000e+00> : vector<16x8xf32>
    %278 = tpu.matmul %276, %277, %cst_94 {dimension_numbers = #tpu.dot_dimension_numbers<[1], [0], [0], [1], [0, 0, 1, 1], [], []>} : vector<16x16xbf16>, vector<16x8xbf16>, vector<16x8xf32> -> vector<16x8xf32>
    %279 = vector.extract_strided_slice %258 {offsets = [0, 8], sizes = [16, 8], strides = [1, 1]} : vector<16x32xf32> to vector<16x8xf32>
    %280 = vector.extract_strided_slice %259 {offsets = [0, 8], sizes = [16, 8], strides = [1, 1]} : vector<16x32xf32> to vector<16x8xf32>
    %281 = arith.truncf %279 : vector<16x8xf32> to vector<16x8xbf16>
    %282 = arith.truncf %280 : vector<16x8xf32> to vector<16x8xbf16>
    %cst_95 = arith.constant dense<0.000000e+00> : vector<16x16xf32>
    %283 = tpu.matmul %281, %282, %cst_95 {dimension_numbers = #tpu.dot_dimension_numbers<[1], [1], [0], [0], [0, 0, 1, 0], [], []>} : vector<16x8xbf16>, vector<16x8xbf16>, vector<16x16xf32> -> vector<16x16xf32>
    %cst_96 = arith.constant dense<0xFF800000> : vector<16xf32>
    %284 = vector.multi_reduction <maximumf>, %283, %cst_96 [1] : vector<16x16xf32> to vector<16xf32>
    %285 = vector.shape_cast %284 : vector<16xf32> to vector<16x1xf32>
    %286 = vector.broadcast %285 : vector<16x1xf32> to vector<16x16xf32>
    %287 = arith.subf %283, %286 : vector<16x16xf32>
    %288 = math.exp %287 : vector<16x16xf32>
    %cst_97 = arith.constant dense<0.000000e+00> : vector<16xf32>
    %289 = vector.multi_reduction <add>, %288, %cst_97 [1] : vector<16x16xf32> to vector<16xf32>
    %290 = vector.shape_cast %289 : vector<16xf32> to vector<16x1xf32>
    %291 = vector.broadcast %290 : vector<16x1xf32> to vector<16x16xf32>
    %292 = arith.divf %288, %291 : vector<16x16xf32>
    %293 = vector.extract_strided_slice %260 {offsets = [0, 8], sizes = [16, 8], strides = [1, 1]} : vector<16x32xf32> to vector<16x8xf32>
    %294 = arith.truncf %292 : vector<16x16xf32> to vector<16x16xbf16>
    %295 = arith.truncf %293 : vector<16x8xf32> to vector<16x8xbf16>
    %cst_98 = arith.constant dense<0.000000e+00> : vector<16x8xf32>
    %296 = tpu.matmul %294, %295, %cst_98 {dimension_numbers = #tpu.dot_dimension_numbers<[1], [0], [0], [1], [0, 0, 1, 1], [], []>} : vector<16x16xbf16>, vector<16x8xbf16>, vector<16x8xf32> -> vector<16x8xf32>
    %297 = vector.extract_strided_slice %258 {offsets = [0, 16], sizes = [16, 8], strides = [1, 1]} : vector<16x32xf32> to vector<16x8xf32>
    %298 = vector.extract_strided_slice %259 {offsets = [0, 16], sizes = [16, 8], strides = [1, 1]} : vector<16x32xf32> to vector<16x8xf32>
    %299 = arith.truncf %297 : vector<16x8xf32> to vector<16x8xbf16>
    %300 = arith.truncf %298 : vector<16x8xf32> to vector<16x8xbf16>
    %cst_99 = arith.constant dense<0.000000e+00> : vector<16x16xf32>
    %301 = tpu.matmul %299, %300, %cst_99 {dimension_numbers = #tpu.dot_dimension_numbers<[1], [1], [0], [0], [0, 0, 1, 0], [], []>} : vector<16x8xbf16>, vector<16x8xbf16>, vector<16x16xf32> -> vector<16x16xf32>
    %cst_100 = arith.constant dense<0xFF800000> : vector<16xf32>
    %302 = vector.multi_reduction <maximumf>, %301, %cst_100 [1] : vector<16x16xf32> to vector<16xf32>
    %303 = vector.shape_cast %302 : vector<16xf32> to vector<16x1xf32>
    %304 = vector.broadcast %303 : vector<16x1xf32> to vector<16x16xf32>
    %305 = arith.subf %301, %304 : vector<16x16xf32>
    %306 = math.exp %305 : vector<16x16xf32>
    %cst_101 = arith.constant dense<0.000000e+00> : vector<16xf32>
    %307 = vector.multi_reduction <add>, %306, %cst_101 [1] : vector<16x16xf32> to vector<16xf32>
    %308 = vector.shape_cast %307 : vector<16xf32> to vector<16x1xf32>
    %309 = vector.broadcast %308 : vector<16x1xf32> to vector<16x16xf32>
    %310 = arith.divf %306, %309 : vector<16x16xf32>
    %311 = vector.extract_strided_slice %260 {offsets = [0, 16], sizes = [16, 8], strides = [1, 1]} : vector<16x32xf32> to vector<16x8xf32>
    %312 = arith.truncf %310 : vector<16x16xf32> to vector<16x16xbf16>
    %313 = arith.truncf %311 : vector<16x8xf32> to vector<16x8xbf16>
    %cst_102 = arith.constant dense<0.000000e+00> : vector<16x8xf32>
    %314 = tpu.matmul %312, %313, %cst_102 {dimension_numbers = #tpu.dot_dimension_numbers<[1], [0], [0], [1], [0, 0, 1, 1], [], []>} : vector<16x16xbf16>, vector<16x8xbf16>, vector<16x8xf32> -> vector<16x8xf32>
    %315 = vector.extract_strided_slice %258 {offsets = [0, 24], sizes = [16, 8], strides = [1, 1]} : vector<16x32xf32> to vector<16x8xf32>
    %316 = vector.extract_strided_slice %259 {offsets = [0, 24], sizes = [16, 8], strides = [1, 1]} : vector<16x32xf32> to vector<16x8xf32>
    %317 = arith.truncf %315 : vector<16x8xf32> to vector<16x8xbf16>
    %318 = arith.truncf %316 : vector<16x8xf32> to vector<16x8xbf16>
    %cst_103 = arith.constant dense<0.000000e+00> : vector<16x16xf32>
    %319 = tpu.matmul %317, %318, %cst_103 {dimension_numbers = #tpu.dot_dimension_numbers<[1], [1], [0], [0], [0, 0, 1, 0], [], []>} : vector<16x8xbf16>, vector<16x8xbf16>, vector<16x16xf32> -> vector<16x16xf32>
    %cst_104 = arith.constant dense<0xFF800000> : vector<16xf32>
    %320 = vector.multi_reduction <maximumf>, %319, %cst_104 [1] : vector<16x16xf32> to vector<16xf32>
    %321 = vector.shape_cast %320 : vector<16xf32> to vector<16x1xf32>
    %322 = vector.broadcast %321 : vector<16x1xf32> to vector<16x16xf32>
    %323 = arith.subf %319, %322 : vector<16x16xf32>
    %324 = math.exp %323 : vector<16x16xf32>
    %cst_105 = arith.constant dense<0.000000e+00> : vector<16xf32>
    %325 = vector.multi_reduction <add>, %324, %cst_105 [1] : vector<16x16xf32> to vector<16xf32>
    %326 = vector.shape_cast %325 : vector<16xf32> to vector<16x1xf32>
    %327 = vector.broadcast %326 : vector<16x1xf32> to vector<16x16xf32>
    %328 = arith.divf %324, %327 : vector<16x16xf32>
    %329 = vector.extract_strided_slice %260 {offsets = [0, 24], sizes = [16, 8], strides = [1, 1]} : vector<16x32xf32> to vector<16x8xf32>
    %330 = arith.truncf %328 : vector<16x16xf32> to vector<16x16xbf16>
    %331 = arith.truncf %329 : vector<16x8xf32> to vector<16x8xbf16>
    %cst_106 = arith.constant dense<0.000000e+00> : vector<16x8xf32>
    %332 = tpu.matmul %330, %331, %cst_106 {dimension_numbers = #tpu.dot_dimension_numbers<[1], [0], [0], [1], [0, 0, 1, 1], [], []>} : vector<16x16xbf16>, vector<16x8xbf16>, vector<16x8xf32> -> vector<16x8xf32>
    %333 = tpu.concatenate %278, %296, %314, %332 in 1 : vector<16x8xf32>, vector<16x8xf32>, vector<16x8xf32>, vector<16x8xf32> -> vector<16x32xf32>
    %334 = vector.extract_strided_slice %255 {offsets = [16, 0], sizes = [16, 32], strides = [1, 1]} : vector<32x96xf32> to vector<16x32xf32>
    %cst_107 = arith.constant 0.353553385 : f32
    %335 = vector.broadcast %cst_107 : f32 to vector<16x32xf32>
    %336 = arith.mulf %334, %335 : vector<16x32xf32>
    %337 = vector.extract_strided_slice %255 {offsets = [16, 32], sizes = [16, 32], strides = [1, 1]} : vector<32x96xf32> to vector<16x32xf32>
    %338 = vector.extract_strided_slice %255 {offsets = [16, 64], sizes = [16, 32], strides = [1, 1]} : vector<32x96xf32> to vector<16x32xf32>
    %339 = vector.extract_strided_slice %336 {offsets = [0, 0], sizes = [16, 8], strides = [1, 1]} : vector<16x32xf32> to vector<16x8xf32>
    %340 = vector.extract_strided_slice %337 {offsets = [0, 0], sizes = [16, 8], strides = [1, 1]} : vector<16x32xf32> to vector<16x8xf32>
    %341 = arith.truncf %339 : vector<16x8xf32> to vector<16x8xbf16>
    %342 = arith.truncf %340 : vector<16x8xf32> to vector<16x8xbf16>
    %cst_108 = arith.constant dense<0.000000e+00> : vector<16x16xf32>
    %343 = tpu.matmul %341, %342, %cst_108 {dimension_numbers = #tpu.dot_dimension_numbers<[1], [1], [0], [0], [0, 0, 1, 0], [], []>} : vector<16x8xbf16>, vector<16x8xbf16>, vector<16x16xf32> -> vector<16x16xf32>
    %cst_109 = arith.constant dense<0xFF800000> : vector<16xf32>
    %344 = vector.multi_reduction <maximumf>, %343, %cst_109 [1] : vector<16x16xf32> to vector<16xf32>
    %345 = vector.shape_cast %344 : vector<16xf32> to vector<16x1xf32>
    %346 = vector.broadcast %345 : vector<16x1xf32> to vector<16x16xf32>
    %347 = arith.subf %343, %346 : vector<16x16xf32>
    %348 = math.exp %347 : vector<16x16xf32>
    %cst_110 = arith.constant dense<0.000000e+00> : vector<16xf32>
    %349 = vector.multi_reduction <add>, %348, %cst_110 [1] : vector<16x16xf32> to vector<16xf32>
    %350 = vector.shape_cast %349 : vector<16xf32> to vector<16x1xf32>
    %351 = vector.broadcast %350 : vector<16x1xf32> to vector<16x16xf32>
    %352 = arith.divf %348, %351 : vector<16x16xf32>
    %353 = vector.extract_strided_slice %338 {offsets = [0, 0], sizes = [16, 8], strides = [1, 1]} : vector<16x32xf32> to vector<16x8xf32>
    %354 = arith.truncf %352 : vector<16x16xf32> to vector<16x16xbf16>
    %355 = arith.truncf %353 : vector<16x8xf32> to vector<16x8xbf16>
    %cst_111 = arith.constant dense<0.000000e+00> : vector<16x8xf32>
    %356 = tpu.matmul %354, %355, %cst_111 {dimension_numbers = #tpu.dot_dimension_numbers<[1], [0], [0], [1], [0, 0, 1, 1], [], []>} : vector<16x16xbf16>, vector<16x8xbf16>, vector<16x8xf32> -> vector<16x8xf32>
    %357 = vector.extract_strided_slice %336 {offsets = [0, 8], sizes = [16, 8], strides = [1, 1]} : vector<16x32xf32> to vector<16x8xf32>
    %358 = vector.extract_strided_slice %337 {offsets = [0, 8], sizes = [16, 8], strides = [1, 1]} : vector<16x32xf32> to vector<16x8xf32>
    %359 = arith.truncf %357 : vector<16x8xf32> to vector<16x8xbf16>
    %360 = arith.truncf %358 : vector<16x8xf32> to vector<16x8xbf16>
    %cst_112 = arith.constant dense<0.000000e+00> : vector<16x16xf32>
    %361 = tpu.matmul %359, %360, %cst_112 {dimension_numbers = #tpu.dot_dimension_numbers<[1], [1], [0], [0], [0, 0, 1, 0], [], []>} : vector<16x8xbf16>, vector<16x8xbf16>, vector<16x16xf32> -> vector<16x16xf32>
    %cst_113 = arith.constant dense<0xFF800000> : vector<16xf32>
    %362 = vector.multi_reduction <maximumf>, %361, %cst_113 [1] : vector<16x16xf32> to vector<16xf32>
    %363 = vector.shape_cast %362 : vector<16xf32> to vector<16x1xf32>
    %364 = vector.broadcast %363 : vector<16x1xf32> to vector<16x16xf32>
    %365 = arith.subf %361, %364 : vector<16x16xf32>
    %366 = math.exp %365 : vector<16x16xf32>
    %cst_114 = arith.constant dense<0.000000e+00> : vector<16xf32>
    %367 = vector.multi_reduction <add>, %366, %cst_114 [1] : vector<16x16xf32> to vector<16xf32>
    %368 = vector.shape_cast %367 : vector<16xf32> to vector<16x1xf32>
    %369 = vector.broadcast %368 : vector<16x1xf32> to vector<16x16xf32>
    %370 = arith.divf %366, %369 : vector<16x16xf32>
    %371 = vector.extract_strided_slice %338 {offsets = [0, 8], sizes = [16, 8], strides = [1, 1]} : vector<16x32xf32> to vector<16x8xf32>
    %372 = arith.truncf %370 : vector<16x16xf32> to vector<16x16xbf16>
    %373 = arith.truncf %371 : vector<16x8xf32> to vector<16x8xbf16>
    %cst_115 = arith.constant dense<0.000000e+00> : vector<16x8xf32>
    %374 = tpu.matmul %372, %373, %cst_115 {dimension_numbers = #tpu.dot_dimension_numbers<[1], [0], [0], [1], [0, 0, 1, 1], [], []>} : vector<16x16xbf16>, vector<16x8xbf16>, vector<16x8xf32> -> vector<16x8xf32>
    %375 = vector.extract_strided_slice %336 {offsets = [0, 16], sizes = [16, 8], strides = [1, 1]} : vector<16x32xf32> to vector<16x8xf32>
    %376 = vector.extract_strided_slice %337 {offsets = [0, 16], sizes = [16, 8], strides = [1, 1]} : vector<16x32xf32> to vector<16x8xf32>
    %377 = arith.truncf %375 : vector<16x8xf32> to vector<16x8xbf16>
    %378 = arith.truncf %376 : vector<16x8xf32> to vector<16x8xbf16>
    %cst_116 = arith.constant dense<0.000000e+00> : vector<16x16xf32>
    %379 = tpu.matmul %377, %378, %cst_116 {dimension_numbers = #tpu.dot_dimension_numbers<[1], [1], [0], [0], [0, 0, 1, 0], [], []>} : vector<16x8xbf16>, vector<16x8xbf16>, vector<16x16xf32> -> vector<16x16xf32>
    %cst_117 = arith.constant dense<0xFF800000> : vector<16xf32>
    %380 = vector.multi_reduction <maximumf>, %379, %cst_117 [1] : vector<16x16xf32> to vector<16xf32>
    %381 = vector.shape_cast %380 : vector<16xf32> to vector<16x1xf32>
    %382 = vector.broadcast %381 : vector<16x1xf32> to vector<16x16xf32>
    %383 = arith.subf %379, %382 : vector<16x16xf32>
    %384 = math.exp %383 : vector<16x16xf32>
    %cst_118 = arith.constant dense<0.000000e+00> : vector<16xf32>
    %385 = vector.multi_reduction <add>, %384, %cst_118 [1] : vector<16x16xf32> to vector<16xf32>
    %386 = vector.shape_cast %385 : vector<16xf32> to vector<16x1xf32>
    %387 = vector.broadcast %386 : vector<16x1xf32> to vector<16x16xf32>
    %388 = arith.divf %384, %387 : vector<16x16xf32>
    %389 = vector.extract_strided_slice %338 {offsets = [0, 16], sizes = [16, 8], strides = [1, 1]} : vector<16x32xf32> to vector<16x8xf32>
    %390 = arith.truncf %388 : vector<16x16xf32> to vector<16x16xbf16>
    %391 = arith.truncf %389 : vector<16x8xf32> to vector<16x8xbf16>
    %cst_119 = arith.constant dense<0.000000e+00> : vector<16x8xf32>
    %392 = tpu.matmul %390, %391, %cst_119 {dimension_numbers = #tpu.dot_dimension_numbers<[1], [0], [0], [1], [0, 0, 1, 1], [], []>} : vector<16x16xbf16>, vector<16x8xbf16>, vector<16x8xf32> -> vector<16x8xf32>
    %393 = vector.extract_strided_slice %336 {offsets = [0, 24], sizes = [16, 8], strides = [1, 1]} : vector<16x32xf32> to vector<16x8xf32>
    %394 = vector.extract_strided_slice %337 {offsets = [0, 24], sizes = [16, 8], strides = [1, 1]} : vector<16x32xf32> to vector<16x8xf32>
    %395 = arith.truncf %393 : vector<16x8xf32> to vector<16x8xbf16>
    %396 = arith.truncf %394 : vector<16x8xf32> to vector<16x8xbf16>
    %cst_120 = arith.constant dense<0.000000e+00> : vector<16x16xf32>
    %397 = tpu.matmul %395, %396, %cst_120 {dimension_numbers = #tpu.dot_dimension_numbers<[1], [1], [0], [0], [0, 0, 1, 0], [], []>} : vector<16x8xbf16>, vector<16x8xbf16>, vector<16x16xf32> -> vector<16x16xf32>
    %cst_121 = arith.constant dense<0xFF800000> : vector<16xf32>
    %398 = vector.multi_reduction <maximumf>, %397, %cst_121 [1] : vector<16x16xf32> to vector<16xf32>
    %399 = vector.shape_cast %398 : vector<16xf32> to vector<16x1xf32>
    %400 = vector.broadcast %399 : vector<16x1xf32> to vector<16x16xf32>
    %401 = arith.subf %397, %400 : vector<16x16xf32>
    %402 = math.exp %401 : vector<16x16xf32>
    %cst_122 = arith.constant dense<0.000000e+00> : vector<16xf32>
    %403 = vector.multi_reduction <add>, %402, %cst_122 [1] : vector<16x16xf32> to vector<16xf32>
    %404 = vector.shape_cast %403 : vector<16xf32> to vector<16x1xf32>
    %405 = vector.broadcast %404 : vector<16x1xf32> to vector<16x16xf32>
    %406 = arith.divf %402, %405 : vector<16x16xf32>
    %407 = vector.extract_strided_slice %338 {offsets = [0, 24], sizes = [16, 8], strides = [1, 1]} : vector<16x32xf32> to vector<16x8xf32>
    %408 = arith.truncf %406 : vector<16x16xf32> to vector<16x16xbf16>
    %409 = arith.truncf %407 : vector<16x8xf32> to vector<16x8xbf16>
    %cst_123 = arith.constant dense<0.000000e+00> : vector<16x8xf32>
    %410 = tpu.matmul %408, %409, %cst_123 {dimension_numbers = #tpu.dot_dimension_numbers<[1], [0], [0], [1], [0, 0, 1, 1], [], []>} : vector<16x16xbf16>, vector<16x8xbf16>, vector<16x8xf32> -> vector<16x8xf32>
    %411 = tpu.concatenate %356, %374, %392, %410 in 1 : vector<16x8xf32>, vector<16x8xf32>, vector<16x8xf32>, vector<16x8xf32> -> vector<16x32xf32>
    %412 = tpu.concatenate %333, %411 in 0 : vector<16x32xf32>, vector<16x32xf32> -> vector<32x32xf32>
    %413 = arith.truncf %412 : vector<32x32xf32> to vector<32x32xbf16>
    %cst_124 = arith.constant dense<0.000000e+00> : vector<32x32xf32>
    %414 = tpu.matmul %413, %250, %cst_124 {dimension_numbers = #tpu.dot_dimension_numbers<[1], [0], [0], [1], [0, 0, 1, 1], [], []>} : vector<32x32xbf16>, vector<32x32xbf16>, vector<32x32xf32> -> vector<32x32xf32>
    %415 = vector.broadcast %251 : vector<1x32xf32> to vector<32x32xf32>
    %416 = arith.addf %414, %415 : vector<32x32xf32>
    %417 = arith.addf %247, %416 : vector<32x32xf32>
    %c0_125 = arith.constant 0 : index
    %c0_126 = arith.constant 0 : index
    %418 = vector.load %arg20[%c0_125, %c0_126] : memref<1x32xf32, #tpu.memory_space<vmem>>, vector<1x32xf32>
    %c0_127 = arith.constant 0 : index
    %c0_128 = arith.constant 0 : index
    %419 = vector.load %arg21[%c0_127, %c0_128] : memref<1x32xf32, #tpu.memory_space<vmem>>, vector<1x32xf32>
    %cst_129 = arith.constant dense<0.000000e+00> : vector<32xf32>
    %420 = vector.multi_reduction <add>, %417, %cst_129 [1] : vector<32x32xf32> to vector<32xf32>
    %421 = vector.shape_cast %420 : vector<32xf32> to vector<32x1xf32>
    %cst_130 = arith.constant 3.200000e+01 : f32
    %422 = vector.broadcast %cst_130 : f32 to vector<32x1xf32>
    %423 = arith.divf %421, %422 : vector<32x1xf32>
    %424 = vector.broadcast %423 : vector<32x1xf32> to vector<32x32xf32>
    %425 = arith.subf %417, %424 : vector<32x32xf32>
    %426 = arith.mulf %425, %425 : vector<32x32xf32>
    %cst_131 = arith.constant dense<0.000000e+00> : vector<32xf32>
    %427 = vector.multi_reduction <add>, %426, %cst_131 [1] : vector<32x32xf32> to vector<32xf32>
    %428 = vector.shape_cast %427 : vector<32xf32> to vector<32x1xf32>
    %cst_132 = arith.constant 3.200000e+01 : f32
    %429 = vector.broadcast %cst_132 : f32 to vector<32x1xf32>
    %430 = arith.divf %428, %429 : vector<32x1xf32>
    %431 = vector.broadcast %423 : vector<32x1xf32> to vector<32x32xf32>
    %432 = arith.subf %417, %431 : vector<32x32xf32>
    %cst_133 = arith.constant 9.99999974E-6 : f32
    %433 = vector.broadcast %cst_133 : f32 to vector<32x1xf32>
    %434 = arith.addf %430, %433 : vector<32x1xf32>
    %435 = math.rsqrt %434 : vector<32x1xf32>
    %436 = vector.broadcast %435 : vector<32x1xf32> to vector<32x32xf32>
    %437 = arith.mulf %432, %436 : vector<32x32xf32>
    %438 = vector.broadcast %418 : vector<1x32xf32> to vector<32x32xf32>
    %439 = arith.mulf %437, %438 : vector<32x32xf32>
    %440 = vector.broadcast %419 : vector<1x32xf32> to vector<32x32xf32>
    %441 = arith.addf %439, %440 : vector<32x32xf32>
    %c0_134 = arith.constant 0 : index
    %c0_135 = arith.constant 0 : index
    %442 = vector.load %arg22[%c0_134, %c0_135] : memref<32x64xbf16, #tpu.memory_space<vmem>>, vector<32x64xbf16>
    %443 = arith.truncf %441 : vector<32x32xf32> to vector<32x32xbf16>
    %cst_136 = arith.constant dense<0.000000e+00> : vector<32x64xf32>
    %444 = tpu.matmul %443, %442, %cst_136 {dimension_numbers = #tpu.dot_dimension_numbers<[1], [0], [0], [1], [0, 0, 1, 1], [], []>} : vector<32x32xbf16>, vector<32x64xbf16>, vector<32x64xf32> -> vector<32x64xf32>
    %c0_137 = arith.constant 0 : index
    %c0_138 = arith.constant 0 : index
    %445 = vector.load %arg23[%c0_137, %c0_138] : memref<1x64xf32, #tpu.memory_space<vmem>>, vector<1x64xf32>
    %446 = vector.broadcast %445 : vector<1x64xf32> to vector<32x64xf32>
    %447 = arith.addf %444, %446 : vector<32x64xf32>
    %cst_139 = arith.constant 0.000000e+00 : f32
    %448 = vector.broadcast %cst_139 : f32 to vector<32x64xf32>
    %449 = arith.maximumf %447, %448 : vector<32x64xf32>
    %c0_140 = arith.constant 0 : index
    %c0_141 = arith.constant 0 : index
    %450 = vector.load %arg24[%c0_140, %c0_141] : memref<64x32xbf16, #tpu.memory_space<vmem>>, vector<64x32xbf16>
    %451 = arith.truncf %449 : vector<32x64xf32> to vector<32x64xbf16>
    %cst_142 = arith.constant dense<0.000000e+00> : vector<32x32xf32>
    %452 = tpu.matmul %451, %450, %cst_142 {dimension_numbers = #tpu.dot_dimension_numbers<[1], [0], [0], [1], [0, 0, 1, 1], [], []>} : vector<32x64xbf16>, vector<64x32xbf16>, vector<32x32xf32> -> vector<32x32xf32>
    %c0_143 = arith.constant 0 : index
    %c0_144 = arith.constant 0 : index
    %453 = vector.load %arg25[%c0_143, %c0_144] : memref<1x32xf32, #tpu.memory_space<vmem>>, vector<1x32xf32>
    %454 = vector.broadcast %453 : vector<1x32xf32> to vector<32x32xf32>
    %455 = arith.addf %452, %454 : vector<32x32xf32>
    %456 = arith.addf %441, %455 : vector<32x32xf32>
    %c0_145 = arith.constant 0 : index
    %c0_146 = arith.constant 0 : index
    %457 = vector.load %arg26[%c0_145, %c0_146] : memref<1x32xf32, #tpu.memory_space<vmem>>, vector<1x32xf32>
    %c0_147 = arith.constant 0 : index
    %c0_148 = arith.constant 0 : index
    %458 = vector.load %arg27[%c0_147, %c0_148] : memref<1x32xf32, #tpu.memory_space<vmem>>, vector<1x32xf32>
    %cst_149 = arith.constant dense<0.000000e+00> : vector<32xf32>
    %459 = vector.multi_reduction <add>, %456, %cst_149 [1] : vector<32x32xf32> to vector<32xf32>
    %460 = vector.shape_cast %459 : vector<32xf32> to vector<32x1xf32>
    %cst_150 = arith.constant 3.200000e+01 : f32
    %461 = vector.broadcast %cst_150 : f32 to vector<32x1xf32>
    %462 = arith.divf %460, %461 : vector<32x1xf32>
    %463 = vector.broadcast %462 : vector<32x1xf32> to vector<32x32xf32>
    %464 = arith.subf %456, %463 : vector<32x32xf32>
    %465 = arith.mulf %464, %464 : vector<32x32xf32>
    %cst_151 = arith.constant dense<0.000000e+00> : vector<32xf32>
    %466 = vector.multi_reduction <add>, %465, %cst_151 [1] : vector<32x32xf32> to vector<32xf32>
    %467 = vector.shape_cast %466 : vector<32xf32> to vector<32x1xf32>
    %cst_152 = arith.constant 3.200000e+01 : f32
    %468 = vector.broadcast %cst_152 : f32 to vector<32x1xf32>
    %469 = arith.divf %467, %468 : vector<32x1xf32>
    %470 = vector.broadcast %462 : vector<32x1xf32> to vector<32x32xf32>
    %471 = arith.subf %456, %470 : vector<32x32xf32>
    %cst_153 = arith.constant 9.99999974E-6 : f32
    %472 = vector.broadcast %cst_153 : f32 to vector<32x1xf32>
    %473 = arith.addf %469, %472 : vector<32x1xf32>
    %474 = math.rsqrt %473 : vector<32x1xf32>
    %475 = vector.broadcast %474 : vector<32x1xf32> to vector<32x32xf32>
    %476 = arith.mulf %471, %475 : vector<32x32xf32>
    %477 = vector.broadcast %457 : vector<1x32xf32> to vector<32x32xf32>
    %478 = arith.mulf %476, %477 : vector<32x32xf32>
    %479 = vector.broadcast %458 : vector<1x32xf32> to vector<32x32xf32>
    %480 = arith.addf %478, %479 : vector<32x32xf32>
    %c0_154 = arith.constant 0 : index
    %c0_155 = arith.constant 0 : index
    %481 = vector.load %arg28[%c0_154, %c0_155] : memref<16x1xf32, #tpu.memory_space<vmem>>, vector<16x1xf32>
    %482 = tpu.concatenate %481, %481 in 0 : vector<16x1xf32>, vector<16x1xf32> -> vector<32x1xf32>
    %c0_156 = arith.constant 0 : index
    %c0_157 = arith.constant 0 : index
    %483 = vector.load %arg29[%c0_156, %c0_157] : memref<16x1xf32, #tpu.memory_space<vmem>>, vector<16x1xf32>
    %484 = tpu.concatenate %483, %483 in 0 : vector<16x1xf32>, vector<16x1xf32> -> vector<32x1xf32>
    %485 = vector.broadcast %482 : vector<32x1xf32> to vector<32x32xf32>
    %486 = arith.mulf %480, %485 : vector<32x32xf32>
    %487 = vector.broadcast %484 : vector<32x1xf32> to vector<32x32xf32>
    %488 = arith.addf %486, %487 : vector<32x32xf32>
    %489 = arith.addf %480, %488 : vector<32x32xf32>
    %c0_158 = arith.constant 0 : index
    %c0_159 = arith.constant 0 : index
    %490 = vector.load %arg30[%c0_158, %c0_159] : memref<128x64xbf16, #tpu.memory_space<vmem>>, vector<128x64xbf16>
    %c0_160 = arith.constant 0 : index
    %c0_161 = arith.constant 0 : index
    %491 = vector.load %arg31[%c0_160, %c0_161] : memref<1x64xf32, #tpu.memory_space<vmem>>, vector<1x64xf32>
    %c0_162 = arith.constant 0 : index
    %c0_163 = arith.constant 0 : index
    %492 = vector.load %arg32[%c0_162, %c0_163] : memref<64x32xbf16, #tpu.memory_space<vmem>>, vector<64x32xbf16>
    %c0_164 = arith.constant 0 : index
    %c0_165 = arith.constant 0 : index
    %493 = vector.load %arg33[%c0_164, %c0_165] : memref<1x32xf32, #tpu.memory_space<vmem>>, vector<1x32xf32>
    %c0_166 = arith.constant 0 : index
    %c0_167 = arith.constant 0 : index
    %494 = vector.load %arg34[%c0_166, %c0_167] : memref<32x32xbf16, #tpu.memory_space<vmem>>, vector<32x32xbf16>
    %c0_168 = arith.constant 0 : index
    %c0_169 = arith.constant 0 : index
    %495 = vector.load %arg35[%c0_168, %c0_169] : memref<1x32xf32, #tpu.memory_space<vmem>>, vector<1x32xf32>
    %c0_170 = arith.constant 0 : index
    %c0_171 = arith.constant 0 : index
    %496 = vector.load %arg36[%c0_170, %c0_171] : memref<1x32xf32, #tpu.memory_space<vmem>>, vector<1x32xf32>
    %497 = vector.extract_strided_slice %210 {offsets = [0, 0], sizes = [8, 32], strides = [1, 1]} : vector<16x32xf32> to vector<8x32xf32>
    %498 = vector.extract_strided_slice %489 {offsets = [0, 0], sizes = [16, 32], strides = [1, 1]} : vector<32x32xf32> to vector<16x32xf32>
    %499 = arith.truncf %497 : vector<8x32xf32> to vector<8x32xbf16>
    %500 = arith.truncf %498 : vector<16x32xf32> to vector<16x32xbf16>
    %cst_172 = arith.constant dense<0.000000e+00> : vector<8x16xf32>
    %501 = tpu.matmul %499, %500, %cst_172 {dimension_numbers = #tpu.dot_dimension_numbers<[1], [1], [0], [0], [0, 0, 1, 0], [], []>} : vector<8x32xbf16>, vector<16x32xbf16>, vector<8x16xf32> -> vector<8x16xf32>
    %cst_173 = arith.constant dense<0xFF800000> : vector<8xf32>
    %502 = vector.multi_reduction <maximumf>, %501, %cst_173 [1] : vector<8x16xf32> to vector<8xf32>
    %503 = vector.shape_cast %502 : vector<8xf32> to vector<8x1xf32>
    %504 = vector.broadcast %503 : vector<8x1xf32> to vector<8x16xf32>
    %505 = arith.subf %501, %504 : vector<8x16xf32>
    %506 = math.exp %505 : vector<8x16xf32>
    %cst_174 = arith.constant dense<0.000000e+00> : vector<8xf32>
    %507 = vector.multi_reduction <add>, %506, %cst_174 [1] : vector<8x16xf32> to vector<8xf32>
    %508 = vector.shape_cast %507 : vector<8xf32> to vector<8x1xf32>
    %509 = vector.broadcast %508 : vector<8x1xf32> to vector<8x16xf32>
    %510 = arith.divf %506, %509 : vector<8x16xf32>
    %cst_175 = arith.constant dense<0xFF800000> : vector<16xf32>
    %511 = vector.multi_reduction <maximumf>, %501, %cst_175 [0] : vector<8x16xf32> to vector<16xf32>
    %512 = vector.shape_cast %511 : vector<16xf32> to vector<1x16xf32>
    %513 = vector.broadcast %512 : vector<1x16xf32> to vector<8x16xf32>
    %514 = arith.subf %501, %513 : vector<8x16xf32>
    %515 = math.exp %514 : vector<8x16xf32>
    %cst_176 = arith.constant dense<0.000000e+00> : vector<16xf32>
    %516 = vector.multi_reduction <add>, %515, %cst_176 [0] : vector<8x16xf32> to vector<16xf32>
    %517 = vector.shape_cast %516 : vector<16xf32> to vector<1x16xf32>
    %518 = vector.broadcast %517 : vector<1x16xf32> to vector<8x16xf32>
    %519 = arith.divf %515, %518 : vector<8x16xf32>
    %520 = arith.truncf %510 : vector<8x16xf32> to vector<8x16xbf16>
    %521 = arith.truncf %498 : vector<16x32xf32> to vector<16x32xbf16>
    %cst_177 = arith.constant dense<0.000000e+00> : vector<8x32xf32>
    %522 = tpu.matmul %520, %521, %cst_177 {dimension_numbers = #tpu.dot_dimension_numbers<[1], [0], [0], [1], [0, 0, 1, 1], [], []>} : vector<8x16xbf16>, vector<16x32xbf16>, vector<8x32xf32> -> vector<8x32xf32>
    %523 = arith.truncf %519 : vector<8x16xf32> to vector<8x16xbf16>
    %524 = arith.truncf %497 : vector<8x32xf32> to vector<8x32xbf16>
    %cst_178 = arith.constant dense<0.000000e+00> : vector<16x32xf32>
    %525 = tpu.matmul %523, %524, %cst_178 {dimension_numbers = #tpu.dot_dimension_numbers<[0], [0], [1], [1], [0, 1, 1, 1], [], []>} : vector<8x16xbf16>, vector<8x32xbf16>, vector<16x32xf32> -> vector<16x32xf32>
    %526 = arith.subf %497, %522 : vector<8x32xf32>
    %527 = arith.mulf %497, %522 : vector<8x32xf32>
    %528 = tpu.concatenate %497, %522, %526, %527 in 1 : vector<8x32xf32>, vector<8x32xf32>, vector<8x32xf32>, vector<8x32xf32> -> vector<8x128xf32>
    %529 = arith.truncf %528 : vector<8x128xf32> to vector<8x128xbf16>
    %cst_179 = arith.constant dense<0.000000e+00> : vector<8x64xf32>
    %530 = tpu.matmul %529, %490, %cst_179 {dimension_numbers = #tpu.dot_dimension_numbers<[1], [0], [0], [1], [0, 0, 1, 1], [], []>} : vector<8x128xbf16>, vector<128x64xbf16>, vector<8x64xf32> -> vector<8x64xf32>
    %531 = vector.broadcast %491 : vector<1x64xf32> to vector<8x64xf32>
    %532 = arith.addf %530, %531 : vector<8x64xf32>
    %cst_180 = arith.constant 0.000000e+00 : f32
    %533 = vector.broadcast %cst_180 : f32 to vector<8x64xf32>
    %534 = arith.maximumf %532, %533 : vector<8x64xf32>
    %535 = arith.truncf %534 : vector<8x64xf32> to vector<8x64xbf16>
    %cst_181 = arith.constant dense<0.000000e+00> : vector<8x32xf32>
    %536 = tpu.matmul %535, %492, %cst_181 {dimension_numbers = #tpu.dot_dimension_numbers<[1], [0], [0], [1], [0, 0, 1, 1], [], []>} : vector<8x64xbf16>, vector<64x32xbf16>, vector<8x32xf32> -> vector<8x32xf32>
    %537 = vector.broadcast %493 : vector<1x32xf32> to vector<8x32xf32>
    %538 = arith.addf %536, %537 : vector<8x32xf32>
    %cst_182 = arith.constant 0.000000e+00 : f32
    %539 = vector.broadcast %cst_182 : f32 to vector<8x32xf32>
    %540 = arith.maximumf %538, %539 : vector<8x32xf32>
    %541 = arith.subf %498, %525 : vector<16x32xf32>
    %542 = arith.mulf %498, %525 : vector<16x32xf32>
    %543 = tpu.concatenate %498, %525, %541, %542 in 1 : vector<16x32xf32>, vector<16x32xf32>, vector<16x32xf32>, vector<16x32xf32> -> vector<16x128xf32>
    %544 = arith.truncf %543 : vector<16x128xf32> to vector<16x128xbf16>
    %cst_183 = arith.constant dense<0.000000e+00> : vector<16x64xf32>
    %545 = tpu.matmul %544, %490, %cst_183 {dimension_numbers = #tpu.dot_dimension_numbers<[1], [0], [0], [1], [0, 0, 1, 1], [], []>} : vector<16x128xbf16>, vector<128x64xbf16>, vector<16x64xf32> -> vector<16x64xf32>
    %546 = vector.broadcast %491 : vector<1x64xf32> to vector<16x64xf32>
    %547 = arith.addf %545, %546 : vector<16x64xf32>
    %cst_184 = arith.constant 0.000000e+00 : f32
    %548 = vector.broadcast %cst_184 : f32 to vector<16x64xf32>
    %549 = arith.maximumf %547, %548 : vector<16x64xf32>
    %550 = arith.truncf %549 : vector<16x64xf32> to vector<16x64xbf16>
    %cst_185 = arith.constant dense<0.000000e+00> : vector<16x32xf32>
    %551 = tpu.matmul %550, %492, %cst_185 {dimension_numbers = #tpu.dot_dimension_numbers<[1], [0], [0], [1], [0, 0, 1, 1], [], []>} : vector<16x64xbf16>, vector<64x32xbf16>, vector<16x32xf32> -> vector<16x32xf32>
    %552 = vector.broadcast %493 : vector<1x32xf32> to vector<16x32xf32>
    %553 = arith.addf %551, %552 : vector<16x32xf32>
    %cst_186 = arith.constant 0.000000e+00 : f32
    %554 = vector.broadcast %cst_186 : f32 to vector<16x32xf32>
    %555 = arith.maximumf %553, %554 : vector<16x32xf32>
    %556 = arith.truncf %540 : vector<8x32xf32> to vector<8x32xbf16>
    %cst_187 = arith.constant dense<0.000000e+00> : vector<8x32xf32>
    %557 = tpu.matmul %556, %494, %cst_187 {dimension_numbers = #tpu.dot_dimension_numbers<[1], [0], [0], [1], [0, 0, 1, 1], [], []>} : vector<8x32xbf16>, vector<32x32xbf16>, vector<8x32xf32> -> vector<8x32xf32>
    %558 = vector.broadcast %495 : vector<1x32xf32> to vector<8x32xf32>
    %559 = arith.addf %557, %558 : vector<8x32xf32>
    %560 = math.tanh %559 : vector<8x32xf32>
    %561 = vector.broadcast %496 : vector<1x32xf32> to vector<8x32xf32>
    %562 = arith.mulf %560, %561 : vector<8x32xf32>
    %cst_188 = arith.constant dense<0.000000e+00> : vector<8xf32>
    %563 = vector.multi_reduction <add>, %562, %cst_188 [1] : vector<8x32xf32> to vector<8xf32>
    %564 = vector.shape_cast %563 : vector<8xf32> to vector<8x1xf32>
    %cst_189 = arith.constant dense<0xFF800000> : vector<1xf32>
    %565 = vector.multi_reduction <maximumf>, %564, %cst_189 [0] : vector<8x1xf32> to vector<1xf32>
    %566 = vector.shape_cast %565 : vector<1xf32> to vector<1x1xf32>
    %567 = vector.broadcast %566 : vector<1x1xf32> to vector<8x1xf32>
    %568 = arith.subf %564, %567 : vector<8x1xf32>
    %569 = math.exp %568 : vector<8x1xf32>
    %cst_190 = arith.constant dense<0.000000e+00> : vector<1xf32>
    %570 = vector.multi_reduction <add>, %569, %cst_190 [0] : vector<8x1xf32> to vector<1xf32>
    %571 = vector.shape_cast %570 : vector<1xf32> to vector<1x1xf32>
    %572 = vector.broadcast %571 : vector<1x1xf32> to vector<8x1xf32>
    %573 = arith.divf %569, %572 : vector<8x1xf32>
    %574 = vector.broadcast %573 : vector<8x1xf32> to vector<8x32xf32>
    %575 = arith.mulf %540, %574 : vector<8x32xf32>
    %cst_191 = arith.constant dense<0.000000e+00> : vector<32xf32>
    %576 = vector.multi_reduction <add>, %575, %cst_191 [0] : vector<8x32xf32> to vector<32xf32>
    %577 = vector.shape_cast %576 : vector<32xf32> to vector<1x32xf32>
    %578 = arith.truncf %555 : vector<16x32xf32> to vector<16x32xbf16>
    %cst_192 = arith.constant dense<0.000000e+00> : vector<16x32xf32>
    %579 = tpu.matmul %578, %494, %cst_192 {dimension_numbers = #tpu.dot_dimension_numbers<[1], [0], [0], [1], [0, 0, 1, 1], [], []>} : vector<16x32xbf16>, vector<32x32xbf16>, vector<16x32xf32> -> vector<16x32xf32>
    %580 = vector.broadcast %495 : vector<1x32xf32> to vector<16x32xf32>
    %581 = arith.addf %579, %580 : vector<16x32xf32>
    %582 = math.tanh %581 : vector<16x32xf32>
    %583 = vector.broadcast %496 : vector<1x32xf32> to vector<16x32xf32>
    %584 = arith.mulf %582, %583 : vector<16x32xf32>
    %cst_193 = arith.constant dense<0.000000e+00> : vector<16xf32>
    %585 = vector.multi_reduction <add>, %584, %cst_193 [1] : vector<16x32xf32> to vector<16xf32>
    %586 = vector.shape_cast %585 : vector<16xf32> to vector<16x1xf32>
    %cst_194 = arith.constant dense<0xFF800000> : vector<1xf32>
    %587 = vector.multi_reduction <maximumf>, %586, %cst_194 [0] : vector<16x1xf32> to vector<1xf32>
    %588 = vector.shape_cast %587 : vector<1xf32> to vector<1x1xf32>
    %589 = vector.broadcast %588 : vector<1x1xf32> to vector<16x1xf32>
    %590 = arith.subf %586, %589 : vector<16x1xf32>
    %591 = math.exp %590 : vector<16x1xf32>
    %cst_195 = arith.constant dense<0.000000e+00> : vector<1xf32>
    %592 = vector.multi_reduction <add>, %591, %cst_195 [0] : vector<16x1xf32> to vector<1xf32>
    %593 = vector.shape_cast %592 : vector<1xf32> to vector<1x1xf32>
    %594 = vector.broadcast %593 : vector<1x1xf32> to vector<16x1xf32>
    %595 = arith.divf %591, %594 : vector<16x1xf32>
    %596 = vector.broadcast %595 : vector<16x1xf32> to vector<16x32xf32>
    %597 = arith.mulf %555, %596 : vector<16x32xf32>
    %cst_196 = arith.constant dense<0.000000e+00> : vector<32xf32>
    %598 = vector.multi_reduction <add>, %597, %cst_196 [0] : vector<16x32xf32> to vector<32xf32>
    %599 = vector.shape_cast %598 : vector<32xf32> to vector<1x32xf32>
    %600 = tpu.concatenate %577, %599 in 1 : vector<1x32xf32>, vector<1x32xf32> -> vector<1x64xf32>
    %601 = vector.extract_strided_slice %210 {offsets = [8, 0], sizes = [8, 32], strides = [1, 1]} : vector<16x32xf32> to vector<8x32xf32>
    %602 = vector.extract_strided_slice %489 {offsets = [16, 0], sizes = [16, 32], strides = [1, 1]} : vector<32x32xf32> to vector<16x32xf32>
    %603 = arith.truncf %601 : vector<8x32xf32> to vector<8x32xbf16>
    %604 = arith.truncf %602 : vector<16x32xf32> to vector<16x32xbf16>
    %cst_197 = arith.constant dense<0.000000e+00> : vector<8x16xf32>
    %605 = tpu.matmul %603, %604, %cst_197 {dimension_numbers = #tpu.dot_dimension_numbers<[1], [1], [0], [0], [0, 0, 1, 0], [], []>} : vector<8x32xbf16>, vector<16x32xbf16>, vector<8x16xf32> -> vector<8x16xf32>
    %cst_198 = arith.constant dense<0xFF800000> : vector<8xf32>
    %606 = vector.multi_reduction <maximumf>, %605, %cst_198 [1] : vector<8x16xf32> to vector<8xf32>
    %607 = vector.shape_cast %606 : vector<8xf32> to vector<8x1xf32>
    %608 = vector.broadcast %607 : vector<8x1xf32> to vector<8x16xf32>
    %609 = arith.subf %605, %608 : vector<8x16xf32>
    %610 = math.exp %609 : vector<8x16xf32>
    %cst_199 = arith.constant dense<0.000000e+00> : vector<8xf32>
    %611 = vector.multi_reduction <add>, %610, %cst_199 [1] : vector<8x16xf32> to vector<8xf32>
    %612 = vector.shape_cast %611 : vector<8xf32> to vector<8x1xf32>
    %613 = vector.broadcast %612 : vector<8x1xf32> to vector<8x16xf32>
    %614 = arith.divf %610, %613 : vector<8x16xf32>
    %cst_200 = arith.constant dense<0xFF800000> : vector<16xf32>
    %615 = vector.multi_reduction <maximumf>, %605, %cst_200 [0] : vector<8x16xf32> to vector<16xf32>
    %616 = vector.shape_cast %615 : vector<16xf32> to vector<1x16xf32>
    %617 = vector.broadcast %616 : vector<1x16xf32> to vector<8x16xf32>
    %618 = arith.subf %605, %617 : vector<8x16xf32>
    %619 = math.exp %618 : vector<8x16xf32>
    %cst_201 = arith.constant dense<0.000000e+00> : vector<16xf32>
    %620 = vector.multi_reduction <add>, %619, %cst_201 [0] : vector<8x16xf32> to vector<16xf32>
    %621 = vector.shape_cast %620 : vector<16xf32> to vector<1x16xf32>
    %622 = vector.broadcast %621 : vector<1x16xf32> to vector<8x16xf32>
    %623 = arith.divf %619, %622 : vector<8x16xf32>
    %624 = arith.truncf %614 : vector<8x16xf32> to vector<8x16xbf16>
    %625 = arith.truncf %602 : vector<16x32xf32> to vector<16x32xbf16>
    %cst_202 = arith.constant dense<0.000000e+00> : vector<8x32xf32>
    %626 = tpu.matmul %624, %625, %cst_202 {dimension_numbers = #tpu.dot_dimension_numbers<[1], [0], [0], [1], [0, 0, 1, 1], [], []>} : vector<8x16xbf16>, vector<16x32xbf16>, vector<8x32xf32> -> vector<8x32xf32>
    %627 = arith.truncf %623 : vector<8x16xf32> to vector<8x16xbf16>
    %628 = arith.truncf %601 : vector<8x32xf32> to vector<8x32xbf16>
    %cst_203 = arith.constant dense<0.000000e+00> : vector<16x32xf32>
    %629 = tpu.matmul %627, %628, %cst_203 {dimension_numbers = #tpu.dot_dimension_numbers<[0], [0], [1], [1], [0, 1, 1, 1], [], []>} : vector<8x16xbf16>, vector<8x32xbf16>, vector<16x32xf32> -> vector<16x32xf32>
    %630 = arith.subf %601, %626 : vector<8x32xf32>
    %631 = arith.mulf %601, %626 : vector<8x32xf32>
    %632 = tpu.concatenate %601, %626, %630, %631 in 1 : vector<8x32xf32>, vector<8x32xf32>, vector<8x32xf32>, vector<8x32xf32> -> vector<8x128xf32>
    %633 = arith.truncf %632 : vector<8x128xf32> to vector<8x128xbf16>
    %cst_204 = arith.constant dense<0.000000e+00> : vector<8x64xf32>
    %634 = tpu.matmul %633, %490, %cst_204 {dimension_numbers = #tpu.dot_dimension_numbers<[1], [0], [0], [1], [0, 0, 1, 1], [], []>} : vector<8x128xbf16>, vector<128x64xbf16>, vector<8x64xf32> -> vector<8x64xf32>
    %635 = vector.broadcast %491 : vector<1x64xf32> to vector<8x64xf32>
    %636 = arith.addf %634, %635 : vector<8x64xf32>
    %cst_205 = arith.constant 0.000000e+00 : f32
    %637 = vector.broadcast %cst_205 : f32 to vector<8x64xf32>
    %638 = arith.maximumf %636, %637 : vector<8x64xf32>
    %639 = arith.truncf %638 : vector<8x64xf32> to vector<8x64xbf16>
    %cst_206 = arith.constant dense<0.000000e+00> : vector<8x32xf32>
    %640 = tpu.matmul %639, %492, %cst_206 {dimension_numbers = #tpu.dot_dimension_numbers<[1], [0], [0], [1], [0, 0, 1, 1], [], []>} : vector<8x64xbf16>, vector<64x32xbf16>, vector<8x32xf32> -> vector<8x32xf32>
    %641 = vector.broadcast %493 : vector<1x32xf32> to vector<8x32xf32>
    %642 = arith.addf %640, %641 : vector<8x32xf32>
    %cst_207 = arith.constant 0.000000e+00 : f32
    %643 = vector.broadcast %cst_207 : f32 to vector<8x32xf32>
    %644 = arith.maximumf %642, %643 : vector<8x32xf32>
    %645 = arith.subf %602, %629 : vector<16x32xf32>
    %646 = arith.mulf %602, %629 : vector<16x32xf32>
    %647 = tpu.concatenate %602, %629, %645, %646 in 1 : vector<16x32xf32>, vector<16x32xf32>, vector<16x32xf32>, vector<16x32xf32> -> vector<16x128xf32>
    %648 = arith.truncf %647 : vector<16x128xf32> to vector<16x128xbf16>
    %cst_208 = arith.constant dense<0.000000e+00> : vector<16x64xf32>
    %649 = tpu.matmul %648, %490, %cst_208 {dimension_numbers = #tpu.dot_dimension_numbers<[1], [0], [0], [1], [0, 0, 1, 1], [], []>} : vector<16x128xbf16>, vector<128x64xbf16>, vector<16x64xf32> -> vector<16x64xf32>
    %650 = vector.broadcast %491 : vector<1x64xf32> to vector<16x64xf32>
    %651 = arith.addf %649, %650 : vector<16x64xf32>
    %cst_209 = arith.constant 0.000000e+00 : f32
    %652 = vector.broadcast %cst_209 : f32 to vector<16x64xf32>
    %653 = arith.maximumf %651, %652 : vector<16x64xf32>
    %654 = arith.truncf %653 : vector<16x64xf32> to vector<16x64xbf16>
    %cst_210 = arith.constant dense<0.000000e+00> : vector<16x32xf32>
    %655 = tpu.matmul %654, %492, %cst_210 {dimension_numbers = #tpu.dot_dimension_numbers<[1], [0], [0], [1], [0, 0, 1, 1], [], []>} : vector<16x64xbf16>, vector<64x32xbf16>, vector<16x32xf32> -> vector<16x32xf32>
    %656 = vector.broadcast %493 : vector<1x32xf32> to vector<16x32xf32>
    %657 = arith.addf %655, %656 : vector<16x32xf32>
    %cst_211 = arith.constant 0.000000e+00 : f32
    %658 = vector.broadcast %cst_211 : f32 to vector<16x32xf32>
    %659 = arith.maximumf %657, %658 : vector<16x32xf32>
    %660 = arith.truncf %644 : vector<8x32xf32> to vector<8x32xbf16>
    %cst_212 = arith.constant dense<0.000000e+00> : vector<8x32xf32>
    %661 = tpu.matmul %660, %494, %cst_212 {dimension_numbers = #tpu.dot_dimension_numbers<[1], [0], [0], [1], [0, 0, 1, 1], [], []>} : vector<8x32xbf16>, vector<32x32xbf16>, vector<8x32xf32> -> vector<8x32xf32>
    %662 = vector.broadcast %495 : vector<1x32xf32> to vector<8x32xf32>
    %663 = arith.addf %661, %662 : vector<8x32xf32>
    %664 = math.tanh %663 : vector<8x32xf32>
    %665 = vector.broadcast %496 : vector<1x32xf32> to vector<8x32xf32>
    %666 = arith.mulf %664, %665 : vector<8x32xf32>
    %cst_213 = arith.constant dense<0.000000e+00> : vector<8xf32>
    %667 = vector.multi_reduction <add>, %666, %cst_213 [1] : vector<8x32xf32> to vector<8xf32>
    %668 = vector.shape_cast %667 : vector<8xf32> to vector<8x1xf32>
    %cst_214 = arith.constant dense<0xFF800000> : vector<1xf32>
    %669 = vector.multi_reduction <maximumf>, %668, %cst_214 [0] : vector<8x1xf32> to vector<1xf32>
    %670 = vector.shape_cast %669 : vector<1xf32> to vector<1x1xf32>
    %671 = vector.broadcast %670 : vector<1x1xf32> to vector<8x1xf32>
    %672 = arith.subf %668, %671 : vector<8x1xf32>
    %673 = math.exp %672 : vector<8x1xf32>
    %cst_215 = arith.constant dense<0.000000e+00> : vector<1xf32>
    %674 = vector.multi_reduction <add>, %673, %cst_215 [0] : vector<8x1xf32> to vector<1xf32>
    %675 = vector.shape_cast %674 : vector<1xf32> to vector<1x1xf32>
    %676 = vector.broadcast %675 : vector<1x1xf32> to vector<8x1xf32>
    %677 = arith.divf %673, %676 : vector<8x1xf32>
    %678 = vector.broadcast %677 : vector<8x1xf32> to vector<8x32xf32>
    %679 = arith.mulf %644, %678 : vector<8x32xf32>
    %cst_216 = arith.constant dense<0.000000e+00> : vector<32xf32>
    %680 = vector.multi_reduction <add>, %679, %cst_216 [0] : vector<8x32xf32> to vector<32xf32>
    %681 = vector.shape_cast %680 : vector<32xf32> to vector<1x32xf32>
    %682 = arith.truncf %659 : vector<16x32xf32> to vector<16x32xbf16>
    %cst_217 = arith.constant dense<0.000000e+00> : vector<16x32xf32>
    %683 = tpu.matmul %682, %494, %cst_217 {dimension_numbers = #tpu.dot_dimension_numbers<[1], [0], [0], [1], [0, 0, 1, 1], [], []>} : vector<16x32xbf16>, vector<32x32xbf16>, vector<16x32xf32> -> vector<16x32xf32>
    %684 = vector.broadcast %495 : vector<1x32xf32> to vector<16x32xf32>
    %685 = arith.addf %683, %684 : vector<16x32xf32>
    %686 = math.tanh %685 : vector<16x32xf32>
    %687 = vector.broadcast %496 : vector<1x32xf32> to vector<16x32xf32>
    %688 = arith.mulf %686, %687 : vector<16x32xf32>
    %cst_218 = arith.constant dense<0.000000e+00> : vector<16xf32>
    %689 = vector.multi_reduction <add>, %688, %cst_218 [1] : vector<16x32xf32> to vector<16xf32>
    %690 = vector.shape_cast %689 : vector<16xf32> to vector<16x1xf32>
    %cst_219 = arith.constant dense<0xFF800000> : vector<1xf32>
    %691 = vector.multi_reduction <maximumf>, %690, %cst_219 [0] : vector<16x1xf32> to vector<1xf32>
    %692 = vector.shape_cast %691 : vector<1xf32> to vector<1x1xf32>
    %693 = vector.broadcast %692 : vector<1x1xf32> to vector<16x1xf32>
    %694 = arith.subf %690, %693 : vector<16x1xf32>
    %695 = math.exp %694 : vector<16x1xf32>
    %cst_220 = arith.constant dense<0.000000e+00> : vector<1xf32>
    %696 = vector.multi_reduction <add>, %695, %cst_220 [0] : vector<16x1xf32> to vector<1xf32>
    %697 = vector.shape_cast %696 : vector<1xf32> to vector<1x1xf32>
    %698 = vector.broadcast %697 : vector<1x1xf32> to vector<16x1xf32>
    %699 = arith.divf %695, %698 : vector<16x1xf32>
    %700 = vector.broadcast %699 : vector<16x1xf32> to vector<16x32xf32>
    %701 = arith.mulf %659, %700 : vector<16x32xf32>
    %cst_221 = arith.constant dense<0.000000e+00> : vector<32xf32>
    %702 = vector.multi_reduction <add>, %701, %cst_221 [0] : vector<16x32xf32> to vector<32xf32>
    %703 = vector.shape_cast %702 : vector<32xf32> to vector<1x32xf32>
    %704 = tpu.concatenate %681, %703 in 1 : vector<1x32xf32>, vector<1x32xf32> -> vector<1x64xf32>
    %705 = tpu.concatenate %600, %704 in 0 : vector<1x64xf32>, vector<1x64xf32> -> vector<2x64xf32>
    %c0_222 = arith.constant 0 : index
    %c0_223 = arith.constant 0 : index
    %706 = vector.load %arg37[%c0_222, %c0_223] : memref<64x32xbf16, #tpu.memory_space<vmem>>, vector<64x32xbf16>
    %707 = arith.truncf %705 : vector<2x64xf32> to vector<2x64xbf16>
    %cst_224 = arith.constant dense<0.000000e+00> : vector<2x32xf32>
    %708 = tpu.matmul %707, %706, %cst_224 {dimension_numbers = #tpu.dot_dimension_numbers<[1], [0], [0], [1], [0, 0, 1, 1], [], []>} : vector<2x64xbf16>, vector<64x32xbf16>, vector<2x32xf32> -> vector<2x32xf32>
    %c0_225 = arith.constant 0 : index
    %c0_226 = arith.constant 0 : index
    %709 = vector.load %arg38[%c0_225, %c0_226] : memref<1x32xf32, #tpu.memory_space<vmem>>, vector<1x32xf32>
    %710 = vector.broadcast %709 : vector<1x32xf32> to vector<2x32xf32>
    %711 = arith.addf %708, %710 : vector<2x32xf32>
    %cst_227 = arith.constant 0.000000e+00 : f32
    %712 = vector.broadcast %cst_227 : f32 to vector<2x32xf32>
    %713 = arith.maximumf %711, %712 : vector<2x32xf32>
    %c0_228 = arith.constant 0 : index
    %c0_229 = arith.constant 0 : index
    %714 = vector.load %arg39[%c0_228, %c0_229] : memref<32x3xbf16, #tpu.memory_space<vmem>>, vector<32x3xbf16>
    %715 = arith.truncf %713 : vector<2x32xf32> to vector<2x32xbf16>
    %cst_230 = arith.constant dense<0.000000e+00> : vector<2x3xf32>
    %716 = tpu.matmul %715, %714, %cst_230 {dimension_numbers = #tpu.dot_dimension_numbers<[1], [0], [0], [1], [0, 0, 1, 1], [], []>} : vector<2x32xbf16>, vector<32x3xbf16>, vector<2x3xf32> -> vector<2x3xf32>
    %c0_231 = arith.constant 0 : index
    %c0_232 = arith.constant 0 : index
    %717 = vector.load %arg40[%c0_231, %c0_232] : memref<1x3xf32, #tpu.memory_space<vmem>>, vector<1x3xf32>
    %718 = vector.broadcast %717 : vector<1x3xf32> to vector<2x3xf32>
    %719 = arith.addf %716, %718 : vector<2x3xf32>
    %c0_233 = arith.constant 0 : index
    %c0_234 = arith.constant 0 : index
    %720 = vector.load %arg41[%c0_233, %c0_234] : memref<2x3xf32, #tpu.memory_space<vmem>>, vector<2x3xf32>
    tpu.vector_store %arg41[%c0_233, %c0_234], %719 {strides = array<i32>} : memref<2x3xf32, #tpu.memory_space<vmem>>, vector<2x3xf32>,
    return
  }
}

</mosaic_0001>

<bundles_post_ra>
// kernel: bert_multi_forward.1
= control target key start
LH: loop header
LB: loop body
LE: loop exit
PB: predicated region body
PF: predicated region fallthrough
CT: control target
= control target key end

     0   :  { %s5840_s6 = smov 1   ;;  %s5841_s10 = smov 2   ;;  %s7257_s0 = inlined_call_operand.smem [shape: u32[42], index: -1, kind: input, shape index: {}] }
   0x1   :  { %s5908_s5 = sld [smem:[%s7257_s0]]   ;;  %s5842_s14 = smov 3  }
   0x2   :  { %s5913_s9 = sld [smem:[%s7257_s0 + %s5840_s6]]   ;;  %s5843_s18 = smov 4  }
   0x3   :  { %s5918_s13 = sld [smem:[%s7257_s0 + %s5841_s10]]   ;;  %s5844_s22 = smov 5  }
   0x4   :  { %s5923_s17 = sld [smem:[%s7257_s0 + %s5842_s14]]   ;;  %s5845_s26 = smov 6  }
   0x5   :  { %s5928_s21 = sld [smem:[%s7257_s0 + %s5843_s18]]   ;;  %s5846_s30 = smov 7  }
   0x6   :  { %s5933_s25 = sld [smem:[%s7257_s0 + %s5844_s22]]   ;;  %s5847_s4 = smov 8  }
   0x7   :  { %s5938_s29 = sld [smem:[%s7257_s0 + %s5845_s26]]   ;;  %s5848_s10 = smov 9  }
   0x8   :  { %s5943_s3 = sld [smem:[%s7257_s0 + %s5846_s30]]   ;;  %s5849_s15 = smov 10  }
   0x9   :  { %s5948_s8 = sld [smem:[%s7257_s0 + %s5847_s4]]   ;;  %s5850_s20 = smov 11  }
   0xa   :  { %s5953_s14 = sld [smem:[%s7257_s0 + %s5848_s10]]   ;;  %s5851_s26 = smov 12  }
   0xb   :  { %s5958_s19 = sld [smem:[%s7257_s0 + %s5849_s15]]   ;;  %s5852_s1 = smov 13  }
   0xc   :  { %s5963_s24 = sld [smem:[%s7257_s0 + %s5850_s20]]   ;;  %s5853_s7 = smov 14  }
   0xd   :  { %s5968_s30 = sld [smem:[%s7257_s0 + %s5851_s26]]   ;;  %s5854_s15 = smov 15  }
   0xe   :  { %s5973_s6 = sld [smem:[%s7257_s0 + %s5852_s1]]   ;;  %s5855_s22 = smov 16  }
   0xf   :  { %7268 = sst [smem:[#allocation5_spill]] %s5948_s8  ;;  %s5856_s28 = smov 17  }
  0x10   :  { %7269 = sst [smem:[#allocation6_spill]] %s5953_s14 }
  0x11   :  { %7270 = sst [smem:[#allocation7_spill]] %s5958_s19 }
  0x12   :  { %s5978_s12 = sld [smem:[%s7257_s0 + %s5853_s7]]   ;;  %s5857_s7 = smov 18  }
  0x13   :  { %s5983_s20 = sld [smem:[%s7257_s0 + %s5854_s15]]   ;;  %s5858_s15 = smov 19  }
  0x14   :  { %s5988_s27 = sld [smem:[%s7257_s0 + %s5855_s22]]   ;;  %s5859_s22 = smov 20  }
  0x15   :  { %s5993_s4 = sld [smem:[%s7257_s0 + %s5856_s28]]   ;;  %s5860_s28 = smov 21  }
  0x16   :  { %s5998_s19 = sld [smem:[%s7257_s0 + %s5857_s7]]   ;;  %s5861_s7 = smov 22  }
  0x17   :  { %s6003_s14 = sld [smem:[%s7257_s0 + %s5858_s15]]   ;;  %s5862_s15 = smov 23  }
  0x18   :  { %s6008_s8 = sld [smem:[%s7257_s0 + %s5859_s22]]   ;;  %s5863_s22 = smov 24  }
  0x1b   :  { %7271 = sst [smem:[#allocation8_spill]] %s5993_s4 }
  0x1c   :  { %7272 = sst [smem:[#allocation9_spill]] %s5998_s19 }
  0x1d   :  { %7273 = sst [smem:[#allocation10_spill]] %s6003_s14 }
  0x1e   :  { %7274 = sst [smem:[#allocation11_spill]] %s6008_s8 }
  0x1f   :  { %s6013_s4 = sld [smem:[%s7257_s0 + %s5860_s28]]   ;;  %s5864_s28 = smov 25  }
  0x20   :  { %s6018_s19 = sld [smem:[%s7257_s0 + %s5861_s7]]   ;;  %s5865_s7 = smov 26  }
  0x21   :  { %s6023_s14 = sld [smem:[%s7257_s0 + %s5862_s15]]   ;;  %s5866_s15 = smov 27  }
  0x22   :  { %s6028_s8 = sld [smem:[%s7257_s0 + %s5863_s22]]   ;;  %s5867_s22 = smov 28  }
  0x25   :  { %7275 = sst [smem:[#allocation12_spill]] %s6013_s4 }
  0x26   :  { %7276 = sst [smem:[#allocation13_spill]] %s6018_s19 }
  0x27   :  { %7277 = sst [smem:[#allocation14_spill]] %s6023_s14 }
  0x28   :  { %7278 = sst [smem:[#allocation15_spill]] %s6028_s8 }
  0x29   :  { %s6033_s4 = sld [smem:[%s7257_s0 + %s5864_s28]]   ;;  %s5868_s28 = smov 29  }
  0x2a   :  { %s6038_s19 = sld [smem:[%s7257_s0 + %s5865_s7]]   ;;  %s5869_s7 = smov 30  }
  0x2b   :  { %s6043_s14 = sld [smem:[%s7257_s0 + %s5866_s15]]   ;;  %s5870_s15 = smov 31  }
  0x2c   :  { %s6048_s8 = sld [smem:[%s7257_s0 + %s5867_s22]]   ;;  %s5871_s22 = smov 32  }
  0x2f   :  { %7279 = sst [smem:[#allocation16_spill]] %s6033_s4 }
  0x30   :  { %7280 = sst [smem:[#allocation17_spill]] %s6038_s19 }
  0x31   :  { %7281 = sst [smem:[#allocation18_spill]] %s6043_s14 }
  0x32   :  { %7282 = sst [smem:[#allocation19_spill]] %s6048_s8 }
  0x33   :  { %s6053_s4 = sld [smem:[%s7257_s0 + %s5868_s28]]   ;;  %s5872_s28 = smov 33  }
  0x34   :  { %s6058_s19 = sld [smem:[%s7257_s0 + %s5869_s7]]   ;;  %s5873_s7 = smov 34  }
  0x35   :  { %s6063_s14 = sld [smem:[%s7257_s0 + %s5870_s15]]   ;;  %s5874_s15 = smov 35  }
  0x36   :  { %s6068_s8 = sld [smem:[%s7257_s0 + %s5871_s22]]   ;;  %s5875_s22 = smov 36  }
  0x39   :  { %7283 = sst [smem:[#allocation20_spill]] %s6053_s4 }
  0x3a   :  { %7284 = sst [smem:[#allocation21_spill]] %s6058_s19 }
  0x3b   :  { %7285 = sst [smem:[#allocation22_spill]] %s6063_s14 }
  0x3c   :  { %7286 = sst [smem:[#allocation23_spill]] %s6068_s8 }
  0x3d   :  { %s6073_s4 = sld [smem:[%s7257_s0 + %s5872_s28]]   ;;  %s5876_s28 = smov 37  }
  0x3e   :  { %s6078_s19 = sld [smem:[%s7257_s0 + %s5873_s7]]   ;;  %s5877_s7 = smov 38  }
  0x3f   :  { %s6083_s14 = sld [smem:[%s7257_s0 + %s5874_s15]]   ;;  %s5878_s15 = smov 39  }
  0x40   :  { %s6088_s8 = sld [smem:[%s7257_s0 + %s5875_s22]]   ;;  %s5879_s22 = smov 40  }
  0x43   :  { %7287 = sst [smem:[#allocation24_spill]] %s6073_s4 }
  0x44   :  { %7288 = sst [smem:[#allocation25_spill]] %s6078_s19 }
  0x45   :  { %7289 = sst [smem:[#allocation26_spill]] %s6083_s14 }
  0x46   :  { %7290 = sst [smem:[#allocation27_spill]] %s6088_s8 }
  0x47   :  { %s6093_s4 = sld [smem:[%s7257_s0 + %s5876_s28]]   ;;  %s5880_s28 = smov 41  }
  0x48   :  { %s6098_s19 = sld [smem:[%s7257_s0 + %s5877_s7]]  }
  0x49   :  { %s6103_s14 = sld [smem:[%s7257_s0 + %s5878_s15]]  }
  0x4a   :  { %s6108_s8 = sld [smem:[%s7257_s0 + %s5879_s22]]  }
  0x4d   :  { %7291 = sst [smem:[#allocation28_spill]] %s6093_s4 }
  0x4e   :  { %s6113_s4 = sld [smem:[%s7257_s0 + %s5880_s28]]  }
  0x4f   :  { %v5607_v0 = vld [vmem:[%s5913_s9] sm:$0xff]   ;;  %v5881_v1 = vmov 0.0   ;;  %v5608_v2 = vld [vmem:[%s5913_s9 + $0x8] ss:$0 sps:$4 sm:$0xff]   ;;  %vm198_vm0 = vcmask 1043456   ;;  %vm5882_vm1 = vmmov 0  }
  0x50   :  { %4970 = vmatprep.subr.bf16.mxu0 %v5881_v1  ;;  %4978 = vmatprep.subr.bf16.mxu1 %v5881_v1  ;;  %v172_v3 = vld [vmem:[%s5908_s5] sm:$0xff]  ;;  %v173_v4 = vld [vmem:[%s5908_s5 + $0x8] sm:$0xff]  ;;  %v200_v6 = vsel %vm198_vm0, %v5608_v2, 0  ;;  %vm194_vm2 = vcmask 195584   ;;  %v5883_v7 = vmov 0  }
  0x51   :  { %4971 = vmatpush3.bf16.msra.mxu0 %v5607_v0  ;;  %4974 = vmatprep.mubr.msk.bf16.mxu0 %vm5882_vm1, %v5881_v1  ;;  %v245_v5 = vld [vmem:[%s5923_s17] sm:$0xff]  ;;  %v177_v9 = vpack.c.bf16 %v173_v4, %v172_v3 }
  0x52   :  { %4972 = vmatprep.subr.bf16.mxu0 %v5881_v1  ;;  %5530 = vset.pattern.permute.xlu0 %v5883_v7  ;;  %v246_v8 = vld [vmem:[%s5928_s21] sm:$0xff] }
  0x53   :  { %249 = vperm.xlu0 %5530, %v245_v5   ;;  %4982 = vmatprep.mubr.msk.bf16.mxu1 %vm5882_vm1, %v5881_v1 }
  0x54   :  { %5531 = vset.pattern.permute.xlu1 %v5883_v7 }
  0x55   :  { %4973 = vmatpush3.bf16.msra.mxu0 %v200_v6 }
  0x56   :  { %4986 = vmatprep.subr.bf16.mxu0 %v5881_v1 }
  0x57   :  { %256 = vperm.xlu0 %5530, %v246_v8  }
  0x58   :  { %4975 = vmatmul.mubr.msk.bf16.vlgmr.msra.gmra.mrb[0].mxu0 %vm194_vm2, %v177_v9 }
  0x59   :  { %4988 = vmatprep.mubr.msk.bf16.mxu0 %vm5882_vm1, %v5881_v1 }
  0x5a   :  { %88 = vsyncpa [#allocation3], 0  ;;  %v5609_v10 = vld [vmem:[%s5933_s25] sm:$0xff]   ;;  %v5610_v11 = vld [vmem:[%s5933_s25 + $0x8] sm:$0xff]   ;;  %vm290_vm3 = vcmask 261120   ;;  %s5884_s0 = smov 96  }
  0x5b   :  { %4979 = vmatpush3.bf16.msra.mxu1 %v5609_v10  ;;  %v4659_v12 = vld [vmem:[%s5918_s13] ss:$0 sm:$0xff]  ;;  %s5885_s5 = smov 120   ;;  %s5886_s9 = smov 88   ;;  %vm341_vm4 = vcmask 64512   ;;  %vm1398_vm6 = vcmask 408576  }
  0x5c   :  { %4980 = vmatprep.subr.bf16.mxu1 %v5881_v1  ;;  %v4663_v28 = vld [vmem:[%s5938_s29] ss:$0 sm:$0xff]  ;;  %s5887_s13 = smov 112   ;;  %s5888_s17 = smov 80   ;;  %vm1411_vm7 = vcmask 1041408   ;;  %vm792_vm11 = vcmask 130048  }
  0x5d   :  { %s5889_s21 = smov 104   ;;  %s5890_s25 = smov 72   ;;  %vm2973_vm12 = vcmask 523264   ;;  %vm3375_vm13 = vcmask 785408   ;;  %vm4449_vm14 = vcmask 1040384   ;;  %vm4602_vm15 = vcmask 17408  }
  0x5e   :  { %s5891_s29 = smov 56   ;;  %s5892_s7 = smov 64  }
  0x5f   :  { %4981 = vmatpush3.bf16.msra.mxu1 %v5610_v11  ;;  %s5893_s10 = smov 48   ;;  %s5894_s11 = smov 40  }
  0x60   :  { %4992 = vmatprep.subr.bf16.mxu1 %v5881_v1  ;;  %s7296_s15 = sld [smem:[#allocation13_spill]]  ;;  %s7297_s16 = sld [smem:[#allocation15_spill]] }
  0x61   :  { %s7298_s18 = sld [smem:[#allocation11_spill]]  ;;  %s7299_s22 = sld [smem:[#allocation12_spill]] }
  0x62   :  { %s7300_s23 = sld [smem:[#allocation14_spill]]  ;;  %s7301_s26 = sld [smem:[#allocation16_spill]] }
  0x63   :  { %s7302_s28 = sld [smem:[#allocation19_spill]]  ;;  %s7303_s1 = sld [smem:[#allocation20_spill]] }
  0x64   :  { %s7304_s2 = sld [smem:[#allocation6_spill]] }
  0xd2   :  { %v250_v16 = vpop.permute.xlu0 %249 }
  0xd6   :  { %v257_v24 = vpop.permute.xlu0 %256 }
 0x12b   :  { %v236_v13 = vpop.f32.mrb[0].mxu0 }
 0x12c   :  { %v237_v14 = vadd.f32 %v4659_v12, %v236_v13  ;;  %v4976_v15 = vpop.f32.mrb[1].mxu0 }
 0x12d   :  { %v239_v17 = vpop.f32.mrb[2].mxu0 }
 0x12e   :  { %v243_v18 = vmax.f32 %v237_v14, 0.0  ;;  %v240_v19 = vadd.f32 %v4659_v12, %v239_v17  ;;  %v4977_v20 = vpop.f32.mrb[3].mxu0 }
 0x130   :  { %v252_v21 = vmul.f32 %v250_v16, %v243_v18  ;;  %v244_v22 = vmax.f32 %v240_v19, 0.0 }
 0x132   :  { %v253_v23 = vmul.f32 %v250_v16, %v244_v22  ;;  %v6138_v25 = vadd.f32 %v257_v24, %v252_v21 }
 0x134   :  { %v6140_v26 = vadd.f32 %v257_v24, %v253_v23 }
 0x136   :  { %v271_v27 = vpack.c.bf16 %v6140_v26, %v6138_v25 }
 0x138   :  { %4983 = vmatmul.mubr.msk.bf16.vlgmr.msra.gmra.mrb[0].mxu1 %vm290_vm3, %v271_v27 }
 0x139   :  { %4994 = vmatprep.mubr.msk.bf16.mxu1 %vm5882_vm1, %v5881_v1 }
 0x20b   :  { %v328_v29 = vpop.f32.mrb[0].mxu1 }
 0x20c   :  { %v329_v30 = vadd.f32 %v4663_v28, %v328_v29  ;;  %v4984_v31 = vpop.f32.mrb[1].mxu1 }
 0x20d   :  { %v331_v32 = vpop.f32.mrb[2].mxu1 }
 0x20e   :  { %v335_v33 = vmul.f32 0.35355338, %v329_v30  ;;  %v6148_v34 = vpack.c.bf16 %v329_v30, %v329_v30  ;;  %v4985_v35 = vpop.f32.mrb[3].mxu1  ;;  %v332_v37 = vadd.f32 %v4663_v28, %v331_v32 }
 0x210   :  { %v336_v36 = vpack.c.bf16 %v335_v33, %v335_v33  ;;  %339 = vrot.lane.b32.xlu1 %v6148_v34, %s5884_s0  ;;  %v6159_v38 = vpack.c.bf16 %v332_v37, %v332_v37  ;;  %v795_v39 = vmul.f32 0.35355338, %v332_v37 }
 0x212   :  { %449 = vrot.lane.b32.xlu0 %v336_v36, %s5885_s5  ;;  %v796_v40 = vpack.c.bf16 %v795_v39, %v795_v39 }
 0x214   :  { %451 = vrot.lane.b32.xlu1 %v6148_v34, %s5886_s9 }
 0x216   :  { %559 = vrot.lane.b32.xlu0 %v336_v36, %s5887_s13 }
 0x218   :  { %561 = vrot.lane.b32.xlu1 %v6148_v34, %s5888_s17 }
 0x21a   :  { %669 = vrot.lane.b32.xlu0 %v336_v36, %s5889_s21 }
 0x21c   :  { %671 = vrot.lane.b32.xlu1 %v6148_v34, %s5890_s25 }
 0x21e   :  { %910 = vrot.lane.b32.xlu0 %v6159_v38, %s5886_s9 }
 0x220   :  { %799 = vrot.lane.b32.xlu1 %v6159_v38, %s5884_s0 }
 0x222   :  { %1020 = vrot.lane.b32.xlu0 %v6159_v38, %s5888_s17 }
 0x224   :  { %908 = vrot.lane.b32.xlu1 %v796_v40, %s5885_s5 }
 0x226   :  { %1130 = vrot.lane.b32.xlu0 %v6159_v38, %s5890_s25 }
 0x228   :  { %1018 = vrot.lane.b32.xlu1 %v796_v40, %s5887_s13 }
 0x22c   :  { %1128 = vrot.lane.b32.xlu1 %v796_v40, %s5889_s21 }
 0x282   :  { %v340_v41 = vpop.permute.xlu1 %339 }
 0x283   :  { %v346_v42 = vsel %vm341_vm4, %v340_v41, 0 }
 0x284   :  { %4987 = vmatpush3.bf16.xpose.msra.mxu0 %v346_v42  ;;  %v450_v46 = vpop.permute.xlu0 %449 }
 0x285   :  { %4998 = vmatprep.subr.bf16.mxu0 %v5881_v1 }
 0x286   :  { %v452_v43 = vpop.permute.xlu1 %451 }
 0x287   :  { %v457_v44 = vsel %vm341_vm4, %v452_v43, 0 }
 0x288   :  { %v560_v49 = vpop.permute.xlu0 %559 }
 0x28a   :  { %v562_v45 = vpop.permute.xlu1 %561 }
 0x28b   :  { %4989 = vmatmul.mubr.msk.bf16.vlgmr.msra.gmra.mrb[4].mxu0 %vm341_vm4, %v336_v36  ;;  %v567_v47 = vsel %vm341_vm4, %v562_v45, 0 }
 0x28c   :  { %4999 = vmatpush3.bf16.xpose.msra.mxu0 %v457_v44  ;;  %5000 = vmatprep.mubr.msk.bf16.mxu0 %vm5882_vm1, %v5881_v1  ;;  %v670_v52 = vpop.permute.xlu0 %669 }
 0x28d   :  { %5010 = vmatprep.subr.bf16.mxu0 %v5881_v1 }
 0x28e   :  { %v672_v48 = vpop.permute.xlu1 %671 }
 0x28f   :  { %v677_v50 = vsel %vm341_vm4, %v672_v48, 0 }
 0x290   :  { %v911_v54 = vpop.permute.xlu0 %910 }
 0x291   :  { %v916_v55 = vsel %vm341_vm4, %v911_v54, 0 }
 0x292   :  { %v800_v51 = vpop.permute.xlu1 %799 }
 0x293   :  { %5001 = vmatmul.mubr.msk.bf16.vlgmr.msra.gmra.mrb[8].mxu0 %vm341_vm4, %v450_v46  ;;  %v805_v53 = vsel %vm341_vm4, %v800_v51, 0 }
 0x294   :  { %5011 = vmatpush3.bf16.xpose.msra.mxu0 %v567_v47  ;;  %5012 = vmatprep.mubr.msk.bf16.mxu0 %vm5882_vm1, %v5881_v1  ;;  %v1021_v56 = vpop.permute.xlu0 %1020 }
 0x295   :  { %5022 = vmatprep.subr.bf16.mxu0 %v5881_v1  ;;  %v1026_v58 = vsel %vm341_vm4, %v1021_v56, 0 }
 0x296   :  { %v909_v57 = vpop.permute.xlu1 %908 }
 0x298   :  { %v1131_v59 = vpop.permute.xlu0 %1130 }
 0x299   :  { %v1136_v61 = vsel %vm341_vm4, %v1131_v59, 0 }
 0x29a   :  { %v1019_v60 = vpop.permute.xlu1 %1018 }
 0x29b   :  { %5013 = vmatmul.mubr.msk.bf16.vlgmr.msra.gmra.mrb[12].mxu0 %vm341_vm4, %v560_v49 }
 0x29c   :  { %5023 = vmatpush3.bf16.xpose.msra.mxu0 %v677_v50  ;;  %5024 = vmatprep.mubr.msk.bf16.mxu0 %vm5882_vm1, %v5881_v1 }
 0x29d   :  { %5034 = vmatprep.subr.bf16.mxu0 %v5881_v1 }
 0x29e   :  { %v1129_v62 = vpop.permute.xlu1 %1128 }
 0x2a3   :  { %5025 = vmatmul.mubr.msk.bf16.vlgmr.msra.gmra.mrb[16].mxu0 %vm341_vm4, %v670_v52 }
 0x2a4   :  { %5035 = vmatpush3.bf16.xpose.msra.mxu0 %v805_v53  ;;  %5036 = vmatprep.mubr.msk.bf16.mxu0 %vm5882_vm1, %v5881_v1 }
 0x2a5   :  { %5046 = vmatprep.subr.bf16.mxu0 %v5881_v1 }
 0x2ab   :  { %5037 = vmatmul.mubr.msk.bf16.vlgmr.msra.gmra.mrb[20].mxu0 %vm341_vm4, %v796_v40 }
 0x2ac   :  { %5047 = vmatpush3.bf16.xpose.msra.mxu0 %v916_v55  ;;  %5048 = vmatprep.mubr.msk.bf16.mxu0 %vm5882_vm1, %v5881_v1 }
 0x2ad   :  { %5058 = vmatprep.subr.bf16.mxu0 %v5881_v1 }
 0x2b3   :  { %5049 = vmatmul.mubr.msk.bf16.vlgmr.msra.gmra.mrb[24].mxu0 %vm341_vm4, %v909_v57 }
 0x2b4   :  { %5059 = vmatpush3.bf16.xpose.msra.mxu0 %v1026_v58  ;;  %5060 = vmatprep.mubr.msk.bf16.mxu0 %vm5882_vm1, %v5881_v1 }
 0x2b5   :  { %5070 = vmatprep.subr.bf16.mxu0 %v5881_v1 }
 0x2bb   :  { %5061 = vmatmul.mubr.msk.bf16.vlgmr.msra.gmra.mrb[28].mxu0 %vm341_vm4, %v1019_v60 }
 0x2bc   :  { %5071 = vmatpush3.bf16.xpose.msra.mxu0 %v1136_v61  ;;  %5072 = vmatprep.mubr.msk.bf16.mxu0 %vm5882_vm1, %v5881_v1 }
 0x2bd   :  { %5082 = vmatprep.subr.bf16.mxu0 %v5881_v1 }
 0x2c3   :  { %5073 = vmatmul.mubr.msk.bf16.vlgmr.msra.gmra.mrb[32].mxu0 %vm341_vm4, %v1129_v62 }
 0x2c4   :  { %5086 = vmatprep.mubr.msk.bf16.mxu0 %vm5882_vm1, %v5881_v1 }
 0x35e   :  { %v382_v63 = vpop.f32.mrb[4].mxu0 }
 0x35f   :  { %v4990_v0 = vpop.f32.mrb[5].mxu0  ;;  %v388_v2 = vsel %vm341_vm4, %v382_v63, -inf }
 0x360   :  { %389 = vmax.xlane.f32.xlu0 %v388_v2  ;;  %v385_v3 = vpop.f32.mrb[6].mxu0 }
 0x361   :  { %v4991_v4 = vpop.f32.mrb[7].mxu0 }
 0x366   :  { %v493_v5 = vpop.f32.mrb[8].mxu0 }
 0x367   :  { %v5002_v6 = vpop.f32.mrb[9].mxu0  ;;  %v499_v7 = vsel %vm341_vm4, %v493_v5, -inf }
 0x368   :  { %500 = vmax.xlane.f32.xlu1 %v499_v7  ;;  %v496_v8 = vpop.f32.mrb[10].mxu0 }
 0x369   :  { %v5003_v9 = vpop.f32.mrb[11].mxu0 }
 0x36e   :  { %v603_v10 = vpop.f32.mrb[12].mxu0 }
 0x36f   :  { %v5014_v11 = vpop.f32.mrb[13].mxu0  ;;  %v609_v12 = vsel %vm341_vm4, %v603_v10, -inf }
 0x370   :  { %610 = vmax.xlane.f32.xlu0 %v609_v12  ;;  %v606_v13 = vpop.f32.mrb[14].mxu0 }
 0x371   :  { %v5015_v14 = vpop.f32.mrb[15].mxu0 }
 0x376   :  { %v6217_v15 = vpop.f32.mrb[16].mxu0 }
 0x377   :  { %v5026_v16 = vpop.f32.mrb[17].mxu0  ;;  %v719_v17 = vsel %vm341_vm4, %v6217_v15, -inf }
 0x378   :  { %720 = vmax.xlane.f32.xlu0 %v719_v17  ;;  %v716_v18 = vpop.f32.mrb[18].mxu0 }
 0x379   :  { %v5027_v19 = vpop.f32.mrb[19].mxu0 }
 0x37e   :  { %v6221_v20 = vpop.f32.mrb[20].mxu0 }
 0x37f   :  { %v5038_v21 = vpop.f32.mrb[21].mxu0  ;;  %v847_v22 = vsel %vm341_vm4, %v6221_v20, -inf }
 0x380   :  { %848 = vmax.xlane.f32.xlu1 %v847_v22  ;;  %v844_v23 = vpop.f32.mrb[22].mxu0 }
 0x381   :  { %v5039_v24 = vpop.f32.mrb[23].mxu0  ;;  %v1363_v23 = vld [vmem:[%s5963_s24] sm:$0xff] }
 0x382   :  { %v1364_v24 = vld [vmem:[%s5963_s24 + $0x8] sm:$0xff] }
 0x386   :  { %v952_v27 = vpop.f32.mrb[24].mxu0 }
 0x387   :  { %v5050_v28 = vpop.f32.mrb[25].mxu0  ;;  %v958_v29 = vsel %vm341_vm4, %v952_v27, -inf }
 0x388   :  { %959 = vmax.xlane.f32.xlu0 %v958_v29  ;;  %v955_v30 = vpop.f32.mrb[26].mxu0  ;;  %v1365_v28 = vld [vmem:[%s5963_s24 + $0x10] sm:$0xff] }
 0x389   :  { %v5051_v31 = vpop.f32.mrb[27].mxu0 }
 0x38e   :  { %v1062_v32 = vpop.f32.mrb[28].mxu0 }
 0x38f   :  { %v5062_v33 = vpop.f32.mrb[29].mxu0  ;;  %v1068_v35 = vsel %vm341_vm4, %v1062_v32, -inf }
 0x390   :  { %1069 = vmax.xlane.f32.xlu1 %v1068_v35  ;;  %v1065_v36 = vpop.f32.mrb[30].mxu0 }
 0x391   :  { %v5063_v37 = vpop.f32.mrb[31].mxu0 }
 0x396   :  { %v6227_v39 = vpop.f32.mrb[32].mxu0 }
 0x397   :  { %v5074_v40 = vpop.f32.mrb[33].mxu0  ;;  %v1178_v43 = vsel %vm341_vm4, %v6227_v39, -inf }
 0x398   :  { %v1175_v41 = vpop.f32.mrb[34].mxu0 }
 0x399   :  { %v5075_v42 = vpop.f32.mrb[35].mxu0 }
 0x39e   :  { %511 = vrot.lane.b32.xlu0 %v6148_v34, %s5891_s29 }
 0x3a1   :  { %400 = vrot.lane.b32.xlu1 %v6148_v34, %s5892_s7 }
 0x3bd   :  { %1179 = vmax.xlane.f32.xlu0 %v1178_v43 }
 0x3ed   :  { %v390_v44 = vpop.xlane.xlu0 %389 }
 0x3ee   :  { %v391_v45 = vsub.f32 %v382_v63, %v390_v44 }
 0x3f0   :  { %v392_v46 = vmul.f32 1.442695, %v391_v45 }
 0x3f2   :  { %5643 = vpow2.f32 %v392_v46 }
 0x3f5   :  { %v501_v47 = vpop.xlane.xlu1 %500 }
 0x3f6   :  { %v502_v48 = vsub.f32 %v493_v5, %v501_v47 }
 0x3f8   :  { %v503_v49 = vmul.f32 1.442695, %v502_v48 }
 0x3fa   :  { %5645 = vpow2.f32 %v503_v49 }
 0x3fc   :  { %v6235_v50 = vpop.eup %5643 }
 0x3fd   :  { %v611_v51 = vpop.xlane.xlu0 %610  ;;  %v394_v52 = vsel %vm341_vm4, %v6235_v50, 0.0 }
 0x3fe   :  { %v612_v53 = vsub.f32 %v603_v10, %v611_v51  ;;  %395 = vadd.xlane.f32.xlu1 %v394_v52 }
 0x400   :  { %v613_v54 = vmul.f32 1.442695, %v612_v53 }
 0x402   :  { %5647 = vpow2.f32 %v613_v54 }
 0x404   :  { %v6239_v55 = vpop.eup %5645 }
 0x405   :  { %v505_v56 = vsel %vm341_vm4, %v6239_v55, 0.0  ;;  %v721_v62 = vpop.xlane.xlu0 %720 }
 0x406   :  { %506 = vadd.xlane.f32.xlu0 %v505_v56  ;;  %v722_v0 = vsub.f32 %v6217_v15, %v721_v62 }
 0x408   :  { %v723_v2 = vmul.f32 1.442695, %v722_v0 }
 0x40a   :  { %5649 = vpow2.f32 %v723_v2 }
 0x40c   :  { %v6243_v57 = vpop.eup %5647 }
 0x40d   :  { %v615_v58 = vsel %vm341_vm4, %v6243_v57, 0.0  ;;  %v849_v59 = vpop.xlane.xlu1 %848 }
 0x40e   :  { %616 = vadd.xlane.f32.xlu1 %v615_v58  ;;  %v850_v3 = vsub.f32 %v6221_v20, %v849_v59 }
 0x410   :  { %v851_v6 = vmul.f32 1.442695, %v850_v3 }
 0x412   :  { %5651 = vpow2.f32 %v851_v6  ;;  %v1389_v6 = vld [vmem:[%s5968_s30] sm:$0xff] }
 0x414   :  { %v6255_v9 = vpop.eup %5649 }
 0x415   :  { %v960_v4 = vpop.xlane.xlu0 %959  ;;  %v725_v10 = vsel %vm341_vm4, %v6255_v9, 0.0 }
 0x416   :  { %v961_v5 = vsub.f32 %v952_v27, %v960_v4  ;;  %v1366_v27 = vld [vmem:[%s5963_s24 + $0x18] sm:$0xff]  ;;  %s5895_s24 = smov 8  }
 0x418   :  { %v962_v8 = vmul.f32 1.442695, %v961_v5 }
 0x419   :  { %v512_v17 = vpop.permute.xlu0 %511 }
 0x41a   :  { %5653 = vpow2.f32 %v962_v8  ;;  %v517_v35 = vsel %vm198_vm0, %v512_v17, 0  ;;  %v1392_v17 = vld [vmem:[%s5968_s30 + $0x18] sm:$0xff] }
 0x41c   :  { %621 = vrot.lane.b32.xlu0 %v6148_v34, %s5893_s10  ;;  %v6259_v11 = vpop.eup %5651 }
 0x41d   :  { %v1070_v60 = vpop.xlane.xlu1 %1069  ;;  %v853_v13 = vsel %vm341_vm4, %v6259_v11, 0.0 }
 0x41e   :  { %v1071_v7 = vsub.f32 %v1062_v32, %v1070_v60 }
 0x41f   :  { %731 = vrot.lane.b32.xlu1 %v6148_v34, %s5894_s11 }
 0x420   :  { %v1072_v34 = vmul.f32 1.442695, %v1071_v7  ;;  %v1390_v7 = vld [vmem:[%s5968_s30 + $0x8] sm:$0xff] }
 0x421   :  { %v401_v61 = vpop.permute.xlu1 %400 }
 0x422   :  { %v406_v63 = vsel %vm198_vm0, %v401_v61, 0  ;;  %5655 = vpow2.f32 %v1072_v34  ;;  %v1379_v34 = vlaneseq }
 0x423   :  { %4993 = vmatpush3.bf16.msra.mxu1 %v406_v63 }
 0x424   :  { %5004 = vmatprep.subr.bf16.mxu1 %v5881_v1  ;;  %v6261_v12 = vpop.eup %5653 }
 0x425   :  { %v964_v15 = vsel %vm341_vm4, %v6261_v12, 0.0 }
 0x42c   :  { %v6265_v14 = vpop.eup %5655 }
 0x42d   :  { %v1074_v16 = vsel %vm341_vm4, %v6265_v14, 0.0 }
 0x43b   :  { %726 = vadd.xlane.f32.xlu0 %v725_v10  ;;  %v5458_v10 = vpack.c.bf16 %v1390_v7, %v1389_v6  ;;  %v1397_v6 = vld [vmem:[%s5973_s6 + $0x8] sm:$0xff]  ;;  %v1396_v7 = vld [vmem:[%s5973_s6] sm:$0xff]  ;;  %s5897_s6 = smov 16  }
 0x43f   :  { %854 = vadd.xlane.f32.xlu0 %v853_v13  ;;  %v1380_v13 = vand.u32 127, %v1379_v34 }
 0x443   :  { %965 = vadd.xlane.f32.xlu1 %v964_v15  ;;  %1075 = vadd.xlane.f32.xlu0 %v1074_v16  ;;  %v1391_v16 = vld [vmem:[%s5968_s30 + $0x10] sm:$0xff] }
 0x44a   :  { %v1180_v18 = vpop.xlane.xlu0 %1179 }
 0x44b   :  { %v1181_v19 = vsub.f32 %v6227_v39, %v1180_v18 }
 0x44d   :  { %v1182_v20 = vmul.f32 1.442695, %v1181_v19 }
 0x44f   :  { %5657 = vpow2.f32 %v1182_v20  ;;  %v5462_v20 = vpack.c.bf16 %v1392_v17, %v1391_v16 }
 0x454   :  { %970 = vrot.lane.b32.xlu1 %v6159_v38, %s5891_s29 }
 0x458   :  { %1080 = vrot.lane.b32.xlu1 %v6159_v38, %s5893_s10 }
 0x459   :  { %v6276_v21 = vpop.eup %5657 }
 0x45a   :  { %v1184_v22 = vsel %vm341_vm4, %v6276_v21, 0.0 }
 0x45b   :  { %1185 = vadd.xlane.f32.xlu0 %v1184_v22  ;;  %v1393_v22 = vld [vmem:[%s5968_s30 + $0x20] sm:$0xff] }
 0x45c   :  { %1190 = vrot.lane.b32.xlu1 %v6159_v38, %s5894_s11 }
 0x460   :  { %1368 = vperm.xlu1 %5531, %v1363_v23   ;;  %v1394_v23 = vld [vmem:[%s5968_s30 + $0x28] sm:$0xff] }
 0x464   :  { %1371 = vperm.xlu1 %5531, %v1364_v24   ;;  %v5466_v24 = vpack.c.bf16 %v1394_v23, %v1393_v22 }
 0x468   :  { %1377 = vperm.xlu1 %5531, %v1366_v27   ;;  %v1395_v27 = vld [vmem:[%s5968_s30 + $0x30] sm:$0x3]  ;;  %s5896_s30 = smov 24  }
 0x471   :  { %859 = vrot.lane.b32.xlu0 %v6159_v38, %s5892_s7 }
 0x475   :  { %1374 = vperm.xlu0 %5530, %v1365_v28  }
 0x48b   :  { %v396_v29 = vpop.xlane.xlu1 %395 }
 0x48c   :  { %5659 = vrcp.f32 %v396_v29 }
 0x493   :  { %v507_v30 = vpop.xlane.xlu0 %506 }
 0x494   :  { %5661 = vrcp.f32 %v507_v30 }
 0x496   :  { %v5660_v31 = vpop.eup %5659 }
 0x497   :  { %v398_v32 = vmul.f32 %v5660_v31, %v6235_v50  ;;  %v622_v39 = vpop.permute.xlu0 %621 }
 0x498   :  { %v627_v41 = vsel %vm198_vm0, %v622_v39, 0 }
 0x499   :  { %v399_v33 = vpack.c.bf16 %v398_v32, %v398_v32 }
 0x49b   :  { %4995 = vmatmul.mubr.msk.bf16.vlgmr.msra.gmra.mrb[4].mxu1 %vm341_vm4, %v399_v33  ;;  %v617_v36 = vpop.xlane.xlu1 %616 }
 0x49c   :  { %5005 = vmatpush3.bf16.msra.mxu1 %v517_v35  ;;  %5663 = vrcp.f32 %v617_v36  ;;  %5006 = vmatprep.mubr.msk.bf16.mxu1 %vm5882_vm1, %v5881_v1 }
 0x49d   :  { %5016 = vmatprep.subr.bf16.mxu1 %v5881_v1 }
 0x49e   :  { %v5662_v38 = vpop.eup %5661 }
 0x49f   :  { %v509_v37 = vmul.f32 %v5662_v38, %v6239_v55  ;;  %v732_v44 = vpop.permute.xlu1 %731 }
 0x4a0   :  { %v737_v46 = vsel %vm198_vm0, %v732_v44, 0 }
 0x4a1   :  { %v510_v40 = vpack.c.bf16 %v509_v37, %v509_v37 }
 0x4a3   :  { %5007 = vmatmul.mubr.msk.bf16.vlgmr.msra.gmra.mrb[8].mxu1 %vm341_vm4, %v510_v40 }
 0x4a4   :  { %5017 = vmatpush3.bf16.msra.mxu1 %v627_v41  ;;  %5018 = vmatprep.mubr.msk.bf16.mxu1 %vm5882_vm1, %v5881_v1 }
 0x4a5   :  { %5028 = vmatprep.subr.bf16.mxu1 %v5881_v1 }
 0x4a6   :  { %v5664_v42 = vpop.eup %5663 }
 0x4a7   :  { %v619_v43 = vmul.f32 %v5664_v42, %v6243_v57 }
 0x4a9   :  { %v620_v45 = vpack.c.bf16 %v619_v43, %v619_v43 }
 0x4ab   :  { %5019 = vmatmul.mubr.msk.bf16.vlgmr.msra.gmra.mrb[12].mxu1 %vm341_vm4, %v620_v45 }
 0x4ac   :  { %5029 = vmatpush3.bf16.msra.mxu1 %v737_v46  ;;  %5030 = vmatprep.mubr.msk.bf16.mxu1 %vm5882_vm1, %v5881_v1 }
 0x4ad   :  { %5040 = vmatprep.subr.bf16.mxu1 %v5881_v1 }
 0x4c8   :  { %v727_v47 = vpop.xlane.xlu0 %726 }
 0x4c9   :  { %5665 = vrcp.f32 %v727_v47 }
 0x4cc   :  { %v855_v51 = vpop.xlane.xlu0 %854 }
 0x4cd   :  { %5667 = vrcp.f32 %v855_v51 }
 0x4d0   :  { %v966_v52 = vpop.xlane.xlu1 %965  ;;  %v1076_v53 = vpop.xlane.xlu0 %1075 }
 0x4d1   :  { %5669 = vrcp.f32 %v966_v52 }
 0x4d2   :  { %5671 = vrcp.f32 %v1076_v53 }
 0x4d3   :  { %v5666_v48 = vpop.eup %5665 }
 0x4d4   :  { %v729_v49 = vmul.f32 %v5666_v48, %v6255_v9  ;;  %v971_v59 = vpop.permute.xlu1 %970 }
 0x4d5   :  { %v976_v62 = vsel %vm198_vm0, %v971_v59, 0 }
 0x4d6   :  { %v730_v50 = vpack.c.bf16 %v729_v49, %v729_v49 }
 0x4d7   :  { %v5668_v54 = vpop.eup %5667 }
 0x4d8   :  { %5031 = vmatmul.mubr.msk.bf16.vlgmr.msra.gmra.mrb[16].mxu1 %vm341_vm4, %v730_v50  ;;  %v857_v56 = vmul.f32 %v5668_v54, %v6259_v11  ;;  %v1081_v0 = vpop.permute.xlu1 %1080 }
 0x4d9   :  { %5042 = vmatprep.mubr.msk.bf16.mxu1 %vm5882_vm1, %v5881_v1  ;;  %v1086_v4 = vsel %vm198_vm0, %v1081_v0, 0 }
 0x4da   :  { %v858_v60 = vpack.c.bf16 %v857_v56, %v857_v56 }
 0x4db   :  { %v5670_v61 = vpop.eup %5669 }
 0x4dc   :  { %v968_v63 = vmul.f32 %v5670_v61, %v6261_v12  ;;  %v5672_v3 = vpop.eup %5671  ;;  %v1191_v8 = vpop.permute.xlu1 %1190 }
 0x4dd   :  { %v1078_v5 = vmul.f32 %v5672_v3, %v6265_v14  ;;  %v1196_v12 = vsel %vm198_vm0, %v1191_v8, 0 }
 0x4de   :  { %v969_v2 = vpack.c.bf16 %v968_v63, %v968_v63 }
 0x4df   :  { %v1079_v9 = vpack.c.bf16 %v1078_v5, %v1078_v5 }
 0x4e0   :  { %v1369_v15 = vpop.permute.xlu1 %1368 }
 0x4e1   :  { %vm1381_vm5 = vcmp.eq.s32.totalorder %v1369_v15, %v1380_v13 }
 0x4e2   :  { %v1385_v19 = vsel %vm1381_vm5, 1.0, %v5881_v1 }
 0x4e8   :  { %v1186_v55 = vpop.xlane.xlu0 %1185 }
 0x4e9   :  { %5673 = vrcp.f32 %v1186_v55 }
 0x4ec   :  { %v860_v57 = vpop.permute.xlu0 %859 }
 0x4ed   :  { %v865_v58 = vsel %vm198_vm0, %v860_v57, 0 }
 0x4ee   :  { %5041 = vmatpush3.bf16.msra.mxu1 %v865_v58 }
 0x4ef   :  { %5052 = vmatprep.subr.bf16.mxu1 %v5881_v1 }
 0x4f1   :  { %5043 = vmatmul.mubr.msk.bf16.vlgmr.msra.gmra.mrb[20].mxu1 %vm341_vm4, %v858_v60 }
 0x4f2   :  { %5053 = vmatpush3.bf16.msra.mxu1 %v976_v62  ;;  %5054 = vmatprep.mubr.msk.bf16.mxu1 %vm5882_vm1, %v5881_v1 }
 0x4f3   :  { %5064 = vmatprep.subr.bf16.mxu1 %v5881_v1  ;;  %v5674_v11 = vpop.eup %5673 }
 0x4f4   :  { %v1188_v14 = vmul.f32 %v5674_v11, %v6276_v21  ;;  %v1372_v21 = vpop.permute.xlu1 %1371  ;;  %v1375_v28 = vpop.permute.xlu0 %1374 }
 0x4f5   :  { %vm1382_vm8 = vcmp.eq.s32.totalorder %v1372_v21, %v1380_v13  ;;  %vm1383_vm9 = vcmp.eq.s32.totalorder %v1375_v28, %v1380_v13 }
 0x4f6   :  { %v1189_v18 = vpack.c.bf16 %v1188_v14, %v1188_v14  ;;  %v1386_v30 = vsel %vm1382_vm8, 1.0, %v5881_v1  ;;  %v1387_v31 = vsel %vm1383_vm9, 1.0, %v5881_v1 }
 0x4f8   :  { %v1378_v29 = vpop.permute.xlu1 %1377 }
 0x4f9   :  { %5055 = vmatmul.mubr.msk.bf16.vlgmr.msra.gmra.mrb[24].mxu1 %vm341_vm4, %v969_v2  ;;  %vm1384_vm10 = vcmp.eq.s32.totalorder %v1378_v29, %v1380_v13 }
 0x4fa   :  { %5065 = vmatpush3.bf16.msra.mxu1 %v1086_v4  ;;  %5066 = vmatprep.mubr.msk.bf16.mxu1 %vm5882_vm1, %v5881_v1  ;;  %v1388_v32 = vsel %vm1384_vm10, 1.0, %v5881_v1 }
 0x4fb   :  { %5076 = vmatprep.subr.bf16.mxu1 %v5881_v1 }
 0x501   :  { %5067 = vmatmul.mubr.msk.bf16.vlgmr.msra.gmra.mrb[28].mxu1 %vm341_vm4, %v1079_v9 }
 0x502   :  { %5077 = vmatpush3.bf16.msra.mxu1 %v1196_v12  ;;  %5078 = vmatprep.mubr.msk.bf16.mxu1 %vm5882_vm1, %v5881_v1 }
 0x503   :  { %5459 = vmatprep.subr.bf16.mxu1 %v5458_v10 }
 0x509   :  { %5079 = vmatmul.mubr.msk.bf16.vlgmr.msra.gmra.mrb[32].mxu1 %vm341_vm4, %v1189_v18 }
 0x50a   :  { %5461 = vmatpush3.bf16.msra.mxu1 %v5458_v10  ;;  %5104 = vmatprep.mubr.msk.f32.mxu1 %vm1398_vm6, %v1385_v19 }
 0x50b   :  { %5463 = vmatprep.subr.bf16.mxu1 %v5462_v20 }
 0x50e   :  { %5465 = vmatpush3.bf16.msra.mxu1 %v5462_v20 }
 0x50f   :  { %5467 = vmatprep.subr.bf16.mxu1 %v5466_v24 }
 0x512   :  { %5469 = vmatpush3.bf16.msra.mxu1 %v5466_v24 }
 0x513   :  { %5102 = vmatprep.subr.msk.mxu1 %vm1411_vm7, %v1395_v27 }
 0x516   :  { %5103 = vmatpush3.msk.msra.mxu1 %vm1411_vm7, %v1395_v27 }
 0x517   :  { %5105 = vmatmul.mubr.msk.f32.vlgmr.msra.gmra.mrb[36].mxu1 %vm1398_vm6, %v1386_v30  ;;  %5118 = vmatprep.subr.bf16.mxu1 %v5881_v1 }
 0x518   :  { %5107 = vmatprep.mubr.msk.f32.mxu1 %vm1398_vm6, %v1387_v31 }
 0x51b   :  { %5108 = vmatmul.mubr.msk.f32.gmra.mrb[38].mxu1 %vm1398_vm6, %v1388_v32 }
 0x51c   :  { %5120 = vmatprep.mubr.msk.bf16.mxu1 %vm5882_vm1, %v5881_v1 }
 0x56e   :  { %v6349_v33 = vpop.f32.mrb[4].mxu1 }
 0x56f   :  { %v4996_v35 = vpop.f32.mrb[5].mxu1 }
 0x570   :  { %v445_v36 = vpop.f32.mrb[6].mxu1 }
 0x571   :  { %v4997_v38 = vpop.f32.mrb[7].mxu1 }
 0x576   :  { %v553_v37 = vpop.f32.mrb[8].mxu1 }
 0x577   :  { %v5008_v39 = vpop.f32.mrb[9].mxu1 }
 0x578   :  { %v556_v40 = vpop.f32.mrb[10].mxu1 }
 0x579   :  { %v5009_v41 = vpop.f32.mrb[11].mxu1 }
 0x57e   :  { %v6351_v42 = vpop.f32.mrb[12].mxu1 }
 0x57f   :  { %v5020_v43 = vpop.f32.mrb[13].mxu1 }
 0x580   :  { %v666_v44 = vpop.f32.mrb[14].mxu1  ;;  %v5611_v43 = vld [vmem:[%s5943_s3] sm:$0xff]  }
 0x581   :  { %v5021_v45 = vpop.f32.mrb[15].mxu1  ;;  %5083 = vmatpush3.bf16.msra.mxu0 %v5611_v43  ;;  %v5612_v44 = vld [vmem:[%s5943_s3 + $0x8] sm:$0xff]   ;;  %s7292_s3 = sld [smem:[#allocation5_spill]] }
 0x582   :  { %5084 = vmatprep.subr.bf16.mxu0 %v5881_v1  ;;  %v5613_v45 = vld [vmem:[%s5988_s27] sm:$0xff]  }
 0x585   :  { %5085 = vmatpush3.bf16.msra.mxu0 %v5612_v44 }
 0x586   :  { %5110 = vmatprep.subr.bf16.mxu0 %v5613_v45 }
 0x5ab   :  { %v6353_v46 = vpop.f32.mrb[16].mxu1 }
 0x5ac   :  { %v5032_v47 = vpop.f32.mrb[17].mxu1 }
 0x5ad   :  { %v776_v48 = vpop.f32.mrb[18].mxu1 }
 0x5ae   :  { %v5033_v49 = vpop.f32.mrb[19].mxu1 }
 0x5c4   :  { %v6355_v50 = vpop.f32.mrb[20].mxu1 }
 0x5c5   :  { %v5044_v51 = vpop.f32.mrb[21].mxu1 }
 0x5c6   :  { %v904_v52 = vpop.f32.mrb[22].mxu1 }
 0x5c7   :  { %v5045_v53 = vpop.f32.mrb[23].mxu1 }
 0x5cc   :  { %v1012_v54 = vpop.f32.mrb[24].mxu1 }
 0x5cd   :  { %v5532_v55 = vpack.i.bf16 %v1012_v54, %v553_v37  ;;  %v5056_v56 = vpop.f32.mrb[25].mxu1 }
 0x5ce   :  { %v1015_v57 = vpop.f32.mrb[26].mxu1 }
 0x5cf   :  { %v5057_v58 = vpop.f32.mrb[27].mxu1 }
 0x5d4   :  { %v1122_v59 = vpop.f32.mrb[28].mxu1 }
 0x5d5   :  { %v5537_v60 = vpack.i.bf16 %v1122_v59, %v6351_v42  ;;  %v5068_v61 = vpop.f32.mrb[29].mxu1 }
 0x5d6   :  { %v1125_v62 = vpop.f32.mrb[30].mxu1 }
 0x5d7   :  { %v5069_v63 = vpop.f32.mrb[31].mxu1 }
 0x5dc   :  { %v1232_v0 = vpop.f32.mrb[32].mxu1 }
 0x5dd   :  { %v5542_v2 = vpack.i.bf16 %v1232_v0, %v6353_v46  ;;  %v5080_v3 = vpop.f32.mrb[33].mxu1 }
 0x5de   :  { %v1235_v4 = vpop.f32.mrb[34].mxu1 }
 0x5df   :  { %v5081_v5 = vpop.f32.mrb[35].mxu1 }
 0x5ea   :  { %v5106_v8 = vpop.f32.mrb[36].mxu1 }
 0x5eb   :  { %v1487_v34 = vadd.f32 %v5106_v8, %v1397_v6  ;;  %v1481_v9 = vpop.f32.mrb[37].mxu1  ;;  %v4694_v8 = vld [vmem:[%s5978_s12] ss:$0 sm:$0xff]  ;;  %s7293_s12 = sld [smem:[#allocation8_spill]] }
 0x5ec   :  { %v1482_v10 = vadd.f32 %v1481_v9, %v1396_v7 }
 0x5ed   :  { %v1505_v11 = vsel %vm290_vm3, %v1487_v34, 0.0 }
 0x5ee   :  { %1506 = vadd.xlane.f32.xlu1 %v1505_v11  ;;  %v5109_v12 = vpop.f32.mrb[38].mxu1  ;;  %v1502_v13 = vsel %vm290_vm3, %v1482_v10, 0.0 }
 0x5ef   :  { %1503 = vadd.xlane.f32.xlu0 %v1502_v13  ;;  %v1491_v14 = vpop.f32.mrb[39].mxu1  ;;  %v1497_v16 = vadd.f32 %v5109_v12, %v1397_v6 }
 0x5f0   :  { %v1492_v15 = vadd.f32 %v1491_v14, %v1396_v7  ;;  %v4695_v14 = vld [vmem:[%s5983_s20] ss:$0 sm:$0xff]  ;;  %s7294_s20 = sld [smem:[#allocation9_spill]] }
 0x5f1   :  { %v1511_v18 = vsel %vm290_vm3, %v1497_v16, 0.0 }
 0x5f2   :  { %v1508_v17 = vsel %vm290_vm3, %v1492_v15, 0.0 }
 0x5f3   :  { %1509 = vadd.xlane.f32.xlu0 %v1508_v17 }
 0x5f7   :  { %1512 = vadd.xlane.f32.xlu0 %v1511_v18 }
 0x5ff   :  { %5533 = vrot.lane.b32.xlu1 %v5532_v55, %s5895_s24 }
 0x67b   :  { %v1507_v19 = vpop.xlane.xlu1 %1506 }
 0x67c   :  { %v1515_v20 = vmul.f32 0.03125, %v1507_v19  ;;  %v1504_v22 = vpop.xlane.xlu0 %1503 }
 0x67d   :  { %v1514_v23 = vmul.f32 0.03125, %v1504_v22 }
 0x67e   :  { %v6366_v24 = vsub.f32 %v1487_v34, %v1515_v20 }
 0x67f   :  { %v6368_v21 = vsub.f32 %v1482_v10, %v1514_v23  ;;  %v5534_v46 = vpop.permute.xlu1 %5533 }
 0x680   :  { %v1510_v27 = vpop.xlane.xlu0 %1509  ;;  %v1523_v28 = vmul.f32 %v6366_v24, %v6366_v24  ;;  %v5536_v59 = vunpack.i.h.bf16 %v5534_v46 }
 0x681   :  { %v1516_v29 = vmul.f32 0.03125, %v1510_v27  ;;  %v1522_v30 = vmul.f32 %v6368_v21, %v6368_v21 }
 0x682   :  { %v1529_v31 = vsel %vm290_vm3, %v1523_v28, 0.0  ;;  %v1250_v4 = vsel %vm341_vm4, %v6355_v50, %v5536_v59 }
 0x683   :  { %v6375_v32 = vsub.f32 %v1492_v15, %v1516_v29  ;;  %1530 = vadd.xlane.f32.xlu0 %v1529_v31  ;;  %v1526_v35 = vsel %vm290_vm3, %v1522_v30, 0.0 }
 0x684   :  { %1527 = vadd.xlane.f32.xlu1 %v1526_v35  ;;  %v1513_v36 = vpop.xlane.xlu0 %1512 }
 0x685   :  { %v1517_v38 = vmul.f32 0.03125, %v1513_v36  ;;  %v1524_v37 = vmul.f32 %v6375_v32, %v6375_v32  ;;  %v4683_v36 = vld [vmem:[%s7292_s3] ss:$0 sm:$0xff] }
 0x687   :  { %v6380_v39 = vsub.f32 %v1497_v16, %v1517_v38  ;;  %v1532_v40 = vsel %vm290_vm3, %v1524_v37, 0.0 }
 0x688   :  { %1533 = vadd.xlane.f32.xlu1 %v1532_v40  ;;  %v4696_v40 = vld [vmem:[%s7293_s12] ss:$0 sm:$0xff] }
 0x689   :  { %v1525_v41 = vmul.f32 %v6380_v39, %v6380_v39 }
 0x68b   :  { %v1535_v42 = vsel %vm290_vm3, %v1525_v41, 0.0 }
 0x68c   :  { %1536 = vadd.xlane.f32.xlu0 %v1535_v42 }
 0x699   :  { %5543 = vrot.lane.b32.xlu1 %v5542_v2, %s5896_s30 }
 0x6a2   :  { %5538 = vrot.lane.b32.xlu0 %v5537_v60, %s5897_s6  ;;  %v5535_v60 = vunpack.i.l.bf16 %v5534_v46 }
 0x6a4   :  { %v791_v5 = vsel %vm341_vm4, %v6349_v33, %v5535_v60  ;;  %v5614_v33 = vld [vmem:[%s5988_s27 + $0x8] sm:$0xff]   ;;  %s7295_s27 = sld [smem:[#allocation10_spill]] }
 0x710   :  { %v1531_v47 = vpop.xlane.xlu0 %1530 }
 0x711   :  { %v1539_v48 = vmul.f32 0.03125, %v1531_v47  ;;  %v1528_v49 = vpop.xlane.xlu1 %1527 }
 0x712   :  { %v1538_v51 = vmul.f32 0.03125, %v1528_v49 }
 0x713   :  { %v1543_v52 = vadd.f32 1e-05, %v1539_v48 }
 0x714   :  { %v1542_v53 = vadd.f32 1e-05, %v1538_v51 }
 0x715   :  { %5675 = vrsqrt.f32 %v1543_v52  ;;  %v1534_v54 = vpop.xlane.xlu1 %1533 }
 0x716   :  { %5677 = vrsqrt.f32 %v1542_v53  ;;  %v1540_v55 = vmul.f32 0.03125, %v1534_v54 }
 0x718   :  { %v1544_v56 = vadd.f32 1e-05, %v1540_v55 }
 0x719   :  { %v1537_v57 = vpop.xlane.xlu0 %1536  ;;  %v5544_v61 = vpop.permute.xlu1 %5543 }
 0x71a   :  { %5679 = vrsqrt.f32 %v1544_v56  ;;  %v1541_v58 = vmul.f32 0.03125, %v1537_v57  ;;  %v5546_v6 = vunpack.i.h.bf16 %v5544_v61  ;;  %v5545_v7 = vunpack.i.l.bf16 %v5544_v61 }
 0x71c   :  { %v1545_v62 = vadd.f32 1e-05, %v1541_v58 }
 0x71d   :  { %v5539_v63 = vpop.permute.xlu0 %5538 }
 0x71e   :  { %5681 = vrsqrt.f32 %v1545_v62  ;;  %v5541_v0 = vunpack.i.h.bf16 %v5539_v63  ;;  %v5540_v2 = vunpack.i.l.bf16 %v5539_v63 }
 0x71f   :  { %v5676_v3 = vpop.eup %5675 }
 0x720   :  { %v5678_v34 = vpop.eup %5677  ;;  %v1251_v9 = vsel %vm792_vm11, %v1250_v4, %v5541_v0  ;;  %v793_v10 = vsel %vm792_vm11, %v791_v5, %v5540_v2  ;;  %v1551_v11 = vmul.f32 %v5676_v3, %v6366_v24 }
 0x721   :  { %v1252_v12 = vsel %vm194_vm2, %v1251_v9, %v5546_v6  ;;  %v794_v13 = vsel %vm194_vm2, %v793_v10, %v5545_v7  ;;  %v1550_v50 = vmul.f32 %v5678_v34, %v6368_v21 }
 0x722   :  { %v1253_v15 = vpack.c.bf16 %v1252_v12, %v794_v13  ;;  %v1561_v16 = vmul.f32 %v4694_v8, %v1551_v11 }
 0x723   :  { %v1560_v17 = vmul.f32 %v4694_v8, %v1550_v50 }
 0x724   :  { %v5680_v18 = vpop.eup %5679  ;;  %5087 = vmatmul.mubr.msk.bf16.vlgmr.msra.gmra.mrb[36].mxu0 %vm290_vm3, %v1253_v15  ;;  %v6406_v19 = vadd.f32 %v4695_v14, %v1561_v16 }
 0x725   :  { %v1552_v20 = vmul.f32 %v5680_v18, %v6375_v32  ;;  %v6409_v22 = vadd.f32 %v4695_v14, %v1560_v17  ;;  %5111 = vmatpush3.bf16.msra.mxu0 %v5613_v45 }
 0x726   :  { %5112 = vmatprep.subr.bf16.mxu0 %v5614_v33 }
 0x727   :  { %v1584_v23 = vpack.c.bf16 %v6406_v19, %v6409_v22  ;;  %v1562_v27 = vmul.f32 %v4694_v8, %v1552_v20 }
 0x728   :  { %v5682_v24 = vpop.eup %5681 }
 0x729   :  { %v1553_v21 = vmul.f32 %v5682_v24, %v6380_v39  ;;  %5114 = vmatprep.mubr.msk.bf16.mxu0 %vm290_vm3, %v1584_v23  ;;  %5113 = vmatpush3.bf16.msra.mxu0 %v5614_v33  ;;  %v6416_v29 = vadd.f32 %v4695_v14, %v1562_v27 }
 0x72a   :  { %5124 = vmatprep.subr.bf16.mxu0 %v5881_v1 }
 0x72b   :  { %v1563_v28 = vmul.f32 %v4694_v8, %v1553_v21 }
 0x72d   :  { %v6418_v30 = vadd.f32 %v4695_v14, %v1563_v28 }
 0x72f   :  { %v1585_v31 = vpack.c.bf16 %v6418_v30, %v6416_v29 }
 0x731   :  { %5115 = vmatmul.mubr.msk.bf16.vlgmr.msra.gmra.mrb[40].mxu0 %vm290_vm3, %v1585_v31 }
 0x732   :  { %5126 = vmatprep.mubr.msk.bf16.mxu0 %vm5882_vm1, %v5881_v1 }
 0x7f7   :  { %v6425_v32 = vpop.f32.mrb[36].mxu0 }
 0x7f8   :  { %v5088_v35 = vpop.f32.mrb[37].mxu0 }
 0x7f9   :  { %v1312_v38 = vpop.f32.mrb[38].mxu0 }
 0x7fa   :  { %v6428_v37 = vadd.f32 %v4683_v36, %v1312_v38  ;;  %v5089_v39 = vpop.f32.mrb[39].mxu0 }
 0x804   :  { %v5116_v41 = vpop.f32.mrb[40].mxu0 }
 0x805   :  { %v1653_v42 = vadd.f32 %v5116_v41, %v4696_v40  ;;  %v1644_v43 = vpop.f32.mrb[41].mxu0 }
 0x806   :  { %v1645_v44 = vadd.f32 %v4696_v40, %v1644_v43  ;;  %v5117_v45 = vpop.f32.mrb[42].mxu0 }
 0x807   :  { %v1656_v46 = vadd.f32 %v5117_v45, %v4696_v40  ;;  %v1647_v47 = vpop.f32.mrb[43].mxu0  ;;  %v2177_v49 = vmul.f32 0.35355338, %v1653_v42 }
 0x808   :  { %v1648_v48 = vadd.f32 %v4696_v40, %v1647_v47  ;;  %v1659_v53 = vmul.f32 0.35355338, %v1645_v44 }
 0x809   :  { %v2178_v51 = vmul.f32 0.35355338, %v1656_v46  ;;  %v6431_v52 = vpack.c.bf16 %v1656_v46, %v1653_v42 }
 0x80a   :  { %v1660_v54 = vmul.f32 0.35355338, %v1648_v48  ;;  %v6433_v55 = vpack.c.bf16 %v1648_v48, %v1645_v44 }
 0x80b   :  { %v2179_v56 = vpack.c.bf16 %v2178_v51, %v2177_v49 }
 0x80c   :  { %v1661_v57 = vpack.c.bf16 %v1660_v54, %v1659_v53  ;;  %1786 = vrot.lane.b32.xlu0 %v6433_v55, %s5886_s9  ;;  %1664 = vrot.lane.b32.xlu1 %v6433_v55, %s5884_s0 }
 0x810   :  { %1907 = vrot.lane.b32.xlu0 %v6433_v55, %s5888_s17  ;;  %1784 = vrot.lane.b32.xlu1 %v1661_v57, %s5885_s5 }
 0x814   :  { %2028 = vrot.lane.b32.xlu0 %v6433_v55, %s5890_s25  ;;  %1905 = vrot.lane.b32.xlu1 %v1661_v57, %s5887_s13 }
 0x818   :  { %2182 = vrot.lane.b32.xlu0 %v6431_v52, %s5884_s0  ;;  %2026 = vrot.lane.b32.xlu1 %v1661_v57, %s5889_s21 }
 0x81c   :  { %2302 = vrot.lane.b32.xlu0 %v2179_v56, %s5885_s5  ;;  %2304 = vrot.lane.b32.xlu1 %v6431_v52, %s5886_s9  ;;  %s7305_s5 = sld [smem:[#allocation7_spill]]  ;;  %s7306_s9 = sld [smem:[#allocation17_spill]] }
 0x820   :  { %2423 = vrot.lane.b32.xlu0 %v2179_v56, %s5887_s13  ;;  %2425 = vrot.lane.b32.xlu1 %v6431_v52, %s5888_s17  ;;  %s7307_s13 = sld [smem:[#allocation18_spill]]  ;;  %s7308_s17 = sld [smem:[#allocation21_spill]] }
 0x824   :  { %2544 = vrot.lane.b32.xlu0 %v2179_v56, %s5889_s21  ;;  %2546 = vrot.lane.b32.xlu1 %v6431_v52, %s5890_s25  ;;  %s7309_s21 = sld [smem:[#allocation23_spill]]  ;;  %s5898_s25 = smov 32  }
 0x828   :  { %1736 = vrot.lane.b32.xlu0 %v6433_v55, %s5892_s7 }
 0x87e   :  { %v1787_v58 = vpop.permute.xlu0 %1786  ;;  %v1665_v59 = vpop.permute.xlu1 %1664 }
 0x87f   :  { %v1670_v60 = vsel %vm341_vm4, %v1665_v59, 0  ;;  %v1792_v63 = vsel %vm341_vm4, %v1787_v58, 0 }
 0x880   :  { %5119 = vmatpush3.bf16.xpose.msra.mxu1 %v1670_v60 }
 0x881   :  { %5130 = vmatprep.subr.bf16.mxu1 %v5881_v1 }
 0x882   :  { %v1908_v61 = vpop.permute.xlu0 %1907  ;;  %v1785_v2 = vpop.permute.xlu1 %1784 }
 0x883   :  { %v1913_v4 = vsel %vm341_vm4, %v1908_v61, 0 }
 0x886   :  { %v2029_v62 = vpop.permute.xlu0 %2028  ;;  %v1906_v6 = vpop.permute.xlu1 %1905 }
 0x887   :  { %5121 = vmatmul.mubr.msk.bf16.vlgmr.msra.gmra.mrb[40].mxu1 %vm341_vm4, %v1661_v57  ;;  %v2034_v8 = vsel %vm341_vm4, %v2029_v62, 0 }
 0x888   :  { %5131 = vmatpush3.bf16.xpose.msra.mxu1 %v1792_v63  ;;  %5132 = vmatprep.mubr.msk.bf16.mxu1 %vm5882_vm1, %v5881_v1 }
 0x889   :  { %5142 = vmatprep.subr.bf16.mxu1 %v5881_v1 }
 0x88a   :  { %v2183_v0 = vpop.permute.xlu0 %2182  ;;  %v2027_v9 = vpop.permute.xlu1 %2026 }
 0x88b   :  { %v2188_v10 = vsel %vm341_vm4, %v2183_v0, 0 }
 0x88e   :  { %v2303_v3 = vpop.permute.xlu0 %2302  ;;  %v2305_v11 = vpop.permute.xlu1 %2304 }
 0x88f   :  { %5133 = vmatmul.mubr.msk.bf16.vlgmr.msra.gmra.mrb[44].mxu1 %vm341_vm4, %v1785_v2  ;;  %v2310_v12 = vsel %vm341_vm4, %v2305_v11, 0 }
 0x890   :  { %5143 = vmatpush3.bf16.xpose.msra.mxu1 %v1913_v4  ;;  %5144 = vmatprep.mubr.msk.bf16.mxu1 %vm5882_vm1, %v5881_v1 }
 0x891   :  { %5154 = vmatprep.subr.bf16.mxu1 %v5881_v1 }
 0x892   :  { %v2424_v5 = vpop.permute.xlu0 %2423  ;;  %v2426_v13 = vpop.permute.xlu1 %2425 }
 0x893   :  { %v2431_v14 = vsel %vm341_vm4, %v2426_v13, 0 }
 0x896   :  { %v2545_v7 = vpop.permute.xlu0 %2544  ;;  %v2547_v50 = vpop.permute.xlu1 %2546 }
 0x897   :  { %5145 = vmatmul.mubr.msk.bf16.vlgmr.msra.gmra.mrb[48].mxu1 %vm341_vm4, %v1906_v6  ;;  %v2552_v15 = vsel %vm341_vm4, %v2547_v50, 0 }
 0x898   :  { %5155 = vmatpush3.bf16.xpose.msra.mxu1 %v2034_v8  ;;  %5156 = vmatprep.mubr.msk.bf16.mxu1 %vm5882_vm1, %v5881_v1 }
 0x899   :  { %5166 = vmatprep.subr.bf16.mxu1 %v5881_v1 }
 0x89a   :  { %v1737_v34 = vpop.permute.xlu0 %1736 }
 0x89b   :  { %5125 = vmatpush3.bf16.msra.mxu0 %v1737_v34 }
 0x89c   :  { %5136 = vmatprep.subr.bf16.mxu0 %v5881_v1 }
 0x89f   :  { %5157 = vmatmul.mubr.msk.bf16.vlgmr.msra.gmra.mrb[52].mxu1 %vm341_vm4, %v2027_v9 }
 0x8a0   :  { %5167 = vmatpush3.bf16.xpose.msra.mxu1 %v2188_v10  ;;  %5168 = vmatprep.mubr.msk.bf16.mxu1 %vm5882_vm1, %v5881_v1 }
 0x8a1   :  { %5178 = vmatprep.subr.bf16.mxu1 %v5881_v1 }
 0x8a7   :  { %5169 = vmatmul.mubr.msk.bf16.vlgmr.msra.gmra.mrb[56].mxu1 %vm341_vm4, %v2179_v56 }
 0x8a8   :  { %5179 = vmatpush3.bf16.xpose.msra.mxu1 %v2310_v12  ;;  %5180 = vmatprep.mubr.msk.bf16.mxu1 %vm5882_vm1, %v5881_v1 }
 0x8a9   :  { %5190 = vmatprep.subr.bf16.mxu1 %v5881_v1 }
 0x8af   :  { %5181 = vmatmul.mubr.msk.bf16.vlgmr.msra.gmra.mrb[60].mxu1 %vm341_vm4, %v2303_v3 }
 0x8b0   :  { %5191 = vmatpush3.bf16.xpose.msra.mxu1 %v2431_v14  ;;  %5192 = vmatprep.mubr.msk.bf16.mxu1 %vm5882_vm1, %v5881_v1 }
 0x8b1   :  { %5202 = vmatprep.subr.bf16.mxu1 %v5881_v1 }
 0x8b7   :  { %5193 = vmatmul.mubr.msk.bf16.vlgmr.msra.gmra.mrb[64].mxu1 %vm341_vm4, %v2424_v5 }
 0x8b8   :  { %5203 = vmatpush3.bf16.xpose.msra.mxu1 %v2552_v15  ;;  %5204 = vmatprep.mubr.msk.bf16.mxu1 %vm5882_vm1, %v5881_v1 }
 0x8bf   :  { %5205 = vmatmul.mubr.msk.bf16.vlgmr.msra.gmra.mrb[68].mxu1 %vm341_vm4, %v2545_v7 }
 0x95a   :  { %v6497_v16 = vpop.f32.mrb[40].mxu1 }
 0x95b   :  { %v5122_v33 = vpop.f32.mrb[41].mxu1  ;;  %v1713_v17 = vsel %vm792_vm11, %v6497_v16, -inf }
 0x95c   :  { %1714 = vmax.xlane.f32.xlu1 %v1713_v17  ;;  %v6501_v18 = vpop.f32.mrb[42].mxu1 }
 0x95d   :  { %v5123_v20 = vpop.f32.mrb[43].mxu1  ;;  %v1716_v23 = vsel %vm792_vm11, %v6501_v18, -inf }
 0x95e   :  { %1717 = vmax.xlane.f32.xlu0 %v1716_v23 }
 0x962   :  { %v6505_v24 = vpop.f32.mrb[44].mxu1 }
 0x963   :  { %v5134_v21 = vpop.f32.mrb[45].mxu1  ;;  %v1835_v27 = vsel %vm792_vm11, %v6505_v24, -inf }
 0x964   :  { %1836 = vmax.xlane.f32.xlu0 %v1835_v27  ;;  %v6509_v28 = vpop.f32.mrb[46].mxu1 }
 0x965   :  { %v5135_v31 = vpop.f32.mrb[47].mxu1  ;;  %v1838_v0 = vsel %vm792_vm11, %v6509_v28, -inf }
 0x96a   :  { %v6511_v35 = vpop.f32.mrb[48].mxu1 }
 0x96b   :  { %v5146_v36 = vpop.f32.mrb[49].mxu1  ;;  %v1956_v38 = vsel %vm792_vm11, %v6511_v35, -inf }
 0x96c   :  { %1957 = vmax.xlane.f32.xlu0 %v1956_v38  ;;  %v6515_v39 = vpop.f32.mrb[50].mxu1 }
 0x96d   :  { %1858 = vrot.lane.b32.xlu1 %v6433_v55, %s5891_s29  ;;  %v5147_v40 = vpop.f32.mrb[51].mxu1  ;;  %v1959_v6 = vsel %vm792_vm11, %v6515_v39, -inf }
 0x972   :  { %v6519_v41 = vpop.f32.mrb[52].mxu1 }
 0x973   :  { %v5158_v42 = vpop.f32.mrb[53].mxu1  ;;  %v2077_v43 = vsel %vm792_vm11, %v6519_v41, -inf }
 0x974   :  { %2078 = vmax.xlane.f32.xlu0 %v2077_v43  ;;  %v6523_v44 = vpop.f32.mrb[54].mxu1 }
 0x975   :  { %v5159_v45 = vpop.f32.mrb[55].mxu1  ;;  %v2080_v8 = vsel %vm792_vm11, %v6523_v44, -inf }
 0x97a   :  { %v6525_v46 = vpop.f32.mrb[56].mxu1 }
 0x97b   :  { %v5170_v47 = vpop.f32.mrb[57].mxu1  ;;  %v2231_v48 = vsel %vm792_vm11, %v6525_v46, -inf }
 0x97c   :  { %2232 = vmax.xlane.f32.xlu0 %v2231_v48  ;;  %v6529_v49 = vpop.f32.mrb[58].mxu1 }
 0x97d   :  { %v5171_v51 = vpop.f32.mrb[59].mxu1  ;;  %v2234_v34 = vsel %vm792_vm11, %v6529_v49, -inf }
 0x982   :  { %v6531_v53 = vpop.f32.mrb[60].mxu1 }
 0x983   :  { %v5182_v54 = vpop.f32.mrb[61].mxu1  ;;  %v2353_v56 = vsel %vm792_vm11, %v6531_v53, -inf }
 0x984   :  { %2354 = vmax.xlane.f32.xlu0 %v2353_v56  ;;  %v6535_v57 = vpop.f32.mrb[62].mxu1 }
 0x985   :  { %v5183_v58 = vpop.f32.mrb[63].mxu1  ;;  %v2356_v9 = vsel %vm792_vm11, %v6535_v57, -inf }
 0x98a   :  { %v6537_v59 = vpop.f32.mrb[64].mxu1 }
 0x98b   :  { %v5194_v60 = vpop.f32.mrb[65].mxu1  ;;  %v2474_v61 = vsel %vm792_vm11, %v6537_v59, -inf }
 0x98c   :  { %2475 = vmax.xlane.f32.xlu0 %v2474_v61  ;;  %v6541_v62 = vpop.f32.mrb[66].mxu1 }
 0x98d   :  { %v5195_v63 = vpop.f32.mrb[67].mxu1  ;;  %v2477_v10 = vsel %vm792_vm11, %v6541_v62, -inf }
 0x991   :  { %1839 = vmax.xlane.f32.xlu1 %v1838_v0 }
 0x992   :  { %v6545_v2 = vpop.f32.mrb[68].mxu1 }
 0x993   :  { %v5206_v3 = vpop.f32.mrb[69].mxu1  ;;  %v2595_v4 = vsel %vm792_vm11, %v6545_v2, -inf }
 0x994   :  { %2596 = vmax.xlane.f32.xlu0 %v2595_v4  ;;  %v6549_v5 = vpop.f32.mrb[70].mxu1 }
 0x995   :  { %1960 = vmax.xlane.f32.xlu1 %v1959_v6  ;;  %v5207_v7 = vpop.f32.mrb[71].mxu1  ;;  %v2598_v11 = vsel %vm792_vm11, %v6549_v5, -inf }
 0x999   :  { %2081 = vmax.xlane.f32.xlu1 %v2080_v8 }
 0x99d   :  { %2235 = vmax.xlane.f32.xlu1 %v2234_v34 }
 0x9a1   :  { %2357 = vmax.xlane.f32.xlu1 %v2356_v9 }
 0x9a5   :  { %2478 = vmax.xlane.f32.xlu1 %v2477_v10 }
 0x9a9   :  { %2599 = vmax.xlane.f32.xlu1 %v2598_v11 }
 0x9aa   :  { %1979 = vrot.lane.b32.xlu0 %v6433_v55, %s5893_s10 }
 0x9ba   :  { %2100 = vrot.lane.b32.xlu1 %v6433_v55, %s5894_s11 }
 0x9e9   :  { %v1715_v12 = vpop.xlane.xlu1 %1714 }
 0x9ea   :  { %v1719_v13 = vsub.f32 %v6497_v16, %v1715_v12 }
 0x9eb   :  { %v1718_v14 = vpop.xlane.xlu0 %1717 }
 0x9ec   :  { %v1721_v50 = vmul.f32 1.442695, %v1719_v13  ;;  %v1720_v15 = vsub.f32 %v6501_v18, %v1718_v14 }
 0x9ed   :  { %v6592_v51 = vpop.permute.xlu1 %1858 }
 0x9ee   :  { %5683 = vpow2.f32 %v1721_v50  ;;  %v1723_v33 = vmul.f32 1.442695, %v1720_v15 }
 0x9f0   :  { %5685 = vpow2.f32 %v1723_v33 }
 0x9f1   :  { %v1837_v17 = vpop.xlane.xlu0 %1836 }
 0x9f2   :  { %v1841_v20 = vsub.f32 %v6505_v24, %v1837_v17 }
 0x9f4   :  { %v1843_v23 = vmul.f32 1.442695, %v1841_v20 }
 0x9f6   :  { %5687 = vpow2.f32 %v1843_v23 }
 0x9f8   :  { %v6570_v21 = vpop.eup %5683 }
 0x9f9   :  { %v1958_v27 = vpop.xlane.xlu0 %1957  ;;  %v1725_v55 = vsel %vm792_vm11, %v6570_v21, 0.0 }
 0x9fa   :  { %v6574_v31 = vpop.eup %5685  ;;  %v1962_v16 = vsub.f32 %v6511_v35, %v1958_v27  ;;  %1726 = vadd.xlane.f32.xlu0 %v1725_v55 }
 0x9fb   :  { %v1728_v18 = vsel %vm792_vm11, %v6574_v31, 0.0 }
 0x9fc   :  { %v1964_v36 = vmul.f32 1.442695, %v1962_v16  ;;  %1729 = vadd.xlane.f32.xlu1 %v1728_v18 }
 0x9fe   :  { %5689 = vpow2.f32 %v1964_v36 }
 0xa00   :  { %v6579_v24 = vpop.eup %5687 }
 0xa01   :  { %v2079_v38 = vpop.xlane.xlu0 %2078  ;;  %v1847_v40 = vsel %vm792_vm11, %v6579_v24, 0.0 }
 0xa02   :  { %v2083_v42 = vsub.f32 %v6519_v41, %v2079_v38  ;;  %1848 = vadd.xlane.f32.xlu0 %v1847_v40 }
 0xa04   :  { %v2085_v43 = vmul.f32 1.442695, %v2083_v42 }
 0xa06   :  { %5691 = vpow2.f32 %v2085_v43 }
 0xa08   :  { %v6584_v45 = vpop.eup %5689 }
 0xa09   :  { %v1968_v35 = vsel %vm792_vm11, %v6584_v45, 0.0  ;;  %v2233_v58 = vpop.xlane.xlu0 %2232 }
 0xa0a   :  { %1969 = vadd.xlane.f32.xlu0 %v1968_v35  ;;  %v2237_v63 = vsub.f32 %v6525_v46, %v2233_v58 }
 0xa0c   :  { %v2239_v6 = vmul.f32 1.442695, %v2237_v63 }
 0xa10   :  { %v6588_v47 = vpop.eup %5691 }
 0xa11   :  { %v2089_v48 = vsel %vm792_vm11, %v6588_v47, 0.0  ;;  %v2355_v7 = vpop.xlane.xlu0 %2354 }
 0xa12   :  { %2090 = vadd.xlane.f32.xlu0 %v2089_v48  ;;  %v2359_v12 = vsub.f32 %v6531_v53, %v2355_v7 }
 0xa14   :  { %v2361_v17 = vmul.f32 1.442695, %v2359_v12 }
 0xa1e   :  { %v1840_v54 = vpop.xlane.xlu1 %1839 }
 0xa1f   :  { %v1842_v41 = vsub.f32 %v6509_v28, %v1840_v54 }
 0xa21   :  { %v1845_v56 = vmul.f32 1.442695, %v1842_v41 }
 0xa22   :  { %v1961_v60 = vpop.xlane.xlu1 %1960 }
 0xa23   :  { %5693 = vpow2.f32 %v1845_v56  ;;  %v1963_v61 = vsub.f32 %v6515_v39, %v1961_v60  ;;  %v2476_v39 = vpop.xlane.xlu0 %2475 }
 0xa24   :  { %v2480_v14 = vsub.f32 %v6537_v59, %v2476_v39 }
 0xa25   :  { %v1966_v0 = vmul.f32 1.442695, %v1963_v61 }
 0xa26   :  { %v2082_v3 = vpop.xlane.xlu1 %2081 }
 0xa27   :  { %5695 = vpow2.f32 %v1966_v0  ;;  %v2084_v4 = vsub.f32 %v6523_v44, %v2082_v3  ;;  %v2597_v50 = vpop.xlane.xlu0 %2596 }
 0xa28   :  { %2254 = vrot.lane.b32.xlu0 %v6431_v52, %s5892_s7  ;;  %v2601_v20 = vsub.f32 %v6545_v2, %v2597_v50 }
 0xa29   :  { %v2087_v8 = vmul.f32 1.442695, %v2084_v4 }
 0xa2a   :  { %v2236_v28 = vpop.xlane.xlu1 %2235  ;;  %v2603_v16 = vmul.f32 1.442695, %v2601_v20 }
 0xa2b   :  { %5697 = vpow2.f32 %v2087_v8  ;;  %v2238_v34 = vsub.f32 %v6529_v49, %v2236_v28  ;;  %v1980_v0 = vpop.permute.xlu0 %1979 }
 0xa2c   :  { %5699 = vpow2.f32 %v2239_v6 }
 0xa2d   :  { %v6601_v9 = vpop.eup %5693  ;;  %v2241_v46 = vmul.f32 1.442695, %v2238_v34 }
 0xa2e   :  { %v2358_v10 = vpop.xlane.xlu1 %2357  ;;  %v1850_v11 = vsel %vm792_vm11, %v6601_v9, 0.0 }
 0xa2f   :  { %v2360_v44 = vsub.f32 %v6535_v57, %v2358_v10  ;;  %1851 = vadd.xlane.f32.xlu1 %v1850_v11  ;;  %5701 = vpow2.f32 %v2241_v46  ;;  %v2482_v57 = vmul.f32 1.442695, %v2480_v14 }
 0xa31   :  { %v6607_v13 = vpop.eup %5695  ;;  %v2363_v49 = vmul.f32 1.442695, %v2360_v44 }
 0xa32   :  { %v2479_v15 = vpop.xlane.xlu1 %2478  ;;  %v1971_v33 = vsel %vm792_vm11, %v6607_v13, 0.0 }
 0xa33   :  { %1972 = vadd.xlane.f32.xlu1 %v1971_v33  ;;  %5703 = vpow2.f32 %v2363_v49  ;;  %v2481_v53 = vsub.f32 %v6541_v62, %v2479_v15 }
 0xa34   :  { %5705 = vpow2.f32 %v2361_v17 }
 0xa35   :  { %v6613_v23 = vpop.eup %5697  ;;  %5707 = vpow2.f32 %v2482_v57  ;;  %v2484_v18 = vmul.f32 1.442695, %v2481_v53 }
 0xa36   :  { %v2600_v27 = vpop.xlane.xlu1 %2599  ;;  %v2092_v59 = vsel %vm792_vm11, %v6613_v23, 0.0  ;;  %v6618_v55 = vpop.eup %5699  ;;  %5709 = vpow2.f32 %v2603_v16 }
 0xa37   :  { %2093 = vadd.xlane.f32.xlu1 %v2092_v59  ;;  %v2602_v36 = vsub.f32 %v6549_v5, %v2600_v27  ;;  %v2243_v2 = vsel %vm792_vm11, %v6618_v55, 0.0  ;;  %5711 = vpow2.f32 %v2484_v18 }
 0xa39   :  { %v6623_v38 = vpop.eup %5701  ;;  %v2605_v62 = vmul.f32 1.442695, %v2602_v36 }
 0xa3a   :  { %v2246_v40 = vsel %vm792_vm11, %v6623_v38, 0.0  ;;  %v2101_v3 = vpop.permute.xlu1 %2100 }
 0xa3b   :  { %2244 = vadd.xlane.f32.xlu1 %v2243_v2  ;;  %5713 = vpow2.f32 %v2605_v62 }
 0xa3d   :  { %v6627_v42 = vpop.eup %5703 }
 0xa3e   :  { %v6629_v43 = vpop.eup %5705  ;;  %v2368_v5 = vsel %vm792_vm11, %v6627_v42, 0.0 }
 0xa3f   :  { %2247 = vadd.xlane.f32.xlu1 %v2246_v40  ;;  %v6633_v35 = vpop.eup %5707  ;;  %v2365_v54 = vsel %vm792_vm11, %v6629_v43, 0.0 }
 0xa40   :  { %v6635_v48 = vpop.eup %5709  ;;  %v2486_v41 = vsel %vm792_vm11, %v6633_v35, 0.0 }
 0xa41   :  { %v6641_v56 = vpop.eup %5711  ;;  %v2607_v58 = vsel %vm792_vm11, %v6635_v48, 0.0 }
 0xa42   :  { %v2489_v60 = vsel %vm792_vm11, %v6641_v56, 0.0 }
 0xa43   :  { %2369 = vadd.xlane.f32.xlu1 %v2368_v5 }
 0xa45   :  { %v6647_v61 = vpop.eup %5713 }
 0xa46   :  { %v2610_v63 = vsel %vm792_vm11, %v6647_v61, 0.0 }
 0xa47   :  { %2366 = vadd.xlane.f32.xlu0 %v2365_v54  ;;  %2487 = vadd.xlane.f32.xlu1 %v2486_v41 }
 0xa4b   :  { %2608 = vadd.xlane.f32.xlu0 %v2607_v58  ;;  %2490 = vadd.xlane.f32.xlu1 %v2489_v60 }
 0xa4f   :  { %2611 = vadd.xlane.f32.xlu1 %v2610_v63 }
 0xa60   :  { %2376 = vrot.lane.b32.xlu1 %v6431_v52, %s5891_s29  ;;  %s7310_s29 = sld [smem:[#allocation22_spill]] }
 0xa61   :  { %2497 = vrot.lane.b32.xlu0 %v6431_v52, %s5893_s10  ;;  %s7311_s10 = sld [smem:[#allocation25_spill]] }
 0xa65   :  { %2618 = vrot.lane.b32.xlu0 %v6431_v52, %s5894_s11  ;;  %s7312_s11 = sld [smem:[#allocation24_spill]] }
 0xa87   :  { %v1727_v4 = vpop.xlane.xlu0 %1726 }
 0xa88   :  { %5715 = vrcp.f32 %v1727_v4 }
 0xa89   :  { %v1730_v6 = vpop.xlane.xlu1 %1729 }
 0xa8a   :  { %5717 = vrcp.f32 %v1730_v6 }
 0xa8f   :  { %v1849_v52 = vpop.xlane.xlu0 %1848 }
 0xa90   :  { %5719 = vrcp.f32 %v1849_v52 }
 0xa92   :  { %v5716_v7 = vpop.eup %5715 }
 0xa93   :  { %v1732_v28 = vmul.f32 %v5716_v7, %v6570_v21 }
 0xa94   :  { %v5718_v8 = vpop.eup %5717 }
 0xa95   :  { %v1734_v34 = vmul.f32 %v5718_v8, %v6574_v31 }
 0xa97   :  { %v1735_v39 = vpack.c.bf16 %v1734_v34, %v1732_v28  ;;  %v1970_v10 = vpop.xlane.xlu0 %1969 }
 0xa99   :  { %5127 = vmatmul.mubr.msk.bf16.vlgmr.msra.gmra.mrb[44].mxu0 %vm792_vm11, %v1735_v39 }
 0xa9a   :  { %5137 = vmatpush3.bf16.msra.mxu0 %v6592_v51  ;;  %5138 = vmatprep.mubr.msk.bf16.mxu0 %vm5882_vm1, %v5881_v1  ;;  %v5720_v31 = vpop.eup %5719 }
 0xa9b   :  { %5148 = vmatprep.subr.bf16.mxu0 %v5881_v1  ;;  %v1854_v12 = vmul.f32 %v5720_v31, %v6579_v24 }
 0xa9f   :  { %v2091_v14 = vpop.xlane.xlu0 %2090 }
 0xaa3   :  { %v2255_v57 = vpop.permute.xlu0 %2254 }
 0xabc   :  { %v1852_v46 = vpop.xlane.xlu1 %1851 }
 0xabd   :  { %5721 = vrcp.f32 %v1852_v46 }
 0xac0   :  { %v1973_v11 = vpop.xlane.xlu1 %1972 }
 0xac1   :  { %5723 = vrcp.f32 %v1973_v11 }
 0xac2   :  { %5725 = vrcp.f32 %v1970_v10 }
 0xac4   :  { %v2094_v21 = vpop.xlane.xlu1 %2093 }
 0xac5   :  { %5727 = vrcp.f32 %v2094_v21 }
 0xac6   :  { %5729 = vrcp.f32 %v2091_v14 }
 0xac7   :  { %v5722_v44 = vpop.eup %5721 }
 0xac8   :  { %v1856_v51 = vmul.f32 %v5722_v44, %v6601_v9  ;;  %v2245_v50 = vpop.xlane.xlu1 %2244 }
 0xaca   :  { %v1857_v49 = vpack.c.bf16 %v1856_v51, %v1854_v12 }
 0xacb   :  { %v5724_v15 = vpop.eup %5723 }
 0xacc   :  { %5139 = vmatmul.mubr.msk.bf16.vlgmr.msra.gmra.mrb[48].mxu0 %vm792_vm11, %v1857_v49  ;;  %v2248_v33 = vpop.xlane.xlu1 %2247  ;;  %v5726_v17 = vpop.eup %5725  ;;  %v1977_v20 = vmul.f32 %v5724_v15, %v6607_v13 }
 0xacd   :  { %5149 = vmatpush3.bf16.msra.mxu0 %v1980_v0  ;;  %5150 = vmatprep.mubr.msk.bf16.mxu0 %vm5882_vm1, %v5881_v1  ;;  %v1975_v24 = vmul.f32 %v5726_v17, %v6584_v45  ;;  %5731 = vrcp.f32 %v2248_v33 }
 0xace   :  { %5160 = vmatprep.subr.bf16.mxu0 %v5881_v1  ;;  %5733 = vrcp.f32 %v2245_v50 }
 0xacf   :  { %v1978_v53 = vpack.c.bf16 %v1977_v20, %v1975_v24  ;;  %v5728_v27 = vpop.eup %5727 }
 0xad0   :  { %v2370_v9 = vpop.xlane.xlu1 %2369  ;;  %v5730_v16 = vpop.eup %5729  ;;  %v2098_v13 = vmul.f32 %v5728_v27, %v6613_v23 }
 0xad1   :  { %v2096_v45 = vmul.f32 %v5730_v16, %v6588_v47 }
 0xad3   :  { %v2099_v2 = vpack.c.bf16 %v2098_v13, %v2096_v45 }
 0xad4   :  { %5151 = vmatmul.mubr.msk.bf16.vlgmr.msra.gmra.mrb[52].mxu0 %vm792_vm11, %v1978_v53  ;;  %v2488_v59 = vpop.xlane.xlu1 %2487  ;;  %v2367_v18 = vpop.xlane.xlu0 %2366 }
 0xad5   :  { %5161 = vmatpush3.bf16.msra.mxu0 %v2101_v3  ;;  %5162 = vmatprep.mubr.msk.bf16.mxu0 %vm5882_vm1, %v5881_v1  ;;  %5735 = vrcp.f32 %v2367_v18  ;;  %v5615_v18 = vld [vmem:[%s7294_s20] sm:$0xff]  }
 0xad6   :  { %5172 = vmatprep.subr.bf16.mxu0 %v5881_v1  ;;  %5737 = vrcp.f32 %v2370_v9  ;;  %5214 = vmatprep.subr.bf16.mxu1 %v5615_v18 }
 0xad7   :  { %v5732_v62 = vpop.eup %5731  ;;  %5215 = vmatpush3.bf16.msra.mxu1 %v5615_v18 }
 0xad8   :  { %v2491_v36 = vpop.xlane.xlu1 %2490  ;;  %v5734_v40 = vpop.eup %5733  ;;  %v2252_v5 = vmul.f32 %v5732_v62, %v6623_v38  ;;  %v5616_v62 = vld [vmem:[%s7294_s20 + $0x8] sm:$0xff]  }
 0xad9   :  { %v2250_v54 = vmul.f32 %v5734_v40, %v6618_v55  ;;  %5739 = vrcp.f32 %v2491_v36  ;;  %v2609_v38 = vpop.xlane.xlu0 %2608  ;;  %5216 = vmatprep.subr.bf16.mxu1 %v5616_v62 }
 0xada   :  { %5741 = vrcp.f32 %v2488_v59 }
 0xadb   :  { %v2253_v47 = vpack.c.bf16 %v2252_v5, %v2250_v54  ;;  %5217 = vmatpush3.bf16.msra.mxu1 %v5616_v62 }
 0xadc   :  { %5163 = vmatmul.mubr.msk.bf16.vlgmr.msra.gmra.mrb[56].mxu0 %vm792_vm11, %v2099_v2  ;;  %v2612_v23 = vpop.xlane.xlu1 %2611 }
 0xadd   :  { %5173 = vmatpush3.bf16.msra.mxu0 %v2255_v57  ;;  %5174 = vmatprep.mubr.msk.bf16.mxu0 %vm5882_vm1, %v5881_v1  ;;  %5743 = vrcp.f32 %v2612_v23  ;;  %v2498_v4 = vpop.permute.xlu0 %2497 }
 0xade   :  { %5184 = vmatprep.subr.bf16.mxu0 %v5881_v1  ;;  %5745 = vrcp.f32 %v2609_v38 }
 0xadf   :  { %v5736_v41 = vpop.eup %5735 }
 0xae0   :  { %v2377_v58 = vpop.permute.xlu1 %2376  ;;  %v5738_v60 = vpop.eup %5737  ;;  %v2372_v63 = vmul.f32 %v5736_v41, %v6629_v43 }
 0xae1   :  { %v2374_v0 = vmul.f32 %v5738_v60, %v6627_v42  ;;  %v2619_v28 = vpop.permute.xlu0 %2618 }
 0xae3   :  { %v2375_v55 = vpack.c.bf16 %v2374_v0, %v2372_v63  ;;  %v5740_v3 = vpop.eup %5739 }
 0xae4   :  { %5175 = vmatmul.mubr.msk.bf16.vlgmr.msra.gmra.mrb[60].mxu0 %vm792_vm11, %v2253_v47  ;;  %v5742_v6 = vpop.eup %5741  ;;  %v2495_v7 = vmul.f32 %v5740_v3, %v6641_v56 }
 0xae5   :  { %5185 = vmatpush3.bf16.msra.mxu0 %v2377_v58  ;;  %5186 = vmatprep.mubr.msk.bf16.mxu0 %vm5882_vm1, %v5881_v1  ;;  %v2493_v43 = vmul.f32 %v5742_v6, %v6633_v35 }
 0xae6   :  { %5196 = vmatprep.subr.bf16.mxu0 %v5881_v1 }
 0xae7   :  { %v2496_v8 = vpack.c.bf16 %v2495_v7, %v2493_v43  ;;  %v5744_v42 = vpop.eup %5743 }
 0xae8   :  { %v5746_v34 = vpop.eup %5745  ;;  %v2616_v39 = vmul.f32 %v5744_v42, %v6647_v61 }
 0xae9   :  { %v2614_v52 = vmul.f32 %v5746_v34, %v6635_v48 }
 0xaeb   :  { %v2617_v46 = vpack.c.bf16 %v2616_v39, %v2614_v52 }
 0xaec   :  { %5187 = vmatmul.mubr.msk.bf16.vlgmr.msra.gmra.mrb[64].mxu0 %vm792_vm11, %v2375_v55 }
 0xaed   :  { %5197 = vmatpush3.bf16.msra.mxu0 %v2498_v4  ;;  %5198 = vmatprep.mubr.msk.bf16.mxu0 %vm5882_vm1, %v5881_v1 }
 0xaee   :  { %5208 = vmatprep.subr.bf16.mxu0 %v5881_v1 }
 0xaf4   :  { %5199 = vmatmul.mubr.msk.bf16.vlgmr.msra.gmra.mrb[68].mxu0 %vm792_vm11, %v2496_v8 }
 0xaf5   :  { %5209 = vmatpush3.bf16.msra.mxu0 %v2619_v28  ;;  %5210 = vmatprep.mubr.msk.bf16.mxu0 %vm5882_vm1, %v5881_v1 }
 0xafc   :  { %5211 = vmatmul.mubr.msk.bf16.vlgmr.msra.gmra.mrb[72].mxu0 %vm792_vm11, %v2617_v46 }
 0xb6c   :  { %v1776_v56 = vpop.f32.mrb[44].mxu0 }
 0xb6d   :  { %v5128_v10 = vpop.f32.mrb[45].mxu0 }
 0xb6e   :  { %v1779_v35 = vpop.f32.mrb[46].mxu0 }
 0xb6f   :  { %v5129_v11 = vpop.f32.mrb[47].mxu0 }
 0xb9f   :  { %v1898_v21 = vpop.f32.mrb[48].mxu0 }
 0xba0   :  { %v5140_v31 = vpop.f32.mrb[49].mxu0 }
 0xba1   :  { %v1901_v44 = vpop.f32.mrb[50].mxu0 }
 0xba2   :  { %v5547_v12 = vpack.i.bf16 %v1901_v44, %v1898_v21  ;;  %v5141_v14 = vpop.f32.mrb[51].mxu0 }
 0xba4   :  { %5548 = vrot.lane.b32.xlu0 %v5547_v12, %s5895_s24 }
 0xba7   :  { %v2019_v51 = vpop.f32.mrb[52].mxu0 }
 0xba8   :  { %v5152_v50 = vpop.f32.mrb[53].mxu0 }
 0xba9   :  { %v2022_v49 = vpop.f32.mrb[54].mxu0 }
 0xbaa   :  { %v5552_v61 = vpack.i.bf16 %v2022_v49, %v2019_v51  ;;  %v5153_v48 = vpop.f32.mrb[55].mxu0 }
 0xbac   :  { %5553 = vrot.lane.b32.xlu0 %v5552_v61, %s5897_s6 }
 0xbaf   :  { %v2140_v15 = vpop.f32.mrb[56].mxu0 }
 0xbb0   :  { %v5164_v33 = vpop.f32.mrb[57].mxu0 }
 0xbb1   :  { %v2143_v17 = vpop.f32.mrb[58].mxu0 }
 0xbb2   :  { %v5557_v20 = vpack.i.bf16 %v2143_v17, %v2140_v15  ;;  %v5165_v24 = vpop.f32.mrb[59].mxu0 }
 0xbb4   :  { %5558 = vrot.lane.b32.xlu0 %v5557_v20, %s5896_s30  ;;  %v4717_v20 = vld [vmem:[%s7295_s27] ss:$0 sm:$0xff] }
 0xbb7   :  { %v2294_v9 = vpop.f32.mrb[60].mxu0 }
 0xbb8   :  { %v5176_v57 = vpop.f32.mrb[61].mxu0 }
 0xbb9   :  { %v2297_v53 = vpop.f32.mrb[62].mxu0 }
 0xbba   :  { %v5177_v27 = vpop.f32.mrb[63].mxu0 }
 0xbbf   :  { %v2416_v59 = vpop.f32.mrb[64].mxu0 }
 0xbc0   :  { %v5188_v16 = vpop.f32.mrb[65].mxu0 }
 0xbc1   :  { %v2419_v13 = vpop.f32.mrb[66].mxu0 }
 0xbc2   :  { %v5562_v45 = vpack.i.bf16 %v2419_v13, %v2416_v59  ;;  %v5189_v36 = vpop.f32.mrb[67].mxu0 }
 0xbc4   :  { %5563 = vrot.lane.b32.xlu1 %v5562_v45, %s5895_s24  ;;  %s7313_s24 = sld [smem:[#allocation26_spill]] }
 0xbc7   :  { %v2537_v2 = vpop.f32.mrb[68].mxu0 }
 0xbc8   :  { %v5200_v40 = vpop.f32.mrb[69].mxu0 }
 0xbc9   :  { %v2540_v5 = vpop.f32.mrb[70].mxu0 }
 0xbca   :  { %v5567_v23 = vpack.i.bf16 %v2540_v5, %v2537_v2  ;;  %v5201_v54 = vpop.f32.mrb[71].mxu0 }
 0xbcc   :  { %5568 = vrot.lane.b32.xlu1 %v5567_v23, %s5897_s6 }
 0xbcf   :  { %v2658_v47 = vpop.f32.mrb[72].mxu0 }
 0xbd0   :  { %v5212_v41 = vpop.f32.mrb[73].mxu0 }
 0xbd1   :  { %v2661_v58 = vpop.f32.mrb[74].mxu0 }
 0xbd2   :  { %v5572_v60 = vpack.i.bf16 %v2661_v58, %v2658_v47  ;;  %v5213_v63 = vpop.f32.mrb[75].mxu0 }
 0xbd4   :  { %5573 = vrot.lane.b32.xlu0 %v5572_v60, %s5896_s30  ;;  %s7314_s30 = sld [smem:[#allocation27_spill]] }
 0xc16   :  { %v5549_v38 = vpop.permute.xlu0 %5548 }
 0xc17   :  { %v5551_v55 = vunpack.i.h.bf16 %v5549_v38  ;;  %v5550_v3 = vunpack.i.l.bf16 %v5549_v38 }
 0xc19   :  { %v2172_v43 = vsel %vm341_vm4, %v1779_v35, %v5551_v55  ;;  %v2171_v8 = vsel %vm341_vm4, %v1776_v56, %v5550_v3 }
 0xc1e   :  { %v5554_v0 = vpop.permute.xlu0 %5553 }
 0xc1f   :  { %v5556_v4 = vunpack.i.h.bf16 %v5554_v0  ;;  %v5555_v6 = vunpack.i.l.bf16 %v5554_v0 }
 0xc21   :  { %v2174_v34 = vsel %vm792_vm11, %v2172_v43, %v5556_v4  ;;  %v2173_v39 = vsel %vm792_vm11, %v2171_v8, %v5555_v6 }
 0xc26   :  { %v5559_v7 = vpop.permute.xlu0 %5558 }
 0xc27   :  { %v5561_v42 = vunpack.i.h.bf16 %v5559_v7  ;;  %v5560_v28 = vunpack.i.l.bf16 %v5559_v7 }
 0xc29   :  { %v2176_v52 = vsel %vm194_vm2, %v2174_v34, %v5561_v42  ;;  %v2175_v46 = vsel %vm194_vm2, %v2173_v39, %v5560_v28  ;;  %v5617_v28 = vld [vmem:[%s7296_s15] sm:$0xff]   ;;  %v5618_v34 = vld [vmem:[%s7296_s15 + $0x8] sm:$0xff]  }
 0xc2a   :  { %v2695_v10 = vpack.c.bf16 %v2176_v52, %v2175_v46  ;;  %5222 = vmatprep.subr.bf16.mxu0 %v5617_v28  ;;  %v5619_v39 = vld [vmem:[%s7297_s16] sm:$0xff]   ;;  %v5620_v52 = vld [vmem:[%s7297_s16 + $0x8] sm:$0xff]  }
 0xc2b   :  { %5223 = vmatpush3.bf16.msra.mxu0 %v5617_v28  ;;  %5230 = vmatprep.subr.bf16.mxu1 %v5619_v39 }
 0xc2c   :  { %5218 = vmatprep.mubr.msk.bf16.mxu1 %vm290_vm3, %v2695_v10  ;;  %5224 = vmatprep.subr.bf16.mxu0 %v5618_v34 }
 0xc2f   :  { %5225 = vmatpush3.bf16.msra.mxu0 %v5618_v34 }
 0xc30   :  { %5242 = vmatprep.subr.bf16.mxu0 %v5881_v1 }
 0xc36   :  { %v5564_v11 = vpop.permute.xlu1 %5563 }
 0xc37   :  { %v5566_v31 = vunpack.i.h.bf16 %v5564_v11  ;;  %v5565_v35 = vunpack.i.l.bf16 %v5564_v11 }
 0xc39   :  { %v2690_v14 = vsel %vm341_vm4, %v2297_v53, %v5566_v31  ;;  %v2689_v51 = vsel %vm341_vm4, %v2294_v9, %v5565_v35 }
 0xc3e   :  { %v5569_v21 = vpop.permute.xlu1 %5568 }
 0xc3f   :  { %v5571_v44 = vunpack.i.h.bf16 %v5569_v21  ;;  %v5570_v56 = vunpack.i.l.bf16 %v5569_v21 }
 0xc41   :  { %v2692_v61 = vsel %vm792_vm11, %v2690_v14, %v5571_v44  ;;  %v2691_v48 = vsel %vm792_vm11, %v2689_v51, %v5570_v56 }
 0xc46   :  { %v5574_v12 = vpop.permute.xlu0 %5573 }
 0xc47   :  { %v5576_v50 = vunpack.i.h.bf16 %v5574_v12  ;;  %v5575_v49 = vunpack.i.l.bf16 %v5574_v12 }
 0xc49   :  { %v2694_v15 = vsel %vm194_vm2, %v2692_v61, %v5576_v50  ;;  %v2693_v33 = vsel %vm194_vm2, %v2691_v48, %v5575_v49  ;;  %v4722_v61 = vld [vmem:[%s7298_s18] ss:$0 sm:$0xff] }
 0xc4a   :  { %v2696_v17 = vpack.c.bf16 %v2694_v15, %v2693_v33 }
 0xc4c   :  { %5219 = vmatmul.mubr.msk.bf16.vlgmr.msra.gmra.mrb[72].mxu1 %vm290_vm3, %v2696_v17 }
 0xc4d   :  { %5231 = vmatpush3.bf16.msra.mxu1 %v5619_v39 }
 0xc4e   :  { %5232 = vmatprep.subr.bf16.mxu1 %v5620_v52 }
 0xc51   :  { %5233 = vmatpush3.bf16.msra.mxu1 %v5620_v52 }
 0xd1f   :  { %v5220_v24 = vpop.f32.mrb[72].mxu1 }
 0xd20   :  { %v2755_v57 = vpop.f32.mrb[73].mxu1  ;;  %v2764_v16 = vadd.f32 %v5220_v24, %v4717_v20 }
 0xd21   :  { %v2756_v27 = vadd.f32 %v4717_v20, %v2755_v57  ;;  %v5221_v53 = vpop.f32.mrb[74].mxu1 }
 0xd22   :  { %v2767_v59 = vadd.f32 %v5221_v53, %v4717_v20  ;;  %v2758_v9 = vpop.f32.mrb[75].mxu1  ;;  %v2772_v62 = vadd.f32 %v2764_v16, %v6416_v29 }
 0xd23   :  { %v2770_v13 = vadd.f32 %v2756_v27, %v6409_v22  ;;  %v2759_v18 = vadd.f32 %v4717_v20, %v2758_v9  ;;  %v4723_v20 = vld [vmem:[%s7299_s22] ss:$0 sm:$0xff] }
 0xd24   :  { %v2773_v45 = vadd.f32 %v2767_v59, %v6418_v30  ;;  %v2782_v23 = vsel %vm290_vm3, %v2772_v62, 0.0 }
 0xd25   :  { %v2771_v36 = vadd.f32 %v2759_v18, %v6406_v19  ;;  %v2776_v2 = vsel %vm290_vm3, %v2770_v13, 0.0 }
 0xd26   :  { %2777 = vadd.xlane.f32.xlu1 %v2776_v2  ;;  %v2785_v5 = vsel %vm290_vm3, %v2773_v45, 0.0 }
 0xd27   :  { %v2779_v40 = vsel %vm290_vm3, %v2771_v36, 0.0 }
 0xd28   :  { %2780 = vadd.xlane.f32.xlu0 %v2779_v40  ;;  %v5621_v40 = vld [vmem:[%s7297_s16 + $0x10] sm:$0xff]  }
 0xd29   :  { %5234 = vmatprep.subr.bf16.mxu1 %v5621_v40 }
 0xd2a   :  { %2786 = vadd.xlane.f32.xlu1 %v2785_v5  ;;  %5235 = vmatpush3.bf16.msra.mxu1 %v5621_v40  ;;  %v5622_v5 = vld [vmem:[%s7297_s16 + $0x18] sm:$0xff]   ;;  %v6784_v40 = vld [vmem:[%s7305_s5] ss:$0 sm:$0xff] }
 0xd2b   :  { %5236 = vmatprep.subr.bf16.mxu1 %v5622_v5 }
 0xd2c   :  { %2783 = vadd.xlane.f32.xlu0 %v2782_v23  ;;  %v4724_v23 = vld [vmem:[%s7300_s23] ss:$0 sm:$0xff] }
 0xd2e   :  { %5237 = vmatpush3.bf16.msra.mxu1 %v5622_v5 }
 0xd2f   :  { %5254 = vmatprep.subr.bf16.mxu1 %v5881_v1 }
 0xdb3   :  { %v2778_v22 = vpop.xlane.xlu1 %2777 }
 0xdb4   :  { %v2788_v54 = vmul.f32 0.03125, %v2778_v22 }
 0xdb5   :  { %v2781_v47 = vpop.xlane.xlu0 %2780 }
 0xdb6   :  { %v2792_v30 = vsub.f32 %v2770_v13, %v2788_v54  ;;  %v2789_v41 = vmul.f32 0.03125, %v2781_v47 }
 0xdb7   :  { %v2787_v19 = vpop.xlane.xlu1 %2786 }
 0xdb8   :  { %v2793_v58 = vsub.f32 %v2771_v36, %v2789_v41  ;;  %v2791_v60 = vmul.f32 0.03125, %v2787_v19  ;;  %v2796_v63 = vmul.f32 %v2792_v30, %v2792_v30 }
 0xdb9   :  { %v2784_v29 = vpop.xlane.xlu0 %2783 }
 0xdba   :  { %v2795_v38 = vsub.f32 %v2773_v45, %v2791_v60  ;;  %v2790_v0 = vmul.f32 0.03125, %v2784_v29  ;;  %v2800_v55 = vsel %vm290_vm3, %v2796_v63, 0.0  ;;  %v2797_v3 = vmul.f32 %v2793_v58, %v2793_v58 }
 0xdbb   :  { %2801 = vadd.xlane.f32.xlu0 %v2800_v55 }
 0xdbc   :  { %v2794_v4 = vsub.f32 %v2772_v62, %v2790_v0  ;;  %v2803_v6 = vsel %vm290_vm3, %v2797_v3, 0.0  ;;  %v2799_v7 = vmul.f32 %v2795_v38, %v2795_v38 }
 0xdbd   :  { %2804 = vadd.xlane.f32.xlu1 %v2803_v6 }
 0xdbe   :  { %v2798_v43 = vmul.f32 %v2794_v4, %v2794_v4  ;;  %v2809_v42 = vsel %vm290_vm3, %v2799_v7, 0.0 }
 0xdc0   :  { %v2806_v8 = vsel %vm290_vm3, %v2798_v43, 0.0 }
 0xdc1   :  { %2807 = vadd.xlane.f32.xlu0 %v2806_v8  ;;  %2810 = vadd.xlane.f32.xlu1 %v2809_v42  ;;  %v5815_v8 = vld [vmem:[%s7292_s3] ss:$0 sm:$0xff] }
 0xdc2   :  { %v1310_v42 = vadd.f32 %v5815_v8, %v6425_v32  ;;  %v3107_v32 = vld [vmem:[%s7302_s28] sm:$0xff] }
 0xe48   :  { %v2802_v46 = vpop.xlane.xlu0 %2801 }
 0xe49   :  { %v2812_v10 = vmul.f32 0.03125, %v2802_v46 }
 0xe4a   :  { %v2805_v11 = vpop.xlane.xlu1 %2804 }
 0xe4b   :  { %v2816_v21 = vadd.f32 1e-05, %v2812_v10  ;;  %v2813_v31 = vmul.f32 0.03125, %v2805_v11  ;;  %v1316_v11 = vadd.f32 %v1310_v42, %v6138_v25 }
 0xe4d   :  { %5747 = vrsqrt.f32 %v2816_v21  ;;  %v2817_v35 = vadd.f32 1e-05, %v2813_v31 }
 0xe4e   :  { %v2808_v44 = vpop.xlane.xlu0 %2807  ;;  %v2811_v56 = vpop.xlane.xlu1 %2810 }
 0xe4f   :  { %5749 = vrsqrt.f32 %v2817_v35  ;;  %v2814_v12 = vmul.f32 0.03125, %v2808_v44  ;;  %v2815_v14 = vmul.f32 0.03125, %v2811_v56  ;;  %v1320_v44 = vsel %vm290_vm3, %v1316_v11, 0.0 }
 0xe51   :  { %v2818_v51 = vadd.f32 1e-05, %v2814_v12  ;;  %v2819_v50 = vadd.f32 1e-05, %v2815_v14 }
 0xe53   :  { %5751 = vrsqrt.f32 %v2818_v51 }
 0xe54   :  { %5753 = vrsqrt.f32 %v2819_v50 }
 0xe57   :  { %v5748_v49 = vpop.eup %5747 }
 0xe58   :  { %v2824_v48 = vmul.f32 %v5748_v49, %v2792_v30 }
 0xe59   :  { %v5750_v15 = vpop.eup %5749 }
 0xe5a   :  { %v2825_v33 = vmul.f32 %v5750_v15, %v2793_v58  ;;  %v2834_v17 = vmul.f32 %v4722_v61, %v2824_v48 }
 0xe5c   :  { %v2835_v24 = vmul.f32 %v4722_v61, %v2825_v33  ;;  %v2844_v59 = vadd.f32 %v4723_v20, %v2834_v17  ;;  %v3108_v17 = vld [vmem:[%s7302_s28 + $0x8] sm:$0xff] }
 0xe5d   :  { %v5752_v57 = vpop.eup %5751 }
 0xe5e   :  { %v5754_v27 = vpop.eup %5753  ;;  %v2826_v53 = vmul.f32 %v5752_v57, %v2794_v4  ;;  %v2845_v9 = vadd.f32 %v4723_v20, %v2835_v24  ;;  %v4729_v4 = vld [vmem:[%s7301_s26] ss:$0 sm:$0xff] }
 0xe5f   :  { %v2827_v16 = vmul.f32 %v5754_v27, %v2795_v38 }
 0xe60   :  { %v2836_v13 = vmul.f32 %v4722_v61, %v2826_v53  ;;  %v2852_v18 = vpack.c.bf16 %v2845_v9, %v2844_v59 }
 0xe61   :  { %v2837_v45 = vmul.f32 %v4722_v61, %v2827_v16 }
 0xe62   :  { %5226 = vmatprep.mubr.msk.bf16.mxu0 %vm290_vm3, %v2852_v18  ;;  %v6745_v36 = vadd.f32 %v4723_v20, %v2836_v13 }
 0xe63   :  { %v6747_v2 = vadd.f32 %v4723_v20, %v2837_v45  ;;  %v3110_v20 = vld [vmem:[%s7303_s1 + $0x8] sm:$0xff]  ;;  %v6781_v45 = vld [vmem:[%s7304_s2] ss:$0 sm:$0xff] }
 0xe65   :  { %v2853_v62 = vpack.c.bf16 %v6747_v2, %v6745_v36 }
 0xe67   :  { %5227 = vmatmul.mubr.msk.bf16.vlgmr.msra.gmra.mrb[76].mxu0 %vm290_vm3, %v2853_v62 }
 0xe68   :  { %5244 = vmatprep.mubr.msk.bf16.mxu0 %vm5882_vm1, %v5881_v1 }
 0xf3a   :  { %v5228_v22 = vpop.f32.mrb[76].mxu0 }
 0xf3b   :  { %v2922_v54 = vadd.f32 %v5228_v22, %v4724_v23  ;;  %v2913_v47 = vpop.f32.mrb[77].mxu0 }
 0xf3c   :  { %v2914_v30 = vadd.f32 %v4724_v23, %v2913_v47  ;;  %v5229_v41 = vpop.f32.mrb[78].mxu0 }
 0xf3d   :  { %v2925_v19 = vadd.f32 %v5229_v41, %v4724_v23  ;;  %v2916_v58 = vpop.f32.mrb[79].mxu0  ;;  %v2930_v63 = vmax.f32 %v2922_v54, 0.0 }
 0xf3e   :  { %v2917_v60 = vadd.f32 %v4724_v23, %v2916_v58  ;;  %v2928_v38 = vmax.f32 %v2914_v30, 0.0 }
 0xf3f   :  { %v2931_v29 = vmax.f32 %v2925_v19, 0.0 }
 0xf40   :  { %v2929_v0 = vmax.f32 %v2917_v60, 0.0 }
 0xf41   :  { %v2941_v55 = vpack.c.bf16 %v2931_v29, %v2930_v63 }
 0xf42   :  { %v2940_v3 = vpack.c.bf16 %v2929_v0, %v2928_v38 }
 0xf44   :  { %5238 = vmatprep.mubr.msk.bf16.mxu1 %vm2973_vm12, %v2940_v3 }
 0xf45   :  { %5239 = vmatmul.mubr.msk.bf16.vlgmr.msra.gmra.mrb[76].mxu1 %vm2973_vm12, %v2941_v55  ;;  %v6799_v55 = vld [vmem:[%s7306_s9] ss:$0 sm:$0xff] }
 0xf46   :  { %5256 = vmatprep.mubr.msk.bf16.mxu1 %vm5882_vm1, %v5881_v1 }
0x1018   :  { %v5240_v6 = vpop.f32.mrb[76].mxu1 }
0x1019   :  { %v6763_v7 = vadd.f32 %v5240_v6, %v4729_v4  ;;  %v3014_v43 = vpop.f32.mrb[77].mxu1 }
0x101a   :  { %v3015_v28 = vadd.f32 %v4729_v4, %v3014_v43  ;;  %v5241_v34 = vpop.f32.mrb[78].mxu1 }
0x101b   :  { %v6767_v39 = vadd.f32 %v5241_v34, %v4729_v4  ;;  %v3017_v52 = vpop.f32.mrb[79].mxu1 }
0x101c   :  { %v3029_v46 = vadd.f32 %v3015_v28, %v2844_v59  ;;  %v3018_v10 = vadd.f32 %v4729_v4, %v3017_v52  ;;  %v3109_v59 = vld [vmem:[%s7303_s1] sm:$0xff] }
0x101d   :  { %v6803_v4 = vld [vmem:[%s7307_s13] ss:$0 sm:$0xff] }
0x101e   :  { %v3030_v21 = vadd.f32 %v3018_v10, %v2845_v9  ;;  %v3035_v31 = vsel %vm290_vm3, %v3029_v46, 0.0 }
0x101f   :  { %3036 = vadd.xlane.f32.xlu0 %v3035_v31 }
0x1020   :  { %v3038_v35 = vsel %vm290_vm3, %v3030_v21, 0.0 }
0x1021   :  { %3039 = vadd.xlane.f32.xlu1 %v3038_v35 }
0x1023   :  { %1321 = vadd.xlane.f32.xlu0 %v1320_v44 }
0x1039   :  { %3113 = vperm.xlu0 %5530, %v3107_v32  }
0x10ac   :  { %v3037_v56 = vpop.xlane.xlu0 %3036 }
0x10ad   :  { %v3047_v24 = vmul.f32 0.03125, %v3037_v56 }
0x10ae   :  { %v3040_v12 = vpop.xlane.xlu1 %3039 }
0x10af   :  { %v3048_v14 = vmul.f32 0.03125, %v3040_v12  ;;  %v3051_v57 = vsub.f32 %v3029_v46, %v3047_v24 }
0x10b0   :  { %v1322_v51 = vpop.xlane.xlu0 %1321 }
0x10b1   :  { %v3052_v50 = vsub.f32 %v3030_v21, %v3048_v14  ;;  %v1327_v25 = vmul.f32 0.03125, %v1322_v51  ;;  %v3055_v27 = vmul.f32 %v3051_v57, %v3051_v57 }
0x10b3   :  { %v1329_v49 = vsub.f32 %v1316_v11, %v1327_v25  ;;  %v3056_v61 = vmul.f32 %v3052_v50, %v3052_v50  ;;  %v3059_v53 = vsel %vm290_vm3, %v3055_v27, 0.0 }
0x10b5   :  { %v3062_v48 = vsel %vm290_vm3, %v3056_v61, 0.0  ;;  %v1331_v15 = vmul.f32 %v1329_v49, %v1329_v49 }
0x10b6   :  { %3063 = vadd.xlane.f32.xlu0 %v3062_v48 }
0x10b7   :  { %v1333_v33 = vsel %vm290_vm3, %v1331_v15, 0.0 }
0x10b8   :  { %1334 = vadd.xlane.f32.xlu1 %v1333_v33  ;;  %v6794_v47 = vpop.permute.xlu0 %3113 }
0x10c9   :  { %3118 = vperm.xlu1 %5531, %v3108_v17  }
0x10cc   :  { %3132 = vperm.xlu0 %5530, %v3110_v20  }
0x10ed   :  { %3060 = vadd.xlane.f32.xlu1 %v3059_v53 }
0x10fe   :  { %3127 = vperm.xlu1 %5531, %v3109_v59  }
0x1143   :  { %v3064_v30 = vpop.xlane.xlu0 %3063 }
0x1144   :  { %v3072_v41 = vmul.f32 0.03125, %v3064_v30 }
0x1145   :  { %v1335_v9 = vpop.xlane.xlu1 %1334 }
0x1146   :  { %v1339_v16 = vmul.f32 0.03125, %v1335_v9  ;;  %v3076_v19 = vadd.f32 1e-05, %v3072_v41 }
0x1148   :  { %v1341_v13 = vadd.f32 1e-05, %v1339_v16 }
0x1149   :  { %v6796_v58 = vpop.permute.xlu1 %3118 }
0x114a   :  { %5755 = vrsqrt.f32 %v1341_v13 }
0x114b   :  { %5757 = vrsqrt.f32 %v3076_v19  ;;  %v6809_v52 = vpop.permute.xlu0 %3132 }
0x1154   :  { %v5756_v18 = vpop.eup %5755 }
0x1155   :  { %v1345_v62 = vmul.f32 %v5756_v18, %v1329_v49  ;;  %v5758_v29 = vpop.eup %5757 }
0x1156   :  { %v3084_v0 = vmul.f32 %v5758_v29, %v3052_v50 }
0x1157   :  { %v1353_v5 = vmul.f32 %v6781_v45, %v1345_v62 }
0x1158   :  { %v3094_v3 = vmul.f32 %v6799_v55, %v3084_v0 }
0x1159   :  { %v6788_v23 = vadd.f32 %v6784_v40, %v1353_v5 }
0x115a   :  { %v3104_v6 = vadd.f32 %v6803_v4, %v3094_v3 }
0x115b   :  { %v3175_v22 = vpack.c.bf16 %v6788_v23, %v6788_v23 }
0x115c   :  { %v3122_v42 = vmul.f32 %v6796_v58, %v3104_v6 }
0x115d   :  { %v3316_v54 = vsel %vm198_vm0, %v3175_v22, 0 }
0x115e   :  { %5255 = vmatpush3.bf16.msra.mxu1 %v3316_v54  ;;  %v3136_v46 = vadd.f32 %v6809_v52, %v3122_v42  ;;  %v6869_v42 = vld [vmem:[%s7308_s17 + $0x20] sm:$0xff]  }
0x115f   :  { %5280 = vmatprep.subr.bf16.mxu1 %v5881_v1 }
0x1160   :  { %v6816_v31 = vadd.f32 %v3136_v46, %v3104_v6  ;;  %v6854_v6 = vld [vmem:[%s7308_s17 + $0x8] sm:$0xff]  }
0x117a   :  { %v3061_v60 = vpop.xlane.xlu1 %3060 }
0x117b   :  { %v3071_v63 = vmul.f32 0.03125, %v3061_v60  ;;  %v6833_v60 = vadd.f32 %v6767_v39, %v6747_v2  ;;  %v6850_v39 = vld [vmem:[%s7308_s17] sm:$0xff]  }
0x117d   :  { %v3075_v38 = vadd.f32 1e-05, %v3071_v63  ;;  %v6837_v63 = vadd.f32 %v6428_v37, %v6140_v26  ;;  %v3044_v29 = vsel %vm290_vm3, %v6833_v60, 0.0 }
0x117e   :  { %v6813_v11 = vpop.permute.xlu1 %3127 }
0x117f   :  { %5759 = vrsqrt.f32 %v3075_v38  ;;  %v1323_v38 = vsel %vm290_vm3, %v6837_v63, 0.0 }
0x1189   :  { %v5760_v43 = vpop.eup %5759 }
0x118a   :  { %v3083_v8 = vmul.f32 %v5760_v43, %v3051_v57  ;;  %v6859_v43 = vld [vmem:[%s7308_s17 + $0x10] sm:$0xff]  }
0x118c   :  { %v3093_v28 = vmul.f32 %v6799_v55, %v3083_v8  ;;  %v6864_v8 = vld [vmem:[%s7308_s17 + $0x18] sm:$0xff]  }
0x118e   :  { %v3103_v34 = vadd.f32 %v6803_v4, %v3093_v28  ;;  %v6875_v28 = vld [vmem:[%s7308_s17 + $0x28] sm:$0xff]  }
0x1190   :  { %v3121_v10 = vmul.f32 %v6794_v47, %v3103_v34 }
0x1192   :  { %v3135_v21 = vadd.f32 %v6813_v11, %v3121_v10 }
0x1194   :  { %v6818_v35 = vadd.f32 %v3135_v21, %v3103_v34  ;;  %v6880_v34 = vld [vmem:[%s7308_s17 + $0x30] sm:$0xff]  }
0x1196   :  { %v3176_v44 = vpack.c.bf16 %v6816_v31, %v6818_v35 }
0x1198   :  { %v3181_v32 = vsel %vm290_vm3, %v3176_v44, 0 }
0x1199   :  { %5243 = vmatpush3.bf16.xpose.msra.mxu0 %v3181_v32 }
0x119a   :  { %5248 = vmatprep.subr.bf16.mxu0 %v5881_v1 }
0x11a0   :  { %5245 = vmatmul.mubr.msk.bf16.vlgmr.msra.gmra.mrb[80].mxu0 %vm290_vm3, %v3175_v22 }
0x11a1   :  { %5249 = vmatpush3.bf16.msra.mxu0 %v3176_v44  ;;  %5250 = vmatprep.mubr.msk.bf16.mxu0 %vm5882_vm1, %v5881_v1 }
0x11a2   :  { %5260 = vmatprep.subr.bf16.mxu0 %v5881_v1 }
0x1273   :  { %v3217_v56 = vpop.f32.mrb[80].mxu0 }
0x1274   :  { %v5246_v12 = vpop.f32.mrb[81].mxu0  ;;  %v3223_v14 = vsel %vm792_vm11, %v3217_v56, -inf }
0x1275   :  { %3224 = vmax.xlane.f32.xlu1 %v3223_v14  ;;  %v3234_v51 = vrot.slane %v3223_v14, 4  ;;  %v3220_v50 = vpop.f32.mrb[82].mxu0 }
0x1276   :  { %v5247_v25 = vpop.f32.mrb[83].mxu0 }
0x1277   :  { %v3235_v49 = vmax.f32 %v3223_v14, %v3234_v51  ;;  %v6889_v51 = vld [vmem:[%s7308_s17 + $0x38] sm:$0xff]  }
0x1279   :  { %v3236_v61 = vrot.slane %v3235_v49, 2 }
0x127b   :  { %v3237_v48 = vmax.f32 %v3235_v49, %v3236_v61 }
0x127d   :  { %v3238_v15 = vrot.slane %v3237_v48, 1 }
0x127f   :  { %v3239_v33 = vmax.f32 %v3237_v48, %v3238_v15 }
0x1281   :  { %v3240_v17 = vsub.f32 %v3217_v56, %v3239_v33 }
0x1283   :  { %v3241_v20 = vmul.f32 1.442695, %v3240_v17 }
0x1285   :  { %5761 = vpow2.f32 %v3241_v20 }
0x128f   :  { %v5762_v53 = vpop.eup %5761 }
0x1290   :  { %v3243_v9 = vsel %vm792_vm11, %v5762_v53, 0.0 }
0x1291   :  { %v3244_v13 = vrot.slane %v3243_v9, 4 }
0x1293   :  { %v3245_v18 = vadd.f32 %v3244_v13, %v3243_v9 }
0x1295   :  { %v3246_v62 = vrot.slane %v3245_v18, 2 }
0x1297   :  { %v3247_v5 = vadd.f32 %v3246_v62, %v3245_v18 }
0x1299   :  { %v3248_v22 = vrot.slane %v3247_v5, 1 }
0x129b   :  { %v3249_v54 = vadd.f32 %v3248_v22, %v3247_v5 }
0x1302   :  { %v3225_v24 = vpop.xlane.xlu1 %3224 }
0x1303   :  { %v3226_v57 = vsub.f32 %v3217_v56, %v3225_v24  ;;  %v3031_v24 = vadd.f32 %v6763_v7, %v6745_v36 }
0x1305   :  { %v3227_v27 = vmul.f32 1.442695, %v3226_v57  ;;  %v3041_v57 = vsel %vm290_vm3, %v3031_v24, 0.0 }
0x1307   :  { %5763 = vpow2.f32 %v3227_v27  ;;  %v6905_v27 = vld [vmem:[%s7309_s21] sm:$0xff]  }
0x1308   :  { %5765 = vrcp.f32 %v3249_v54 }
0x1311   :  { %v5764_v59 = vpop.eup %5763 }
0x1312   :  { %v3229_v16 = vsel %vm792_vm11, %v5764_v59, 0.0  ;;  %v5766_v30 = vpop.eup %5765 }
0x1313   :  { %3230 = vadd.xlane.f32.xlu0 %v3229_v16  ;;  %v3251_v41 = vmul.f32 %v5766_v30, %v5762_v53  ;;  %v6909_v53 = vld [vmem:[%s7309_s21 + $0x8] sm:$0xff]  }
0x1315   :  { %v3296_v19 = vpack.c.bf16 %v3251_v41, %v3251_v41 }
0x1340   :  { %3297 = vxpose.xlu0.c.b16.start.end [1/1] (short) (narrow) %v3296_v19, 16 }
0x134d   :  { %3045 = vadd.xlane.f32.xlu0 %v3044_v29 }
0x1351   :  { %1324 = vadd.xlane.f32.xlu0 %v1323_v38 }
0x13a0   :  { %v3231_v0 = vpop.xlane.xlu0 %3230 }
0x13a1   :  { %5767 = vrcp.f32 %v3231_v0 }
0x13a6   :  { %v3305_v3 = vpop.trf.xlu0 }
0x13a7   :  { %5257 = vmatmul.mubr.msk.bf16.vlgmr.msra.gmra.mrb[80].mxu1 %vm341_vm4, %v3305_v3 }
0x13a8   :  { %5288 = vmatprep.mubr.msk.bf16.mxu1 %vm5882_vm1, %v5881_v1  ;;  %5281 = vmatpush3.bf16.msra.mxu1 %v6905_v27 }
0x13a9   :  { %5282 = vmatprep.subr.bf16.mxu1 %v5881_v1 }
0x13ab   :  { %v5768_v26 = vpop.eup %5767 }
0x13ac   :  { %v3233_v37 = vmul.f32 %v5768_v26, %v5764_v59  ;;  %5283 = vmatpush3.bf16.msra.mxu1 %v6909_v53  ;;  %v6914_v59 = vld [vmem:[%s7309_s21 + $0x10] sm:$0xff]  }
0x13ad   :  { %5284 = vmatprep.subr.bf16.mxu1 %v5881_v1 }
0x13ae   :  { %v3252_v2 = vpack.c.bf16 %v3233_v37, %v3233_v37 }
0x13b0   :  { %5251 = vmatmul.mubr.msk.bf16.vlgmr.msra.gmra.mrb[84].mxu0 %vm792_vm11, %v3252_v2  ;;  %5285 = vmatpush3.bf16.msra.mxu1 %v6914_v59 }
0x13b1   :  { %5276 = vmatprep.mubr.msk.bf16.mxu0 %vm5882_vm1, %v5881_v1  ;;  %5261 = vmatpush3.bf16.msra.mxu0 %v6850_v39 }
0x13b2   :  { %5262 = vmatprep.subr.bf16.mxu0 %v5881_v1  ;;  %5286 = vmatprep.subr.bf16.mxu1 %v5881_v1 }
0x13b5   :  { %5263 = vmatpush3.bf16.msra.mxu0 %v6854_v6 }
0x13b6   :  { %5264 = vmatprep.subr.bf16.mxu0 %v5881_v1 }
0x13b9   :  { %5265 = vmatpush3.bf16.msra.mxu0 %v6859_v43 }
0x13ba   :  { %5266 = vmatprep.subr.bf16.mxu0 %v5881_v1 }
0x13bd   :  { %5267 = vmatpush3.bf16.msra.mxu0 %v6864_v8 }
0x13be   :  { %5268 = vmatprep.subr.bf16.mxu0 %v5881_v1 }
0x13c1   :  { %5269 = vmatpush3.bf16.msra.mxu0 %v6869_v42 }
0x13c2   :  { %5270 = vmatprep.subr.bf16.mxu0 %v5881_v1 }
0x13c5   :  { %5271 = vmatpush3.bf16.msra.mxu0 %v6875_v28 }
0x13c6   :  { %5272 = vmatprep.subr.bf16.mxu0 %v5881_v1 }
0x13c9   :  { %5273 = vmatpush3.bf16.msra.mxu0 %v6880_v34 }
0x13ca   :  { %5274 = vmatprep.subr.bf16.mxu0 %v5881_v1 }
0x13cd   :  { %5275 = vmatpush3.bf16.msra.mxu0 %v6889_v51 }
0x13ce   :  { %5312 = vmatprep.subr.bf16.mxu0 %v5881_v1 }
0x147a   :  { %v3352_v46 = vpop.f32.mrb[80].mxu1 }
0x147b   :  { %v5258_v10 = vpop.f32.mrb[81].mxu1  ;;  %v3548_v21 = vsub.f32 %v6818_v35, %v3352_v46  ;;  %v3550_v32 = vmul.f32 %v3352_v46, %v6818_v35 }
0x147c   :  { %v3355_v44 = vpop.f32.mrb[82].mxu1  ;;  %v3046_v10 = vpop.xlane.xlu0 %3045 }
0x147d   :  { %v5577_v56 = vpack.i.bf16 %v3355_v44, %v3352_v46  ;;  %v3551_v12 = vmul.f32 %v3355_v44, %v6816_v31  ;;  %v3549_v14 = vsub.f32 %v6816_v31, %v3355_v44  ;;  %v5259_v50 = vpop.f32.mrb[83].mxu1 }
0x147f   :  { %v5587_v25 = vpack.i.bf16 %v3551_v12, %v3550_v32  ;;  %v5582_v49 = vpack.i.bf16 %v3549_v14, %v3548_v21 }
0x1480   :  { %v1325_v21 = vpop.xlane.xlu0 %1324 }
0x1481   :  { %v1328_v12 = vmul.f32 0.03125, %v1325_v21 }
0x1483   :  { %v3290_v61 = vpop.f32.mrb[84].mxu0 }
0x1484   :  { %3362 = vrot.lane.b32.xlu1 %v3290_v61, %s5898_s25  ;;  %v5252_v48 = vpop.f32.mrb[85].mxu0  ;;  %v3359_v33 = vsub.f32 %v6788_v23, %v3290_v61  ;;  %v3360_v20 = vmul.f32 %v3290_v61, %v6788_v23 }
0x1485   :  { %v3293_v15 = vpop.f32.mrb[86].mxu0 }
0x1486   :  { %v5253_v17 = vpop.f32.mrb[87].mxu0  ;;  %v6956_v15 = vld [vmem:[%s7309_s21 + $0x18] sm:$0xff]  }
0x1487   :  { %5287 = vmatpush3.bf16.msra.mxu1 %v6956_v15 }
0x1488   :  { %3366 = vrot.lane.b32.xlu1 %v3359_v33, %s5892_s7  ;;  %5292 = vmatprep.subr.bf16.mxu1 %v5881_v1 }
0x148c   :  { %3370 = vrot.lane.b32.xlu1 %v3360_v20, %s5884_s0 }
0x1490   :  { %5578 = vrot.lane.b32.xlu1 %v5577_v56, %s5898_s25 }
0x1494   :  { %5583 = vrot.lane.b32.xlu1 %v5582_v49, %s5892_s7 }
0x1498   :  { %5588 = vrot.lane.b32.xlu1 %v5587_v25, %s5884_s0  ;;  %v6947_v25 = vsub.f32 %v6837_v63, %v1328_v12  ;;  %v6964_v63 = vld [vmem:[%s7310_s29] ss:$0 sm:$0xff] }
0x14bc   :  { %3042 = vadd.xlane.f32.xlu1 %v3041_v57 }
0x14f6   :  { %v3363_v36 = vpop.permute.xlu1 %3362 }
0x14f7   :  { %v3373_v9 = vsel %vm290_vm3, %v6788_v23, %v3363_v36 }
0x14fa   :  { %v3367_v7 = vpop.permute.xlu1 %3366 }
0x14fb   :  { %v3374_v16 = vsel %vm2973_vm12, %v3373_v9, %v3367_v7 }
0x14fe   :  { %v3371_v13 = vpop.permute.xlu1 %3370 }
0x14ff   :  { %v3376_v18 = vsel %vm3375_vm13, %v3374_v16, %v3371_v13  ;;  %v6989_v16 = vld [vmem:[%s7311_s10] sm:$0xff]   ;;  %v6994_v13 = vld [vmem:[%s7311_s10 + $0x8] sm:$0xff]  }
0x1500   :  { %v3377_v62 = vpack.c.bf16 %v3376_v18, %v3376_v18 }
0x1502   :  { %5277 = vmatmul.mubr.bf16.vlgmr.msra.gmra.mrb[88].mxu0 %v3377_v62  ;;  %v5579_v5 = vpop.permute.xlu1 %5578 }
0x1503   :  { %5313 = vmatpush3.bf16.msra.mxu0 %v6905_v27  ;;  %5320 = vmatprep.mubr.msk.bf16.mxu0 %vm5882_vm1, %v5881_v1  ;;  %v5581_v22 = vunpack.i.h.bf16 %v5579_v5  ;;  %v5580_v54 = vunpack.i.l.bf16 %v5579_v5 }
0x1504   :  { %5314 = vmatprep.subr.bf16.mxu0 %v5881_v1 }
0x1505   :  { %v3577_v19 = vsel %vm290_vm3, %v6816_v31, %v5581_v22  ;;  %v3576_v29 = vsel %vm290_vm3, %v6818_v35, %v5580_v54  ;;  %v3050_v35 = vmul.f32 0.03125, %v3046_v10 }
0x1506   :  { %v5584_v30 = vpop.permute.xlu1 %5583 }
0x1507   :  { %v5586_v41 = vunpack.i.h.bf16 %v5584_v30  ;;  %v5585_v23 = vunpack.i.l.bf16 %v5584_v30  ;;  %5315 = vmatpush3.bf16.msra.mxu0 %v6909_v53  ;;  %v6940_v56 = vsub.f32 %v6833_v60, %v3050_v35  ;;  %v1332_v60 = vmul.f32 %v6947_v25, %v6947_v25 }
0x1508   :  { %5316 = vmatprep.subr.bf16.mxu0 %v5881_v1 }
0x1509   :  { %v3578_v38 = vsel %vm2973_vm12, %v3576_v29, %v5585_v23  ;;  %v3579_v0 = vsel %vm2973_vm12, %v3577_v19, %v5586_v41  ;;  %v3058_v61 = vmul.f32 %v6940_v56, %v6940_v56  ;;  %v1336_v33 = vsel %vm290_vm3, %v1332_v60, 0.0 }
0x150a   :  { %v5589_v3 = vpop.permute.xlu1 %5588 }
0x150b   :  { %v5591_v26 = vunpack.i.h.bf16 %v5589_v3  ;;  %v5590_v37 = vunpack.i.l.bf16 %v5589_v3  ;;  %5317 = vmatpush3.bf16.msra.mxu0 %v6914_v59  ;;  %v3068_v48 = vsel %vm290_vm3, %v3058_v61, 0.0  ;;  %v7006_v61 = vld [vmem:[%s7312_s11] ss:$0 sm:$0xff] }
0x150c   :  { %5318 = vmatprep.subr.bf16.mxu0 %v5881_v1 }
0x150d   :  { %v3580_v2 = vsel %vm3375_vm13, %v3578_v38, %v5590_v37  ;;  %v3581_v31 = vsel %vm3375_vm13, %v3579_v0, %v5591_v26 }
0x150e   :  { %v3582_v46 = vpack.c.bf16 %v3581_v31, %v3580_v2 }
0x150f   :  { %5319 = vmatpush3.bf16.msra.mxu0 %v6956_v15 }
0x1510   :  { %5324 = vmatprep.subr.bf16.mxu0 %v5881_v1 }
0x1549   :  { %v3043_v44 = vpop.xlane.xlu1 %3042 }
0x154a   :  { %v3049_v32 = vmul.f32 0.03125, %v3043_v44 }
0x154c   :  { %v6942_v14 = vsub.f32 %v3031_v24, %v3049_v32 }
0x154e   :  { %v3057_v50 = vmul.f32 %v6942_v14, %v6942_v14 }
0x1550   :  { %v3065_v49 = vsel %vm290_vm3, %v3057_v50, 0.0 }
0x1551   :  { %3066 = vadd.xlane.f32.xlu0 %v3065_v49 }
0x1555   :  { %3069 = vadd.xlane.f32.xlu0 %v3068_v48 }
0x1559   :  { %1337 = vadd.xlane.f32.xlu0 %v1336_v33 }
0x15d5   :  { %v3466_v17 = vpop.f32.mrb[88].mxu0 }
0x15d6   :  { %v3467_v20 = vadd.f32 %v6964_v63, %v3466_v17  ;;  %v5278_v24 = vpop.f32.mrb[89].mxu0 }
0x15d7   :  { %v3469_v57 = vpop.f32.mrb[90].mxu0 }
0x15d8   :  { %v3472_v36 = vmax.f32 %v3467_v20, 0.0  ;;  %v5279_v7 = vpop.f32.mrb[91].mxu0 }
0x15da   :  { %v3473_v9 = vpack.c.bf16 %v3472_v36, %v3472_v36 }
0x15dc   :  { %5289 = vmatmul.mubr.msk.bf16.vlgmr.msra.gmra.mrb[84].mxu1 %vm2973_vm12, %v3473_v9 }
0x15dd   :  { %5293 = vmatpush3.bf16.msra.mxu1 %v6850_v39  ;;  %5308 = vmatprep.mubr.msk.bf16.mxu1 %vm5882_vm1, %v5881_v1 }
0x15de   :  { %5294 = vmatprep.subr.bf16.mxu1 %v5881_v1  ;;  %v3067_v18 = vpop.xlane.xlu0 %3066 }
0x15df   :  { %v3073_v23 = vmul.f32 0.03125, %v3067_v18 }
0x15e1   :  { %5295 = vmatpush3.bf16.msra.mxu1 %v6854_v6  ;;  %v3077_v29 = vadd.f32 1e-05, %v3073_v23 }
0x15e2   :  { %5296 = vmatprep.subr.bf16.mxu1 %v5881_v1  ;;  %v3070_v22 = vpop.xlane.xlu0 %3069 }
0x15e3   :  { %v3074_v41 = vmul.f32 0.03125, %v3070_v22 }
0x15e5   :  { %5297 = vmatpush3.bf16.msra.mxu1 %v6859_v43  ;;  %v3078_v19 = vadd.f32 1e-05, %v3074_v41 }
0x15e6   :  { %5298 = vmatprep.subr.bf16.mxu1 %v5881_v1  ;;  %v1338_v38 = vpop.xlane.xlu0 %1337 }
0x15e7   :  { %5769 = vrsqrt.f32 %v3078_v19  ;;  %v1340_v26 = vmul.f32 0.03125, %v1338_v38 }
0x15e8   :  { %5771 = vrsqrt.f32 %v3077_v29 }
0x15e9   :  { %5299 = vmatpush3.bf16.msra.mxu1 %v6864_v8  ;;  %v1342_v31 = vadd.f32 1e-05, %v1340_v26 }
0x15ea   :  { %5300 = vmatprep.subr.bf16.mxu1 %v5881_v1 }
0x15eb   :  { %5773 = vrsqrt.f32 %v1342_v31 }
0x15ed   :  { %5301 = vmatpush3.bf16.msra.mxu1 %v6869_v42 }
0x15ee   :  { %5302 = vmatprep.subr.bf16.mxu1 %v5881_v1 }
0x15f1   :  { %5303 = vmatpush3.bf16.msra.mxu1 %v6875_v28  ;;  %v5770_v0 = vpop.eup %5769 }
0x15f2   :  { %5304 = vmatprep.subr.bf16.mxu1 %v5881_v1  ;;  %v5772_v3 = vpop.eup %5771  ;;  %v3086_v37 = vmul.f32 %v5770_v0, %v6940_v56 }
0x15f3   :  { %v3085_v2 = vmul.f32 %v5772_v3, %v6942_v14 }
0x15f5   :  { %5305 = vmatpush3.bf16.msra.mxu1 %v6880_v34  ;;  %v3095_v10 = vmul.f32 %v6799_v55, %v3085_v2  ;;  %v5774_v24 = vpop.eup %5773 }
0x15f6   :  { %5306 = vmatprep.subr.bf16.mxu1 %v5881_v1  ;;  %v1346_v57 = vmul.f32 %v5774_v24, %v6947_v25 }
0x15f7   :  { %v3105_v56 = vadd.f32 %v6803_v4, %v3095_v10 }
0x15f9   :  { %5307 = vmatpush3.bf16.msra.mxu1 %v6889_v51  ;;  %v3123_v17 = vmul.f32 %v6794_v47, %v3105_v56 }
0x15fa   :  { %5332 = vmatprep.subr.bf16.mxu1 %v5881_v1 }
0x15fc   :  { %5309 = vmatmul.mubr.bf16.vlgmr.msra.gmra.mrb[88].mxu1 %v3582_v46  ;;  %v3096_v46 = vmul.f32 %v6799_v55, %v3086_v37 }
0x15fd   :  { %5336 = vmatprep.mubr.msk.bf16.mxu1 %vm5882_vm1, %v5881_v1  ;;  %5333 = vmatpush3.bf16.msra.mxu1 %v6989_v16 }
0x15fe   :  { %5334 = vmatprep.subr.bf16.mxu1 %v5881_v1  ;;  %v3106_v12 = vadd.f32 %v6803_v4, %v3096_v46 }
0x1600   :  { %v3124_v60 = vmul.f32 %v6796_v58, %v3106_v12  ;;  %v3137_v58 = vadd.f32 %v6813_v11, %v3123_v17 }
0x1601   :  { %5335 = vmatpush3.bf16.msra.mxu1 %v6994_v13 }
0x1602   :  { %5346 = vmatprep.subr.bf16.mxu1 %v5881_v1  ;;  %v3138_v20 = vadd.f32 %v6809_v52, %v3124_v60  ;;  %v7028_v7 = vadd.f32 %v3137_v58, %v3105_v56  ;;  %v1354_v52 = vmul.f32 %v6781_v45, %v1346_v57 }
0x1604   :  { %v7023_v47 = vadd.f32 %v3138_v20, %v3106_v12  ;;  %v7037_v25 = vadd.f32 %v6784_v40, %v1354_v52 }
0x1606   :  { %v3866_v11 = vpack.c.bf16 %v7023_v47, %v7028_v7  ;;  %v3865_v18 = vpack.c.bf16 %v7037_v25, %v7037_v25 }
0x1608   :  { %v3871_v9 = vsel %vm290_vm3, %v3866_v11, 0  ;;  %v4006_v45 = vsel %vm198_vm0, %v3865_v18, 0 }
0x16af   :  { %v3541_v62 = vpop.f32.mrb[84].mxu1 }
0x16b0   :  { %v5290_v5 = vpop.f32.mrb[85].mxu1  ;;  %v3542_v55 = vadd.f32 %v7006_v61, %v3541_v62 }
0x16b1   :  { %v3544_v54 = vpop.f32.mrb[86].mxu1 }
0x16b2   :  { %v5291_v30 = vpop.f32.mrb[87].mxu1  ;;  %v7017_v4 = vmax.f32 %v3542_v55, 0.0 }
0x16b4   :  { %v3673_v36 = vpack.c.bf16 %v7017_v4, %v7017_v4 }
0x16cf   :  { %v3617_v35 = vpop.f32.mrb[88].mxu1 }
0x16d0   :  { %v3618_v21 = vadd.f32 %v6964_v63, %v3617_v35  ;;  %v5310_v44 = vpop.f32.mrb[89].mxu1 }
0x16d1   :  { %v3620_v32 = vpop.f32.mrb[90].mxu1 }
0x16d2   :  { %v3621_v50 = vadd.f32 %v6964_v63, %v3620_v32  ;;  %v5311_v49 = vpop.f32.mrb[91].mxu1  ;;  %v3624_v14 = vmax.f32 %v3618_v21, 0.0 }
0x16d4   :  { %v3625_v48 = vmax.f32 %v3621_v50, 0.0 }
0x16d6   :  { %v3626_v33 = vpack.c.bf16 %v3625_v48, %v3624_v14 }
0x16d8   :  { %5321 = vmatmul.mubr.msk.bf16.vlgmr.msra.gmra.mrb[92].mxu0 %vm2973_vm12, %v3626_v33 }
0x16d9   :  { %5325 = vmatpush3.bf16.msra.mxu0 %v6989_v16  ;;  %5328 = vmatprep.mubr.msk.bf16.mxu0 %vm5882_vm1, %v5881_v1 }
0x16da   :  { %5326 = vmatprep.subr.bf16.mxu0 %v5881_v1 }
0x16dd   :  { %5327 = vmatpush3.bf16.msra.mxu0 %v6994_v13 }
0x16de   :  { %5340 = vmatprep.subr.bf16.mxu0 %v5881_v1 }
0x16e0   :  { %5329 = vmatmul.mubr.msk.bf16.vlgmr.msra.gmra.mrb[96].mxu0 %vm290_vm3, %v3673_v36 }
0x16e1   :  { %5342 = vmatprep.mubr.msk.bf16.mxu0 %vm5882_vm1, %v5881_v1 }
0x16e6   :  { %5341 = vmatpush3.bf16.xpose.msra.mxu0 %v3871_v9 }
0x16e7   :  { %5352 = vmatprep.subr.bf16.mxu0 %v5881_v1 }
0x16ed   :  { %5343 = vmatmul.mubr.msk.bf16.vlgmr.msra.gmra.mrb[100].mxu0 %vm290_vm3, %v3865_v18 }
0x16ee   :  { %5353 = vmatpush3.bf16.msra.mxu0 %v4006_v45  ;;  %5354 = vmatprep.mubr.msk.bf16.mxu0 %vm5882_vm1, %v5881_v1 }
0x16ef   :  { %5378 = vmatprep.subr.bf16.mxu0 %v5881_v1 }
0x17ab   :  { %v3664_v40 = vpop.f32.mrb[92].mxu0 }
0x17ac   :  { %v7049_v62 = vadd.f32 %v7006_v61, %v3664_v40  ;;  %v5322_v5 = vpop.f32.mrb[93].mxu0  ;;  %v7081_v40 = vld [vmem:[%s7313_s24] ss:$0 sm:$0xff] }
0x17ad   :  { %v3667_v22 = vpop.f32.mrb[94].mxu0 }
0x17ae   :  { %v7052_v54 = vadd.f32 %v7006_v61, %v3667_v22  ;;  %v5323_v30 = vpop.f32.mrb[95].mxu0  ;;  %v3671_v41 = vmax.f32 %v7049_v62, 0.0 }
0x17b0   :  { %v3672_v23 = vmax.f32 %v7052_v54, 0.0 }
0x17b2   :  { %v3771_v19 = vpack.c.bf16 %v3672_v23, %v3671_v41 }
0x17b3   :  { %v7060_v29 = vpop.f32.mrb[96].mxu0 }
0x17b4   :  { %v5330_v38 = vpop.f32.mrb[97].mxu0  ;;  %5337 = vmatmul.mubr.msk.bf16.vlgmr.msra.gmra.mrb[92].mxu1 %vm290_vm3, %v3771_v19 }
0x17b5   :  { %5347 = vmatpush3.bf16.msra.mxu1 %v3866_v11  ;;  %v3732_v0 = vpop.f32.mrb[98].mxu0  ;;  %5348 = vmatprep.mubr.msk.bf16.mxu1 %vm5882_vm1, %v5881_v1 }
0x17b6   :  { %v5331_v3 = vpop.f32.mrb[99].mxu0  ;;  %5358 = vmatprep.subr.bf16.mxu1 %v5881_v1 }
0x17b7   :  { %v7087_v3 = vld [vmem:[%s7314_s30] ss:$0 sm:$0xff] }
0x17c0   :  { %v3907_v26 = vpop.f32.mrb[100].mxu0 }
0x17c1   :  { %v5344_v37 = vpop.f32.mrb[101].mxu0  ;;  %v3913_v2 = vsel %vm792_vm11, %v3907_v26, -inf }
0x17c2   :  { %3914 = vmax.xlane.f32.xlu0 %v3913_v2  ;;  %v3924_v31 = vrot.slane %v3913_v2, 4  ;;  %v3910_v46 = vpop.f32.mrb[102].mxu0 }
0x17c3   :  { %v5345_v10 = vpop.f32.mrb[103].mxu0 }
0x17c4   :  { %v3925_v35 = vmax.f32 %v3913_v2, %v3924_v31 }
0x17c6   :  { %v3926_v21 = vrot.slane %v3925_v35, 2 }
0x17c8   :  { %v3927_v44 = vmax.f32 %v3925_v35, %v3926_v21 }
0x17ca   :  { %v3928_v32 = vrot.slane %v3927_v44, 1 }
0x17cc   :  { %v3929_v12 = vmax.f32 %v3927_v44, %v3928_v32 }
0x17ce   :  { %v3930_v50 = vsub.f32 %v3907_v26, %v3929_v12 }
0x17d0   :  { %v3931_v49 = vmul.f32 1.442695, %v3930_v50 }
0x17d2   :  { %5775 = vpow2.f32 %v3931_v49 }
0x17dc   :  { %v5776_v56 = vpop.eup %5775 }
0x17dd   :  { %v3933_v14 = vsel %vm792_vm11, %v5776_v56, 0.0 }
0x17de   :  { %v3934_v48 = vrot.slane %v3933_v14, 4 }
0x17e0   :  { %v3935_v60 = vadd.f32 %v3934_v48, %v3933_v14 }
0x17e2   :  { %v3936_v55 = vrot.slane %v3935_v60, 2 }
0x17e4   :  { %v3937_v33 = vadd.f32 %v3936_v55, %v3935_v60 }
0x17e6   :  { %v3938_v17 = vrot.slane %v3937_v33, 1 }
0x17e8   :  { %v3939_v20 = vadd.f32 %v3938_v17, %v3937_v33 }
0x17ea   :  { %5777 = vrcp.f32 %v3939_v20 }
0x17f4   :  { %v5778_v24 = vpop.eup %5777 }
0x17f5   :  { %v3941_v58 = vmul.f32 %v5778_v24, %v5776_v56 }
0x17f7   :  { %v3986_v57 = vpack.c.bf16 %v3941_v58, %v3941_v58 }
0x17f9   :  { %3987 = vxpose.xlu0.c.b16.start.end [1/1] (short) (narrow) %v3986_v57, 16 }
0x184f   :  { %v3915_v36 = vpop.xlane.xlu0 %3914 }
0x1850   :  { %v3916_v52 = vsub.f32 %v3907_v26, %v3915_v36 }
0x1852   :  { %v3917_v11 = vmul.f32 1.442695, %v3916_v52 }
0x1854   :  { %5779 = vpow2.f32 %v3917_v11 }
0x185e   :  { %v5780_v9 = vpop.eup %5779 }
0x185f   :  { %v3995_v18 = vpop.trf.xlu0  ;;  %v3919_v45 = vsel %vm792_vm11, %v5780_v9, 0.0 }
0x1860   :  { %3920 = vadd.xlane.f32.xlu1 %v3919_v45  ;;  %5355 = vmatmul.mubr.msk.bf16.vlgmr.msra.gmra.mrb[104].mxu0 %vm341_vm4, %v3995_v18 }
0x1861   :  { %5379 = vmatpush3.bf16.msra.mxu0 %v6905_v27  ;;  %5386 = vmatprep.mubr.msk.bf16.mxu0 %vm5882_vm1, %v5881_v1 }
0x1862   :  { %5380 = vmatprep.subr.bf16.mxu0 %v5881_v1 }
0x1865   :  { %5381 = vmatpush3.bf16.msra.mxu0 %v6909_v53 }
0x1866   :  { %5382 = vmatprep.subr.bf16.mxu0 %v5881_v1 }
0x1869   :  { %5383 = vmatpush3.bf16.msra.mxu0 %v6914_v59 }
0x186a   :  { %5384 = vmatprep.subr.bf16.mxu0 %v5881_v1 }
0x186d   :  { %5385 = vmatpush3.bf16.msra.mxu0 %v6956_v15 }
0x186e   :  { %5390 = vmatprep.subr.bf16.mxu0 %v5881_v1 }
0x1887   :  { %v3809_v5 = vpop.f32.mrb[92].mxu1 }
0x1888   :  { %v3810_v22 = vadd.f32 %v7081_v40, %v3809_v5  ;;  %v5338_v30 = vpop.f32.mrb[93].mxu1 }
0x1889   :  { %v7084_v19 = vpop.f32.mrb[94].mxu1 }
0x188a   :  { %5781 = vtanh.f32 %v3810_v22  ;;  %v5339_v38 = vpop.f32.mrb[95].mxu1 }
0x1894   :  { %v5782_v0 = vpop.eup %5781 }
0x1895   :  { %v3818_v26 = vmul.f32 %v5782_v0, %v7087_v3 }
0x1897   :  { %v3820_v37 = vsel %vm290_vm3, %v3818_v26, 0.0 }
0x1898   :  { %3821 = vadd.xlane.f32.xlu0 %v3820_v37 }
0x18ed   :  { %v3921_v2 = vpop.xlane.xlu1 %3920 }
0x18ee   :  { %5783 = vrcp.f32 %v3921_v2 }
0x18f8   :  { %v5784_v31 = vpop.eup %5783 }
0x18f9   :  { %v3923_v46 = vmul.f32 %v5784_v31, %v5780_v9 }
0x18fb   :  { %v3942_v10 = vpack.c.bf16 %v3923_v46, %v3923_v46 }
0x18fd   :  { %5349 = vmatmul.mubr.msk.bf16.vlgmr.msra.gmra.mrb[96].mxu1 %vm792_vm11, %v3942_v10 }
0x18fe   :  { %5359 = vmatpush3.bf16.msra.mxu1 %v6850_v39  ;;  %5374 = vmatprep.mubr.msk.bf16.mxu1 %vm5882_vm1, %v5881_v1 }
0x18ff   :  { %5360 = vmatprep.subr.bf16.mxu1 %v5881_v1 }
0x1902   :  { %5361 = vmatpush3.bf16.msra.mxu1 %v6854_v6 }
0x1903   :  { %5362 = vmatprep.subr.bf16.mxu1 %v5881_v1 }
0x1906   :  { %5363 = vmatpush3.bf16.msra.mxu1 %v6859_v43 }
0x1907   :  { %5364 = vmatprep.subr.bf16.mxu1 %v5881_v1 }
0x190a   :  { %5365 = vmatpush3.bf16.msra.mxu1 %v6864_v8 }
0x190b   :  { %5366 = vmatprep.subr.bf16.mxu1 %v5881_v1 }
0x190e   :  { %5367 = vmatpush3.bf16.msra.mxu1 %v6869_v42 }
0x190f   :  { %5368 = vmatprep.subr.bf16.mxu1 %v5881_v1 }
0x1912   :  { %5369 = vmatpush3.bf16.msra.mxu1 %v6875_v28 }
0x1913   :  { %5370 = vmatprep.subr.bf16.mxu1 %v5881_v1 }
0x1916   :  { %5371 = vmatpush3.bf16.msra.mxu1 %v6880_v34 }
0x1917   :  { %5372 = vmatprep.subr.bf16.mxu1 %v5881_v1 }
0x191a   :  { %5373 = vmatpush3.bf16.msra.mxu1 %v6889_v51 }
0x191b   :  { %5410 = vmatprep.subr.bf16.mxu1 %v5881_v1 }
0x1933   :  { %v4042_v35 = vpop.f32.mrb[104].mxu0 }
0x1934   :  { %v5356_v21 = vpop.f32.mrb[105].mxu0  ;;  %v4153_v44 = vsub.f32 %v7028_v7, %v4042_v35  ;;  %v4155_v12 = vmul.f32 %v4042_v35, %v7028_v7 }
0x1935   :  { %v4045_v32 = vpop.f32.mrb[106].mxu0 }
0x1936   :  { %v5592_v50 = vpack.i.bf16 %v4045_v32, %v4042_v35  ;;  %v4156_v49 = vmul.f32 %v4045_v32, %v7023_v47  ;;  %v4154_v56 = vsub.f32 %v7023_v47, %v4045_v32  ;;  %v5357_v14 = vpop.f32.mrb[107].mxu0 }
0x1938   :  { %v5602_v48 = vpack.i.bf16 %v4156_v49, %v4155_v12  ;;  %v5597_v60 = vpack.i.bf16 %v4154_v56, %v4153_v44 }
0x19d0   :  { %v3980_v55 = vpop.f32.mrb[96].mxu1 }
0x19d1   :  { %4052 = vrot.lane.b32.xlu1 %v3980_v55, %s5898_s25  ;;  %v5350_v33 = vpop.f32.mrb[97].mxu1  ;;  %v4049_v20 = vsub.f32 %v7037_v25, %v3980_v55  ;;  %v4050_v58 = vmul.f32 %v3980_v55, %v7037_v25 }
0x19d2   :  { %v3983_v17 = vpop.f32.mrb[98].mxu1 }
0x19d3   :  { %v5351_v24 = vpop.f32.mrb[99].mxu1 }
0x19d5   :  { %4056 = vrot.lane.b32.xlu1 %v4049_v20, %s5892_s7 }
0x19d9   :  { %4060 = vrot.lane.b32.xlu1 %v4050_v58, %s5884_s0 }
0x19dd   :  { %5593 = vrot.lane.b32.xlu1 %v5592_v50, %s5898_s25 }
0x19e1   :  { %5598 = vrot.lane.b32.xlu1 %v5597_v60, %s5892_s7  ;;  %s5899_s7 = smov [#allocation2]  }
0x19e2   :  { %s4610_s6 = sshll.u32 %s5899_s7, 4  ;;  %s4611_s6 = int_to_ptr.vmem [resolvable:$true] %s4610_s6 }
0x19e3   :  { %p5821_p1 = scmp.lt.s32.totalorder %s4611_s6, %s4611_s6 }
0x19e5   :  { %5603 = vrot.lane.b32.xlu1 %v5602_v48, %s5884_s0  ;;  %s7315_s0 = sld [smem:[#allocation28_spill]] }
0x1a43   :  { %v4053_v57 = vpop.permute.xlu1 %4052 }
0x1a44   :  { %v4063_v52 = vsel %vm290_vm3, %v7037_v25, %v4053_v57 }
0x1a47   :  { %v4057_v36 = vpop.permute.xlu1 %4056 }
0x1a48   :  { %v4064_v11 = vsel %vm2973_vm12, %v4063_v52, %v4057_v36 }
0x1a4b   :  { %v4061_v9 = vpop.permute.xlu1 %4060 }
0x1a4c   :  { %v4065_v18 = vsel %vm3375_vm13, %v4064_v11, %v4061_v9 }
0x1a4d   :  { %v4066_v45 = vpack.c.bf16 %v4065_v18, %v4065_v18  ;;  %v3813_v18 = vadd.f32 %v7081_v40, %v7084_v19 }
0x1a4f   :  { %5375 = vmatmul.mubr.bf16.vlgmr.msra.gmra.mrb[100].mxu1 %v4066_v45 }
0x1a50   :  { %5411 = vmatpush3.bf16.msra.mxu1 %v6905_v27  ;;  %5418 = vmatprep.mubr.msk.bf16.mxu1 %vm5882_vm1, %v5881_v1 }
0x1a51   :  { %5412 = vmatprep.subr.bf16.mxu1 %v5881_v1 }
0x1a54   :  { %5413 = vmatpush3.bf16.msra.mxu1 %v6909_v53  ;;  %v5594_v53 = vpop.permute.xlu1 %5593 }
0x1a55   :  { %5414 = vmatprep.subr.bf16.mxu1 %v5881_v1  ;;  %v5595_v26 = vunpack.i.l.bf16 %v5594_v53 }
0x1a57   :  { %v4181_v31 = vsel %vm290_vm3, %v7028_v7, %v5595_v26 }
0x1a58   :  { %5415 = vmatpush3.bf16.msra.mxu1 %v6914_v59  ;;  %v5599_v59 = vpop.permute.xlu1 %5598 }
0x1a59   :  { %5416 = vmatprep.subr.bf16.mxu1 %v5881_v1  ;;  %v5600_v37 = vunpack.i.l.bf16 %v5599_v59 }
0x1a5b   :  { %v4183_v46 = vsel %vm2973_vm12, %v4181_v31, %v5600_v37 }
0x1a5c   :  { %5417 = vmatpush3.bf16.msra.mxu1 %v6956_v15  ;;  %v5596_v15 = vunpack.i.h.bf16 %v5594_v53 }
0x1a5d   :  { %5422 = vmatprep.subr.bf16.mxu1 %v5881_v1 }
0x1b22   :  { %v4101_v25 = vpop.f32.mrb[100].mxu1 }
0x1b23   :  { %v4102_v27 = vadd.f32 %v6964_v63, %v4101_v25  ;;  %v5376_v5 = vpop.f32.mrb[101].mxu1 }
0x1b24   :  { %v4104_v22 = vpop.f32.mrb[102].mxu1 }
0x1b25   :  { %v4107_v30 = vmax.f32 %v4102_v27, 0.0  ;;  %v5377_v38 = vpop.f32.mrb[103].mxu1 }
0x1b27   :  { %v4108_v0 = vpack.c.bf16 %v4107_v30, %v4107_v30 }
0x1b29   :  { %5387 = vmatmul.mubr.msk.bf16.vlgmr.msra.gmra.mrb[108].mxu0 %vm2973_vm12, %v4108_v0  ;;  %v3730_v0 = vadd.f32 %v7081_v40, %v7060_v29 }
0x1b2a   :  { %5391 = vmatpush3.bf16.msra.mxu0 %v6850_v39  ;;  %5406 = vmatprep.mubr.msk.bf16.mxu0 %vm5882_vm1, %v5881_v1  ;;  %v5604_v39 = vpop.permute.xlu1 %5603 }
0x1b2b   :  { %5392 = vmatprep.subr.bf16.mxu0 %v5881_v1  ;;  %v5605_v2 = vunpack.i.l.bf16 %v5604_v39 }
0x1b2e   :  { %5393 = vmatpush3.bf16.msra.mxu0 %v6854_v6  ;;  %v5601_v6 = vunpack.i.h.bf16 %v5599_v59 }
0x1b2f   :  { %5394 = vmatprep.subr.bf16.mxu0 %v5881_v1 }
0x1b32   :  { %5395 = vmatpush3.bf16.msra.mxu0 %v6859_v43  ;;  %v5606_v43 = vunpack.i.h.bf16 %v5604_v39 }
0x1b33   :  { %5396 = vmatprep.subr.bf16.mxu0 %v5881_v1 }
0x1b36   :  { %5397 = vmatpush3.bf16.msra.mxu0 %v6864_v8  ;;  %v4182_v8 = vsel %vm290_vm3, %v7023_v47, %v5596_v15 }
0x1b37   :  { %5398 = vmatprep.subr.bf16.mxu0 %v5881_v1 }
0x1b3a   :  { %5399 = vmatpush3.bf16.msra.mxu0 %v6869_v42  ;;  %v4184_v42 = vsel %vm2973_vm12, %v4182_v8, %v5601_v6 }
0x1b3b   :  { %5400 = vmatprep.subr.bf16.mxu0 %v5881_v1  ;;  %v4186_v10 = vsel %vm3375_vm13, %v4184_v42, %v5606_v43 }
0x1b3e   :  { %5401 = vmatpush3.bf16.msra.mxu0 %v6875_v28  ;;  %v4185_v28 = vsel %vm3375_vm13, %v4183_v46, %v5605_v2  ;;  %v5637_v46 = vld [vmem:[%s7315_s0] sm:$0xff]  }
0x1b3f   :  { %5402 = vmatprep.subr.bf16.mxu0 %v5881_v1  ;;  %v4187_v35 = vpack.c.bf16 %v4186_v10, %v4185_v28  ;;  %v5638_v28 = vld [vmem:[%s7315_s0 + $0x8] sm:$0xff]   ;;  %v3822_v10 = vpop.xlane.xlu0 %3821 }
0x1b42   :  { %5403 = vmatpush3.bf16.msra.mxu0 %v6880_v34 }
0x1b43   :  { %5404 = vmatprep.subr.bf16.mxu0 %v5881_v1 }
0x1b46   :  { %5405 = vmatpush3.bf16.msra.mxu0 %v6889_v51 }
0x1b47   :  { %5430 = vmatprep.subr.bf16.mxu0 %v5881_v1 }
0x1b49   :  { %5407 = vmatmul.mubr.bf16.vlgmr.msra.gmra.mrb[112].mxu0 %v4187_v35 }
0x1b4a   :  { %5431 = vmatpush3.bf16.msra.mxu0 %v6989_v16  ;;  %5434 = vmatprep.mubr.msk.bf16.mxu0 %vm5882_vm1, %v5881_v1 }
0x1b4b   :  { %5432 = vmatprep.subr.bf16.mxu0 %v5881_v1 }
0x1b4e   :  { %5433 = vmatpush3.bf16.msra.mxu0 %v6994_v13 }
0x1b4f   :  { %5450 = vmatprep.subr.bf16.mxu0 %v5881_v1 }
0x1bfc   :  { %v4146_v34 = vpop.f32.mrb[108].mxu0 }
0x1bfd   :  { %v5388_v47 = vpop.f32.mrb[109].mxu0  ;;  %v4147_v48 = vadd.f32 %v7006_v61, %v4146_v34 }
0x1bfe   :  { %v4149_v7 = vpop.f32.mrb[110].mxu0 }
0x1bff   :  { %v5389_v21 = vpop.f32.mrb[111].mxu0  ;;  %v7177_v55 = vmax.f32 %v4147_v48, 0.0 }
0x1c1c   :  { %v4222_v51 = vpop.f32.mrb[112].mxu0 }
0x1c1d   :  { %v4223_v44 = vadd.f32 %v6964_v63, %v4222_v51  ;;  %v5408_v32 = vpop.f32.mrb[113].mxu0 }
0x1c1e   :  { %v4225_v12 = vpop.f32.mrb[114].mxu0 }
0x1c1f   :  { %v4226_v50 = vadd.f32 %v6964_v63, %v4225_v12  ;;  %v5409_v49 = vpop.f32.mrb[115].mxu0  ;;  %v4229_v56 = vmax.f32 %v4223_v44, 0.0  ;;  %v4278_v63 = vpack.c.bf16 %v7177_v55, %v7177_v55 }
0x1c21   :  { %v4230_v14 = vmax.f32 %v4226_v50, 0.0 }
0x1c23   :  { %v4231_v60 = vpack.c.bf16 %v4230_v14, %v4229_v56 }
0x1c25   :  { %5419 = vmatmul.mubr.msk.bf16.vlgmr.msra.gmra.mrb[104].mxu1 %vm2973_vm12, %v4231_v60 }
0x1c26   :  { %5423 = vmatpush3.bf16.msra.mxu1 %v6989_v16  ;;  %5426 = vmatprep.mubr.msk.bf16.mxu1 %vm5882_vm1, %v5881_v1 }
0x1c27   :  { %5424 = vmatprep.subr.bf16.mxu1 %v5881_v1 }
0x1c2a   :  { %5425 = vmatpush3.bf16.msra.mxu1 %v6994_v13 }
0x1c2b   :  { %5438 = vmatprep.subr.bf16.mxu1 %v5881_v1 }
0x1c2d   :  { %5427 = vmatmul.mubr.msk.bf16.vlgmr.msra.gmra.mrb[108].mxu1 %vm290_vm3, %v4278_v63 }
0x1c2e   :  { %5446 = vmatprep.mubr.msk.bf16.mxu1 %vm5882_vm1, %v5881_v1  ;;  %5439 = vmatpush3.bf16.msra.mxu1 %v5637_v46 }
0x1c2f   :  { %5440 = vmatprep.subr.bf16.mxu1 %v5881_v1 }
0x1c32   :  { %5441 = vmatpush3.bf16.msra.mxu1 %v5638_v28 }
0x1c33   :  { %5442 = vmatprep.subr.bf16.mxu1 %v5881_v1 }
0x1cf8   :  { %v4269_v16 = vpop.f32.mrb[104].mxu1 }
0x1cf9   :  { %v7188_v33 = vadd.f32 %v7006_v61, %v4269_v16  ;;  %v5420_v17 = vpop.f32.mrb[105].mxu1 }
0x1cfa   :  { %v4272_v20 = vpop.f32.mrb[106].mxu1 }
0x1cfb   :  { %v7191_v24 = vadd.f32 %v7006_v61, %v4272_v20  ;;  %v5421_v13 = vpop.f32.mrb[107].mxu1  ;;  %v4276_v58 = vmax.f32 %v7188_v33, 0.0 }
0x1cfd   :  { %v4277_v57 = vmax.f32 %v7191_v24, 0.0 }
0x1cff   :  { %v4352_v36 = vpack.c.bf16 %v4277_v57, %v4276_v58 }
0x1d00   :  { %v4316_v52 = vpop.f32.mrb[108].mxu1 }
0x1d01   :  { %v5428_v11 = vpop.f32.mrb[109].mxu1  ;;  %5435 = vmatmul.mubr.msk.bf16.vlgmr.msra.gmra.mrb[116].mxu0 %vm290_vm3, %v4352_v36  ;;  %v4317_v38 = vadd.f32 %v7081_v40, %v4316_v52 }
0x1d02   :  { %v4319_v9 = vpop.f32.mrb[110].mxu1  ;;  %5454 = vmatprep.mubr.msk.bf16.mxu0 %vm5882_vm1, %v5881_v1 }
0x1d03   :  { %v5429_v61 = vpop.f32.mrb[111].mxu1 }
0x1dd4   :  { %v4390_v45 = vpop.f32.mrb[116].mxu0 }
0x1dd5   :  { %v4391_v25 = vadd.f32 %v7081_v40, %v4390_v45  ;;  %v5436_v27 = vpop.f32.mrb[117].mxu0 }
0x1dd6   :  { %v4393_v5 = vpop.f32.mrb[118].mxu0 }
0x1dd7   :  { %5785 = vtanh.f32 %v4391_v25  ;;  %v4394_v22 = vadd.f32 %v7081_v40, %v4393_v5  ;;  %v5437_v30 = vpop.f32.mrb[119].mxu0 }
0x1dd8   :  { %5787 = vtanh.f32 %v3813_v18 }
0x1dd9   :  { %5789 = vtanh.f32 %v4394_v22 }
0x1dda   :  { %5791 = vtanh.f32 %v4317_v38 }
0x1ddb   :  { %5793 = vtanh.f32 %v3730_v0 }
0x1de1   :  { %v5786_v53 = vpop.eup %5785 }
0x1de2   :  { %v5788_v19 = vpop.eup %5787  ;;  %v4399_v59 = vmul.f32 %v5786_v53, %v7087_v3 }
0x1de3   :  { %v5790_v39 = vpop.eup %5789  ;;  %v3819_v37 = vmul.f32 %v5788_v19, %v7087_v3 }
0x1de4   :  { %v4401_v15 = vsel %vm290_vm3, %v4399_v59, 0.0  ;;  %v4400_v26 = vmul.f32 %v5790_v39, %v7087_v3  ;;  %v5792_v43 = vpop.eup %5791 }
0x1de5   :  { %4402 = vadd.xlane.f32.xlu1 %v4401_v15  ;;  %v3823_v29 = vsel %vm290_vm3, %v3819_v37, 0.0  ;;  %v4323_v40 = vmul.f32 %v5792_v43, %v7087_v3  ;;  %v5794_v2 = vpop.eup %5793 }
0x1de6   :  { %v4404_v6 = vsel %vm290_vm3, %v4400_v26, 0.0  ;;  %v3742_v31 = vmul.f32 %v5794_v2, %v7087_v3 }
0x1de7   :  { %4405 = vadd.xlane.f32.xlu0 %v4404_v6  ;;  %v4324_v8 = vsel %vm290_vm3, %v4323_v40, 0.0 }
0x1de8   :  { %v3743_v42 = vsel %vm290_vm3, %v3742_v31, 0.0 }
0x1deb   :  { %3824 = vadd.xlane.f32.xlu0 %v3823_v29 }
0x1def   :  { %4325 = vadd.xlane.f32.xlu0 %v4324_v8 }
0x1df3   :  { %3744 = vadd.xlane.f32.xlu0 %v3743_v42 }
0x1e72   :  { %v4403_v35 = vpop.xlane.xlu1 %4402 }
0x1e74   :  { %v4406_v34 = vpop.xlane.xlu0 %4405 }
0x1e75   :  { %v4407_v47 = vmax.f32 %v4403_v35, %v4406_v34 }
0x1e77   :  { %v4408_v7 = vrot.slane %v4407_v47, 4 }
0x1e78   :  { %v3825_v21 = vpop.xlane.xlu0 %3824 }
0x1e79   :  { %v4409_v51 = vmax.f32 %v4407_v47, %v4408_v7  ;;  %v3826_v3 = vmax.f32 %v3822_v10, %v3825_v21 }
0x1e7b   :  { %v4410_v44 = vrot.slane %v4409_v51, 2  ;;  %v3827_v32 = vrot.slane %v3826_v3, 4 }
0x1e7d   :  { %v4411_v12 = vmax.f32 %v4409_v51, %v4410_v44  ;;  %v3828_v50 = vmax.f32 %v3826_v3, %v3827_v32  ;;  %v5640_v51 = vld [vmem:[%s7315_s0 + $0x18] sm:$0xff]  }
0x1e7f   :  { %v4412_v49 = vrot.slane %v4411_v12, 1  ;;  %v3829_v56 = vrot.slane %v3828_v50, 2 }
0x1e81   :  { %v4413_v14 = vmax.f32 %v4411_v12, %v4412_v49  ;;  %v3830_v48 = vmax.f32 %v3828_v50, %v3829_v56 }
0x1e83   :  { %v4414_v60 = vsub.f32 %v4403_v35, %v4413_v14  ;;  %v4415_v63 = vsub.f32 %v4406_v34, %v4413_v14  ;;  %v3831_v16 = vrot.slane %v3830_v48, 1  ;;  %v5639_v34 = vld [vmem:[%s7315_s0 + $0x10] sm:$0xff]  }
0x1e84   :  { %5443 = vmatpush3.bf16.msra.mxu1 %v5639_v34 }
0x1e85   :  { %v4416_v17 = vmul.f32 1.442695, %v4414_v60  ;;  %v4418_v20 = vmul.f32 1.442695, %v4415_v63  ;;  %v3832_v13 = vmax.f32 %v3830_v48, %v3831_v16  ;;  %5444 = vmatprep.subr.bf16.mxu1 %v5881_v1 }
0x1e87   :  { %5795 = vpow2.f32 %v4416_v17  ;;  %v3833_v36 = vsub.f32 %v3822_v10, %v3832_v13  ;;  %v3834_v52 = vsub.f32 %v3825_v21, %v3832_v13 }
0x1e88   :  { %5797 = vpow2.f32 %v4418_v20  ;;  %5445 = vmatpush3.bf16.msra.mxu1 %v5640_v51 }
0x1e89   :  { %v3835_v11 = vmul.f32 1.442695, %v3833_v36  ;;  %v3837_v9 = vmul.f32 1.442695, %v3834_v52 }
0x1e8b   :  { %5799 = vpow2.f32 %v3835_v11 }
0x1e8c   :  { %5801 = vpow2.f32 %v3837_v9 }
0x1e91   :  { %v5796_v61 = vpop.eup %5795 }
0x1e92   :  { %v5798_v18 = vpop.eup %5797 }
0x1e93   :  { %v4420_v45 = vadd.f32 %v5798_v18, %v5796_v61 }
0x1e95   :  { %v5800_v25 = vpop.eup %5799  ;;  %v4421_v27 = vrot.slane %v4420_v45, 4 }
0x1e96   :  { %v5802_v5 = vpop.eup %5801 }
0x1e97   :  { %v4422_v22 = vadd.f32 %v4421_v27, %v4420_v45  ;;  %v3839_v30 = vadd.f32 %v5802_v5, %v5800_v25 }
0x1e99   :  { %v4423_v38 = vrot.slane %v4422_v22, 2  ;;  %v3840_v0 = vrot.slane %v3839_v30, 4 }
0x1e9b   :  { %v4424_v53 = vadd.f32 %v4423_v38, %v4422_v22  ;;  %v3841_v19 = vadd.f32 %v3840_v0, %v3839_v30 }
0x1e9d   :  { %v4425_v59 = vrot.slane %v4424_v53, 1  ;;  %v3842_v39 = vrot.slane %v3841_v19, 2 }
0x1e9f   :  { %v4426_v15 = vadd.f32 %v4425_v59, %v4424_v53  ;;  %v3843_v26 = vadd.f32 %v3842_v39, %v3841_v19 }
0x1ea1   :  { %5803 = vrcp.f32 %v4426_v15  ;;  %v3844_v6 = vrot.slane %v3843_v26, 1 }
0x1ea3   :  { %v3845_v37 = vadd.f32 %v3844_v6, %v3843_v26 }
0x1ea5   :  { %5805 = vrcp.f32 %v3845_v37 }
0x1eab   :  { %v5804_v43 = vpop.eup %5803 }
0x1eac   :  { %v4428_v29 = vmul.f32 %v5804_v43, %v5796_v61  ;;  %v4429_v40 = vmul.f32 %v5804_v43, %v5798_v18 }
0x1eae   :  { %v4431_v2 = vmul.f32 %v4429_v40, %v4277_v57  ;;  %v4430_v8 = vmul.f32 %v4428_v29, %v4276_v58 }
0x1eaf   :  { %v5806_v31 = vpop.eup %5805 }
0x1eb0   :  { %v3847_v42 = vmul.f32 %v5806_v31, %v5800_v25  ;;  %v3848_v46 = vmul.f32 %v5806_v31, %v5802_v5  ;;  %v4432_v28 = vsel %vm290_vm3, %v4430_v8, 0.0  ;;  %v4433_v10 = vsel %vm290_vm3, %v4431_v2, 0.0 }
0x1eb1   :  { %v4434_v35 = vadd.f32 %v4433_v10, %v4432_v28 }
0x1eb2   :  { %v3850_v47 = vmul.f32 %v3848_v46, %v3672_v23  ;;  %v3849_v24 = vmul.f32 %v3847_v42, %v3671_v41  ;;  %v4326_v23 = vpop.xlane.xlu0 %4325 }
0x1eb3   :  { %v4435_v57 = vrot.slane %v4434_v35, 4  ;;  %v4327_v49 = vrot.slane %v4326_v23, 4 }
0x1eb4   :  { %v3851_v33 = vsel %vm290_vm3, %v3849_v24, 0.0  ;;  %v3852_v58 = vsel %vm290_vm3, %v3850_v47, 0.0 }
0x1eb5   :  { %v4436_v7 = vadd.f32 %v4435_v57, %v4434_v35  ;;  %v3853_v21 = vadd.f32 %v3852_v58, %v3851_v33  ;;  %v4328_v60 = vmax.f32 %v4326_v23, %v4327_v49 }
0x1eb6   :  { %v3745_v14 = vpop.xlane.xlu0 %3744 }
0x1eb7   :  { %v4437_v3 = vrot.slane %v4436_v7, 2  ;;  %v3854_v44 = vrot.slane %v3853_v21, 4  ;;  %v3746_v63 = vrot.slane %v3745_v14, 4  ;;  %v4329_v16 = vrot.slane %v4328_v60, 2 }
0x1eb9   :  { %v4438_v32 = vadd.f32 %v4437_v3, %v4436_v7  ;;  %v3855_v54 = vadd.f32 %v3854_v44, %v3853_v21  ;;  %v3747_v17 = vmax.f32 %v3745_v14, %v3746_v63  ;;  %v4330_v20 = vmax.f32 %v4328_v60, %v4329_v16 }
0x1ebb   :  { %v4439_v12 = vrot.slane %v4438_v32, 1  ;;  %v3856_v62 = vrot.slane %v3855_v54, 2  ;;  %v3748_v13 = vrot.slane %v3747_v17, 2  ;;  %v4331_v36 = vrot.slane %v4330_v20, 1 }
0x1ebd   :  { %v4440_v41 = vadd.f32 %v4439_v12, %v4438_v32  ;;  %v3857_v50 = vadd.f32 %v3856_v62, %v3855_v54  ;;  %v3749_v52 = vmax.f32 %v3747_v17, %v3748_v13  ;;  %v4332_v11 = vmax.f32 %v4330_v20, %v4331_v36  ;;  %v5641_v62 = vld [vmem:[%s6103_s14] sm:$0xff]  }
0x1ebe   :  { %5451 = vmatpush3.bf16.msra.mxu0 %v5641_v62  ;;  %v4776_v17 = vld [vmem:[%s6108_s8] ss:$0 sm:$0xff] }
0x1ebf   :  { %4442 = vrot.lane.b32.xlu1 %v4440_v41, %s5898_s25  ;;  %v3858_v56 = vrot.slane %v3857_v50, 1  ;;  %v3750_v9 = vrot.slane %v3749_v52, 1  ;;  %v4333_v61 = vsub.f32 %v4326_v23, %v4332_v11  ;;  %5452 = vmatprep.subr.bf16.mxu0 %v5881_v1  ;;  %v5642_v41 = vld [vmem:[%s6103_s14 + $0x8] sm:$0xff]   ;;  %s5816_s14 = scalar_lea.vmem %s4611_s6, 32 }
0x1ec0   :  { %p5817_p0 = scmp.ne.s32.totalorder %s4611_s6, %s5816_s14  ;;  %p5822_p2 = scmp.lt.s32.totalorder %s5816_s14, %s5816_s14 }
0x1ec1   :  { %v3859_v48 = vadd.f32 %v3858_v56, %v3857_v50  ;;  %v3751_v18 = vmax.f32 %v3749_v52, %v3750_v9  ;;  %v4334_v45 = vmul.f32 1.442695, %v4333_v61  ;;  %v4770_v50 = vld [vmem:[%s6098_s19] ss:$0 sm:$0xff] }
0x1ec2   :  { %5453 = vmatpush3.bf16.msra.mxu0 %v5642_v41  ;;  %p5823_p3 = por %p5822_p2, %p5821_p1 }
0x1ec3   :  { %3861 = vrot.lane.b32.xlu0 %v3859_v48, %s5898_s25  ;;  %v3752_v25 = vsub.f32 %v3745_v14, %v3751_v18  ;;  %5807 = vpow2.f32 %v4334_v45 }
0x1ec4   :  { %p5824_p4 = pnand %p5823_p3, %p5817_p0 }
0x1ec5   :  { %v3753_v27 = vmul.f32 1.442695, %v3752_v25 }
0x1ec7   :  { %5809 = vpow2.f32 %v3753_v27 }
0x1ecd   :  { %v5808_v5 = vpop.eup %5807 }
0x1ece   :  { %v4336_v22 = vrot.slane %v5808_v5, 4 }
0x1ed0   :  { %v4337_v38 = vadd.f32 %v5808_v5, %v4336_v22 }
0x1ed1   :  { %v5810_v30 = vpop.eup %5809 }
0x1ed2   :  { %v3755_v0 = vrot.slane %v5810_v30, 4  ;;  %v4338_v19 = vrot.slane %v4337_v38, 2 }
0x1ed4   :  { %v3756_v53 = vadd.f32 %v5810_v30, %v3755_v0  ;;  %v4339_v59 = vadd.f32 %v4338_v19, %v4337_v38 }
0x1ed6   :  { %v3757_v39 = vrot.slane %v3756_v53, 2  ;;  %v4340_v15 = vrot.slane %v4339_v59, 1 }
0x1ed8   :  { %v3758_v26 = vadd.f32 %v3757_v39, %v3756_v53  ;;  %v4341_v6 = vadd.f32 %v4340_v15, %v4339_v59 }
0x1eda   :  { %v3759_v37 = vrot.slane %v3758_v26, 1  ;;  %5811 = vrcp.f32 %v4341_v6 }
0x1edc   :  { %v3760_v43 = vadd.f32 %v3759_v37, %v3758_v26 }
0x1ede   :  { %5813 = vrcp.f32 %v3760_v43 }
0x1ee4   :  { %v5812_v29 = vpop.eup %5811 }
0x1ee5   :  { %v4343_v40 = vmul.f32 %v5812_v29, %v5808_v5 }
0x1ee7   :  { %v4344_v8 = vmul.f32 %v4343_v40, %v7177_v55 }
0x1ee8   :  { %v5814_v2 = vpop.eup %5813 }
0x1ee9   :  { %v3762_v31 = vmul.f32 %v5814_v2, %v5810_v30  ;;  %v4345_v42 = vsel %vm290_vm3, %v4344_v8, 0.0 }
0x1eea   :  { %v4346_v28 = vrot.slane %v4345_v42, 4 }
0x1eeb   :  { %v3763_v46 = vmul.f32 %v3762_v31, %v7017_v4 }
0x1eec   :  { %v4347_v35 = vadd.f32 %v4346_v28, %v4345_v42 }
0x1eed   :  { %v3764_v10 = vsel %vm290_vm3, %v3763_v46, 0.0 }
0x1eee   :  { %v3765_v34 = vrot.slane %v3764_v10, 4  ;;  %v4348_v47 = vrot.slane %v4347_v35, 2 }
0x1ef0   :  { %v3766_v24 = vadd.f32 %v3765_v34, %v3764_v10  ;;  %v4349_v57 = vadd.f32 %v4348_v47, %v4347_v35 }
0x1ef2   :  { %v3767_v33 = vrot.slane %v3766_v24, 2  ;;  %v4350_v58 = vrot.slane %v4349_v57, 1 }
0x1ef4   :  { %v3768_v7 = vadd.f32 %v3767_v33, %v3766_v24  ;;  %v4351_v21 = vadd.f32 %v4350_v58, %v4349_v57 }
0x1ef6   :  { %v3769_v55 = vrot.slane %v3768_v7, 1 }
0x1ef8   :  { %v3770_v4 = vadd.f32 %v3769_v55, %v3768_v7 }
0x1f31   :  { %v4443_v51 = vpop.permute.xlu1 %4442 }
0x1f32   :  { %v4445_v3 = vsel %vm290_vm3, %v4351_v21, %v4443_v51 }
0x1f33   :  { %v4447_v44 = vrot.slane %v4445_v3, 7 }
0x1f35   :  { %v3862_v32 = vpop.permute.xlu0 %3861 }
0x1f36   :  { %v3864_v54 = vsel %vm290_vm3, %v3770_v4, %v3862_v32 }
0x1f37   :  { %v4450_v23 = vsel %vm4449_vm14, %v3864_v54, %v4447_v44 }
0x1f38   :  { %v4459_v12 = vpack.c.bf16 %v4450_v23, %v4450_v23 }
0x1f3a   :  { %5447 = vmatmul.mubr.msk.bf16.vlgmr.msra.gmra.mrb[112].mxu1 %vm2973_vm12, %v4459_v12 }
0x200d   :  { %v4528_v49 = vpop.f32.mrb[112].mxu1 }
0x200e   :  { %v4529_v56 = vadd.f32 %v4770_v50, %v4528_v49  ;;  %v5448_v14 = vpop.f32.mrb[113].mxu1 }
0x200f   :  { %v4531_v48 = vpop.f32.mrb[114].mxu1 }
0x2010   :  { %v4534_v60 = vmax.f32 %v4529_v56, 0.0  ;;  %v5449_v63 = vpop.f32.mrb[115].mxu1 }
0x2012   :  { %v4539_v16 = vpack.c.bf16 %v4534_v60, %v4534_v60 }
0x2014   :  { %5455 = vmatmul.mubr.msk.bf16.vlgmr.msra.gmra.mrb[120].mxu0 %vm290_vm3, %v4539_v16 }
0x20e7   :  { %v4596_v20 = vpop.f32.mrb[120].mxu0 }
0x20e8   :  { %v4597_v13 = vadd.f32 %v4776_v17, %v4596_v20  ;;  %v5456_v36 = vpop.f32.mrb[121].mxu0 }
0x20e9   :  { %v4599_v1 = vpop.f32.mrb[122].mxu0 }
0x20ea   :  { %v5457_v52 = vpop.f32.mrb[123].mxu0  ;;  %4603 = vst.msk [vmem:[#allocation2] sm:$0x3] %vm4602_vm15, %v4597_v13 }
0x20eb   :  { %5827 = shalt.err (!%p5824_p4)
}
0x20ec   :  { %s5828_s8 = scalar_lea.hbm %s6113_s4, 32 }
0x20ed   :  { %p5829_p5 = scmp.ne.s32.totalorder %s6113_s4, %s5828_s8  ;;  %p5832_p6 = scmp.lt.u32.totalorder %s5828_s8, %s6113_s4 }
0x20ef   :  { %p5834_p7 = pnand %p5832_p6, %p5829_p5 }
0x20f1   :  { %5837 = shalt.err (!%p5834_p7)
}
0x20f2   :  { %4613 = dma.vmem_to_hbm [thread:$0]  %s4611_s6, 32, %s6113_s4, [#allocation3]  }
0x20f3   :  { %5838 = dma.done.wait [#allocation3], 32  }
0x20f4   :  { %5839 = vsyncadd [#allocation3], 4294967264 }
0x20f5   :  { %4617 = vsyncpa [#allocation3], 1 }

</bundles_post_ra>
